<compile_context>
chip_gen: v7x
topology: tpu7x:2x2x1
jax: 0.10.0
libtpu: 0.0.40
codegen_flags: <defaults>
</compile_context>

<pallas_src>
import math

import jax
import jax.numpy as jnp
from jax.experimental import pallas as pl
from jax.experimental.pallas import tpu as pltpu


def _ceil8(n):
  return ((n + 7) // 8) * 8


# ----------------------------------------------------------------------------
# Host-side constants: border masks, pool / upsample selection matrices
# ----------------------------------------------------------------------------
def _border_masks(H, W, N):
  """(9, N*H*W) f32 validity masks for the 9 taps of a 'same' 3x3 conv.

  Built per image and tiled over the batch (lane order is image-major), so the
  same masks also zero out pltpu.roll wrap-around across image boundaries."""
  hw = jnp.arange(H * W)
  hh, ww = hw // W, hw % W
  rows = []
  for dy in (-1, 0, 1):
    for dx in (-1, 0, 1):
      rows.append((hh + dy >= 0) & (hh + dy < H) &
                  (ww + dx >= 0) & (ww + dx < W))
  m = jnp.stack(rows, axis=0).astype(jnp.float32)          # (9, H*W)
  return jnp.tile(m, (1, N))                                # (9, N*H*W)


def _pool_matrix(H, W, ds, N):
  """(N*H*W, N*Ho*Wo) block-diagonal avg_pool2d(ds) selection matrix."""
  Ho, Wo = H // ds, W // ds
  i = jnp.arange(H * W)
  o = jnp.arange(Ho * Wo)
  ih, iw = i // W, i % W
  oh, ow = o // Wo, o % Wo
  sel = ((ih[:, None] // ds == oh[None, :]) &
         (iw[:, None] // ds == ow[None, :])).astype(jnp.float32) / float(ds * ds)
  return jnp.kron(jnp.eye(N, dtype=jnp.float32), sel)


def _up_matrix(Hs, Ws, ds, N):
  """(N*Hs*Ws, N*Ho*Wo) block-diagonal nearest-neighbour upsample matrix."""
  Ho, Wo = Hs * ds, Ws * ds
  i = jnp.arange(Hs * Ws)
  o = jnp.arange(Ho * Wo)
  ih, iw = i // Ws, i % Ws
  oh, ow = o // Wo, o % Wo
  sel = ((oh[None, :] // ds == ih[:, None]) &
         (ow[None, :] // ds == iw[:, None])).astype(jnp.float32)
  return jnp.kron(jnp.eye(N, dtype=jnp.float32), sel)


def build_unet_constants(levels_meta, N, H, W):
  masks, pools, ups = [], [], []
  h, w = H, W
  for lm in levels_meta:
    masks.append(_border_masks(h, w, N))
    ds = lm["downscale"]
    if ds != 1:
      pools.append(_pool_matrix(h, w, ds, N))
      ups.append(_up_matrix(h // ds, w // ds, ds, N))
      h, w = h // ds, w // ds
    else:                                            # placeholders, never read
      pools.append(jnp.zeros((1, 1), jnp.float32))
      ups.append(jnp.zeros((1, 1), jnp.float32))
  return masks, pools, ups


# ----------------------------------------------------------------------------
# Parameter construction & packing
# ----------------------------------------------------------------------------
def _init_subblock(key, cin, cout):
  ks = jax.random.split(key, 6)
  w0 = jax.random.normal(ks[0], (cout, cin, 3, 3), jnp.float32) / math.sqrt(9 * cin)
  w1 = jax.random.normal(ks[1], (cout, cout, 3, 3), jnp.float32) / math.sqrt(9 * cout)
  wp = jax.random.normal(ks[2], (cout, cin), jnp.float32) / math.sqrt(cin)
  b0 = jax.random.normal(ks[3], (cout,), jnp.float32) * 0.05
  b1 = jax.random.normal(ks[4], (cout,), jnp.float32) * 0.05
  # TODO(synk): ReZero's reference init is zeros; small nonzero values keep the
  # conv branch numerically active in this synthetic test.
  alpha = jax.random.normal(ks[5], (cout,), jnp.float32) * 0.1
  return dict(w0=w0, b0=b0, w1=w1, b1=b1, wp=wp, alpha=alpha)


def build_unet_params(key, base_size, size_factors, depth=2, downscale=2):
  levels = []
  for li, (fi, fo) in enumerate(zip(size_factors[:-1], size_factors[1:])):
    cin, cout = base_size * fi, base_size * fo
    kb = jax.random.fold_in(key, li)
    into = [_init_subblock(jax.random.fold_in(kb, 10 + d), cin, cin)
            for d in range(depth - 1)]
    into.append(_init_subblock(jax.random.fold_in(kb, 10 + depth - 1), cin, cout))
    outof = [_init_subblock(jax.random.fold_in(kb, 100), 2 * cout, cin)]
    outof += [_init_subblock(jax.random.fold_in(kb, 101 + d), cin, cin)
              for d in range(depth - 1)]
    levels.append(dict(into=into, outof=outof, downscale=downscale))
  return levels


def pack_unet_params(levels_params):
  """Packs every subblock into ONE (rows, WMAX) f32 array of 8-aligned bands.

  Per subblock (channels zero-padded to multiples of 8):
    band A (2*cout_p rows): [[w0_tapmajor | 0  | b0],     K = 10*cin_p (+bias col)
                             [0           | wp | 0 ]]
    band B (cout_p rows)  : [alpha*w1_tapmajor | alpha*b1]  K = 9*cout_p (+bias col)
  Returns (packed_array, levels_meta with static row offsets)."""
  bands = []
  levels_meta = []
  row = 0

  def pack_tap_major(w, cin_p, cout_p):
    cout, cin = w.shape[0], w.shape[1]
    wt = jnp.transpose(w, (0, 2, 3, 1)).reshape(cout, 9, cin)
    full = jnp.zeros((cout_p, 9, cin_p), jnp.float32).at[:cout, :, :cin].set(wt)
    return full.reshape(cout_p, 9 * cin_p)

  def pack_subblock(p):
    nonlocal row
    cout, cin = p["wp"].shape
    cin_p, cout_p = _ceil8(cin), _ceil8(cout)
    KA, KB = 10 * cin_p, 9 * cout_p
    A = jnp.zeros((2 * cout_p, KA + 1), jnp.float32)
    A = A.at[:cout_p, :9 * cin_p].set(pack_tap_major(p["w0"], cin_p, cout_p))
    A = A.at[cout_p:cout_p + cout, 9 * cin_p:9 * cin_p + cin].set(p["wp"])
    A = A.at[:cout, KA].set(p["b0"])
    alpha_p = jnp.zeros((cout_p,), jnp.float32).at[:cout].set(p["alpha"])
    B = jnp.zeros((cout_p, KB + 1), jnp.float32)
    B = B.at[:, :KB].set(pack_tap_major(p["w1"], cout_p, cout_p) * alpha_p[:, None])
    B = B.at[:cout, KB].set(p["alpha"] * p["b1"])
    rA, rB = row, row + 2 * cout_p
    row = rB + cout_p
    bands.extend([A, B])
    return dict(cin_p=cin_p, cout_p=cout_p, rA=rA, rB=rB)

  for lv in levels_params:
    levels_meta.append(dict(
        into=[pack_subblock(p) for p in lv["into"]],
        outof=[pack_subblock(p) for p in lv["outof"]],
        downscale=lv["downscale"]))

  wmax = max(b.shape[1] for b in bands)
  packed = jnp.concatenate(
      [jnp.pad(b, ((0, 0), (0, wmax - b.shape[1]))) for b in bands], axis=0)
  return packed, levels_meta


# ----------------------------------------------------------------------------
# The fused kernel
# ----------------------------------------------------------------------------
def _make_unet_kernel(levels_meta, H0, W0, N):
  L = len(levels_meta)

  def kernel(*refs):
    x_ref, pw_ref = refs[0], refs[1]
    mask_refs = refs[2:2 + L]
    pool_refs = refs[2 + L:2 + 2 * L]
    up_refs = refs[2 + 2 * L:2 + 3 * L]
    out_ref = refs[2 + 3 * L]

    def conv_pieces(v, mask, Wimg, Mtot):
      # 9 shifted+masked copies of v (lane roll on the XLU + one VPU multiply
      # per tap; mask rows are precomputed host constants).
      pieces = []
      t = 0
      for dy in (-1, 0, 1):
        for dx in (-1, 0, 1):
          s = dy * Wimg + dx
          if s == 0:
            pieces.append(v)                          # centre tap mask == 1
          else:
            pieces.append(pltpu.roll(v, (-s) % Mtot, axis=1) * mask[t:t + 1, :])
          t += 1
      return pieces

    def subblock(x, sb, mask, Wimg, Mtot):
      cin_p, cout_p = sb["cin_p"], sb["cout_p"]
      rA, rB = sb["rA"], sb["rB"]
      KA, KB = 10 * cin_p, 9 * cout_p
      # Fused (conv0 | ReZero-projection): im2col of relu(x) stacked with raw x
      # against a block-diagonal weight; every row group is a multiple of 8.
      patches = jnp.concatenate(
          conv_pieces(jnp.maximum(x, 0.0), mask, Wimg, Mtot) + [x], axis=0)
      wA = pw_ref[rA:rA + 2 * cout_p, 0:KA]
      bA = pw_ref[rA:rA + 2 * cout_p, KA:KA + 1]
      t0 = jnp.dot(wA, patches, preferred_element_type=jnp.float32) + bA
      h0, proj = t0[:cout_p], t0[cout_p:]
      # TODO(synk): Dropout(p=0.1) is train-time stochastic; eval-mode identity.
      patches2 = jnp.concatenate(
          conv_pieces(jnp.maximum(h0, 0.0), mask, Wimg, Mtot), axis=0)
      wB = pw_ref[rB:rB + cout_p, 0:KB]
      bB = pw_ref[rB:rB + cout_p, KB:KB + 1]
      h1 = jnp.dot(wB, patches2, preferred_element_type=jnp.float32) + bB
      return proj + h1            # ReZero(project(x), h); alpha folded into wB/bB

    def run_level(x, level, H, W):
      if level == L:
        return x                                      # Ignore() hole
      lm = levels_meta[level]
      Mtot = N * H * W
      mask = mask_refs[level][...]                    # loaded once per level
      out = x
      for sb in lm["into"]:                           # enter()
        out = subblock(out, sb, mask, W, Mtot)
      skip = out
      ds = lm["downscale"]
      if ds != 1:
        out = jnp.dot(out, pool_refs[level][...],     # avg_pool2d(ds)
                      preferred_element_type=jnp.float32)
        out = run_level(out, level + 1, H // ds, W // ds)
        out = jnp.dot(out, up_refs[level][...],       # nearest upsample(ds)
                      preferred_element_type=jnp.float32)
      else:
        out = run_level(out, level + 1, H, W)
      out = jnp.concatenate([out, skip], axis=0)      # cat((inputs, skip), dim=1)
      for sb in lm["outof"]:                          # exit()
        out = subblock(out, sb, mask, W, Mtot)
      return out

    out_ref[...] = run_level(x_ref[...], 0, H0, W0)

  return kernel


# ----------------------------------------------------------------------------
# pallas_call wrapper: one launch, one grid step, for the whole forward pass
# ----------------------------------------------------------------------------
def unet_backbone_forward(x_nchw, packed_w, masks, pools, ups, levels_meta):
  N, C, H, W = x_nchw.shape
  C_pad = _ceil8(C)
  M0 = N * H * W

  # Batch folded into lanes: (C_pad, N*H*W), image-major lane order.
  x = jnp.transpose(x_nchw, (1, 0, 2, 3)).reshape(C, M0)
  x = jnp.pad(x, ((0, C_pad - C), (0, 0)))

  operands = (x, packed_w, *masks, *pools, *ups)
  kernel = _make_unet_kernel(levels_meta, H, W, N)

  out = pl.pallas_call(
      kernel,
      out_shape=jax.ShapeDtypeStruct((C_pad, M0), jnp.float32),
      grid_spec=pltpu.PrefetchScalarGridSpec(
          num_scalar_prefetch=0,
          grid=(1,),                                   # single fused step
          in_specs=[pl.BlockSpec(op.shape, lambda i: (0, 0)) for op in operands],
          out_specs=pl.BlockSpec((C_pad, M0), lambda i: (0, 0)),
      ),
      # Per-image work is a few µs: a 2-TC split on v7x would not amortize, so
      # the whole (lane-folded) batch runs as one step on every generation.
      compiler_params=pltpu.CompilerParams(
          dimension_semantics=("arbitrary",)),
  )(*operands)

  y = out[:C].reshape(C, N, H, W)                      # strip channel padding
  return jnp.transpose(y, (1, 0, 2, 3))                # back to NCHW


# ----------------------------------------------------------------------------
if __name__ == "__main__":
  key = jax.random.PRNGKey(0)

  base_size = 4
  size_factors = (1, 2, 4)
  N, H, W = 2, 16, 16
  Cin = base_size * size_factors[0]

  # PyTorch-convention NCHW input; output is NCHW too.
  x = jax.random.normal(jax.random.fold_in(key, 999), (N, Cin, H, W), jnp.float32)

  raw_params = build_unet_params(jax.random.fold_in(key, 1), base_size,
                                 size_factors, depth=2, downscale=2)
  packed_w, levels_meta = pack_unet_params(raw_params)
  masks, pools, ups = build_unet_constants(levels_meta, N, H, W)

  fwd = jax.jit(lambda xx: unet_backbone_forward(
      xx, packed_w, masks, pools, ups, levels_meta))
  y = jax.block_until_ready(fwd(x))

  assert y.shape == (N, Cin, H, W), y.shape            # NCHW (2, 4, 16, 16)
  assert bool(jnp.all(jnp.isfinite(y)))
  print("KERNEL_OK")
</pallas_src>

<mosaic_0001>
module attributes {stable_mosaic.version = 11 : i64} {
  func.func @kernel(%arg0: i32, %arg1: memref<8x512xf32, #tpu.memory_space<vmem>>, %arg2: memref<216x321xf32, #tpu.memory_space<vmem>>, %arg3: memref<9x512xf32, #tpu.memory_space<vmem>>, %arg4: memref<9x128xf32, #tpu.memory_space<vmem>>, %arg5: memref<512x128xf32, #tpu.memory_space<vmem>>, %arg6: memref<128x32xf32, #tpu.memory_space<vmem>>, %arg7: memref<128x512xf32, #tpu.memory_space<vmem>>, %arg8: memref<32x128xf32, #tpu.memory_space<vmem>>, %arg9: memref<8x512xf32, #tpu.memory_space<vmem>>) attributes {dimension_semantics = [#tpu.dimension_semantics<arbitrary>], iteration_bounds = array<i64: 1>, scalar_prefetch = 0 : i64, scratch_operands = 0 : i64, tpu.core_type = #tpu.core_type<tc>, window_params = [{pipeline_mode = #tpu.pipeline_mode<synchronous>, transform_indices = @transform_0, window_bounds = array<i64: 8, 512>}, {pipeline_mode = #tpu.pipeline_mode<synchronous>, transform_indices = @transform_1, window_bounds = array<i64: 216, 321>}, {pipeline_mode = #tpu.pipeline_mode<synchronous>, transform_indices = @transform_2, window_bounds = array<i64: 9, 512>}, {pipeline_mode = #tpu.pipeline_mode<synchronous>, transform_indices = @transform_3, window_bounds = array<i64: 9, 128>}, {pipeline_mode = #tpu.pipeline_mode<synchronous>, transform_indices = @transform_4, window_bounds = array<i64: 512, 128>}, {pipeline_mode = #tpu.pipeline_mode<synchronous>, transform_indices = @transform_5, window_bounds = array<i64: 128, 32>}, {pipeline_mode = #tpu.pipeline_mode<synchronous>, transform_indices = @transform_6, window_bounds = array<i64: 128, 512>}, {pipeline_mode = #tpu.pipeline_mode<synchronous>, transform_indices = @transform_7, window_bounds = array<i64: 32, 128>}, {pipeline_mode = #tpu.pipeline_mode<synchronous>, transform_indices = @transform_8, window_bounds = array<i64: 8, 512>}]} {
    %c0 = arith.constant 0 : index
    %c0_0 = arith.constant 0 : index
    %0 = vector.load %arg1[%c0, %c0_0] : memref<8x512xf32, #tpu.memory_space<vmem>>, vector<8x512xf32>
    %c0_1 = arith.constant 0 : index
    %c0_2 = arith.constant 0 : index
    %1 = vector.load %arg3[%c0_1, %c0_2] : memref<9x512xf32, #tpu.memory_space<vmem>>, vector<9x512xf32>
    %cst = arith.constant 0.000000e+00 : f32
    %2 = vector.broadcast %cst : f32 to vector<8x512xf32>
    %3 = arith.maximumf %0, %2 : vector<8x512xf32>
    %c17_i32 = arith.constant 17 : i32
    %4 = tpu.dynamic_rotate %3 by %c17_i32 dim 1 : vector<8x512xf32>, i32 -> vector<8x512xf32>
    %5 = vector.extract_strided_slice %1 {offsets = [0, 0], sizes = [1, 512], strides = [1, 1]} : vector<9x512xf32> to vector<1x512xf32>
    %6 = vector.broadcast %5 : vector<1x512xf32> to vector<8x512xf32>
    %7 = arith.mulf %4, %6 : vector<8x512xf32>
    %c16_i32 = arith.constant 16 : i32
    %8 = tpu.dynamic_rotate %3 by %c16_i32 dim 1 : vector<8x512xf32>, i32 -> vector<8x512xf32>
    %9 = vector.extract_strided_slice %1 {offsets = [1, 0], sizes = [1, 512], strides = [1, 1]} : vector<9x512xf32> to vector<1x512xf32>
    %10 = vector.broadcast %9 : vector<1x512xf32> to vector<8x512xf32>
    %11 = arith.mulf %8, %10 : vector<8x512xf32>
    %c15_i32 = arith.constant 15 : i32
    %12 = tpu.dynamic_rotate %3 by %c15_i32 dim 1 : vector<8x512xf32>, i32 -> vector<8x512xf32>
    %13 = vector.extract_strided_slice %1 {offsets = [2, 0], sizes = [1, 512], strides = [1, 1]} : vector<9x512xf32> to vector<1x512xf32>
    %14 = vector.broadcast %13 : vector<1x512xf32> to vector<8x512xf32>
    %15 = arith.mulf %12, %14 : vector<8x512xf32>
    %c1_i32 = arith.constant 1 : i32
    %16 = tpu.dynamic_rotate %3 by %c1_i32 dim 1 : vector<8x512xf32>, i32 -> vector<8x512xf32>
    %17 = vector.extract_strided_slice %1 {offsets = [3, 0], sizes = [1, 512], strides = [1, 1]} : vector<9x512xf32> to vector<1x512xf32>
    %18 = vector.broadcast %17 : vector<1x512xf32> to vector<8x512xf32>
    %19 = arith.mulf %16, %18 : vector<8x512xf32>
    %c511_i32 = arith.constant 511 : i32
    %20 = tpu.dynamic_rotate %3 by %c511_i32 dim 1 : vector<8x512xf32>, i32 -> vector<8x512xf32>
    %21 = vector.extract_strided_slice %1 {offsets = [5, 0], sizes = [1, 512], strides = [1, 1]} : vector<9x512xf32> to vector<1x512xf32>
    %22 = vector.broadcast %21 : vector<1x512xf32> to vector<8x512xf32>
    %23 = arith.mulf %20, %22 : vector<8x512xf32>
    %c497_i32 = arith.constant 497 : i32
    %24 = tpu.dynamic_rotate %3 by %c497_i32 dim 1 : vector<8x512xf32>, i32 -> vector<8x512xf32>
    %25 = vector.extract_strided_slice %1 {offsets = [6, 0], sizes = [1, 512], strides = [1, 1]} : vector<9x512xf32> to vector<1x512xf32>
    %26 = vector.broadcast %25 : vector<1x512xf32> to vector<8x512xf32>
    %27 = arith.mulf %24, %26 : vector<8x512xf32>
    %c496_i32 = arith.constant 496 : i32
    %28 = tpu.dynamic_rotate %3 by %c496_i32 dim 1 : vector<8x512xf32>, i32 -> vector<8x512xf32>
    %29 = vector.extract_strided_slice %1 {offsets = [7, 0], sizes = [1, 512], strides = [1, 1]} : vector<9x512xf32> to vector<1x512xf32>
    %30 = vector.broadcast %29 : vector<1x512xf32> to vector<8x512xf32>
    %31 = arith.mulf %28, %30 : vector<8x512xf32>
    %c495_i32 = arith.constant 495 : i32
    %32 = tpu.dynamic_rotate %3 by %c495_i32 dim 1 : vector<8x512xf32>, i32 -> vector<8x512xf32>
    %33 = vector.extract_strided_slice %1 {offsets = [8, 0], sizes = [1, 512], strides = [1, 1]} : vector<9x512xf32> to vector<1x512xf32>
    %34 = vector.broadcast %33 : vector<1x512xf32> to vector<8x512xf32>
    %35 = arith.mulf %32, %34 : vector<8x512xf32>
    %36 = tpu.concatenate %7, %11, %15, %19, %3, %23, %27, %31, %35, %0 in 0 : vector<8x512xf32>, vector<8x512xf32>, vector<8x512xf32>, vector<8x512xf32>, vector<8x512xf32>, vector<8x512xf32>, vector<8x512xf32>, vector<8x512xf32>, vector<8x512xf32>, vector<8x512xf32> -> vector<80x512xf32>
    %c0_3 = arith.constant 0 : index
    %c0_4 = arith.constant 0 : index
    %37 = vector.load %arg2[%c0_3, %c0_4] : memref<216x321xf32, #tpu.memory_space<vmem>>, vector<16x80xf32>
    %c0_5 = arith.constant 0 : index
    %c80 = arith.constant 80 : index
    %38 = vector.load %arg2[%c0_5, %c80] : memref<216x321xf32, #tpu.memory_space<vmem>>, vector<16x1xf32>
    %cst_6 = arith.constant dense<0.000000e+00> : vector<16x512xf32>
    %39 = tpu.matmul %37, %36, %cst_6 {dimension_numbers = #tpu.dot_dimension_numbers<[1], [0], [0], [1], [0, 0, 1, 1], [], []>} : vector<16x80xf32>, vector<80x512xf32>, vector<16x512xf32> -> vector<16x512xf32>
    %40 = vector.broadcast %38 : vector<16x1xf32> to vector<16x512xf32>
    %41 = arith.addf %39, %40 : vector<16x512xf32>
    %42 = vector.extract_strided_slice %41 {offsets = [0, 0], sizes = [8, 512], strides = [1, 1]} : vector<16x512xf32> to vector<8x512xf32>
    %43 = vector.extract_strided_slice %41 {offsets = [8, 0], sizes = [8, 512], strides = [1, 1]} : vector<16x512xf32> to vector<8x512xf32>
    %cst_7 = arith.constant 0.000000e+00 : f32
    %44 = vector.broadcast %cst_7 : f32 to vector<8x512xf32>
    %45 = arith.maximumf %42, %44 : vector<8x512xf32>
    %c17_i32_8 = arith.constant 17 : i32
    %46 = tpu.dynamic_rotate %45 by %c17_i32_8 dim 1 : vector<8x512xf32>, i32 -> vector<8x512xf32>
    %47 = vector.extract_strided_slice %1 {offsets = [0, 0], sizes = [1, 512], strides = [1, 1]} : vector<9x512xf32> to vector<1x512xf32>
    %48 = vector.broadcast %47 : vector<1x512xf32> to vector<8x512xf32>
    %49 = arith.mulf %46, %48 : vector<8x512xf32>
    %c16_i32_9 = arith.constant 16 : i32
    %50 = tpu.dynamic_rotate %45 by %c16_i32_9 dim 1 : vector<8x512xf32>, i32 -> vector<8x512xf32>
    %51 = vector.extract_strided_slice %1 {offsets = [1, 0], sizes = [1, 512], strides = [1, 1]} : vector<9x512xf32> to vector<1x512xf32>
    %52 = vector.broadcast %51 : vector<1x512xf32> to vector<8x512xf32>
    %53 = arith.mulf %50, %52 : vector<8x512xf32>
    %c15_i32_10 = arith.constant 15 : i32
    %54 = tpu.dynamic_rotate %45 by %c15_i32_10 dim 1 : vector<8x512xf32>, i32 -> vector<8x512xf32>
    %55 = vector.extract_strided_slice %1 {offsets = [2, 0], sizes = [1, 512], strides = [1, 1]} : vector<9x512xf32> to vector<1x512xf32>
    %56 = vector.broadcast %55 : vector<1x512xf32> to vector<8x512xf32>
    %57 = arith.mulf %54, %56 : vector<8x512xf32>
    %c1_i32_11 = arith.constant 1 : i32
    %58 = tpu.dynamic_rotate %45 by %c1_i32_11 dim 1 : vector<8x512xf32>, i32 -> vector<8x512xf32>
    %59 = vector.extract_strided_slice %1 {offsets = [3, 0], sizes = [1, 512], strides = [1, 1]} : vector<9x512xf32> to vector<1x512xf32>
    %60 = vector.broadcast %59 : vector<1x512xf32> to vector<8x512xf32>
    %61 = arith.mulf %58, %60 : vector<8x512xf32>
    %c511_i32_12 = arith.constant 511 : i32
    %62 = tpu.dynamic_rotate %45 by %c511_i32_12 dim 1 : vector<8x512xf32>, i32 -> vector<8x512xf32>
    %63 = vector.extract_strided_slice %1 {offsets = [5, 0], sizes = [1, 512], strides = [1, 1]} : vector<9x512xf32> to vector<1x512xf32>
    %64 = vector.broadcast %63 : vector<1x512xf32> to vector<8x512xf32>
    %65 = arith.mulf %62, %64 : vector<8x512xf32>
    %c497_i32_13 = arith.constant 497 : i32
    %66 = tpu.dynamic_rotate %45 by %c497_i32_13 dim 1 : vector<8x512xf32>, i32 -> vector<8x512xf32>
    %67 = vector.extract_strided_slice %1 {offsets = [6, 0], sizes = [1, 512], strides = [1, 1]} : vector<9x512xf32> to vector<1x512xf32>
    %68 = vector.broadcast %67 : vector<1x512xf32> to vector<8x512xf32>
    %69 = arith.mulf %66, %68 : vector<8x512xf32>
    %c496_i32_14 = arith.constant 496 : i32
    %70 = tpu.dynamic_rotate %45 by %c496_i32_14 dim 1 : vector<8x512xf32>, i32 -> vector<8x512xf32>
    %71 = vector.extract_strided_slice %1 {offsets = [7, 0], sizes = [1, 512], strides = [1, 1]} : vector<9x512xf32> to vector<1x512xf32>
    %72 = vector.broadcast %71 : vector<1x512xf32> to vector<8x512xf32>
    %73 = arith.mulf %70, %72 : vector<8x512xf32>
    %c495_i32_15 = arith.constant 495 : i32
    %74 = tpu.dynamic_rotate %45 by %c495_i32_15 dim 1 : vector<8x512xf32>, i32 -> vector<8x512xf32>
    %75 = vector.extract_strided_slice %1 {offsets = [8, 0], sizes = [1, 512], strides = [1, 1]} : vector<9x512xf32> to vector<1x512xf32>
    %76 = vector.broadcast %75 : vector<1x512xf32> to vector<8x512xf32>
    %77 = arith.mulf %74, %76 : vector<8x512xf32>
    %78 = tpu.concatenate %49, %53, %57, %61, %45, %65, %69, %73, %77 in 0 : vector<8x512xf32>, vector<8x512xf32>, vector<8x512xf32>, vector<8x512xf32>, vector<8x512xf32>, vector<8x512xf32>, vector<8x512xf32>, vector<8x512xf32>, vector<8x512xf32> -> vector<72x512xf32>
    %c16 = arith.constant 16 : index
    %c0_16 = arith.constant 0 : index
    %79 = vector.load %arg2[%c16, %c0_16] : memref<216x321xf32, #tpu.memory_space<vmem>>, vector<8x72xf32>
    %c16_17 = arith.constant 16 : index
    %c72 = arith.constant 72 : index
    %80 = vector.load %arg2[%c16_17, %c72] : memref<216x321xf32, #tpu.memory_space<vmem>>, vector<8x1xf32>
    %cst_18 = arith.constant dense<0.000000e+00> : vector<8x512xf32>
    %81 = tpu.matmul %79, %78, %cst_18 {dimension_numbers = #tpu.dot_dimension_numbers<[1], [0], [0], [1], [0, 0, 1, 1], [], []>} : vector<8x72xf32>, vector<72x512xf32>, vector<8x512xf32> -> vector<8x512xf32>
    %82 = vector.broadcast %80 : vector<8x1xf32> to vector<8x512xf32>
    %83 = arith.addf %81, %82 : vector<8x512xf32>
    %84 = arith.addf %43, %83 : vector<8x512xf32>
    %cst_19 = arith.constant 0.000000e+00 : f32
    %85 = vector.broadcast %cst_19 : f32 to vector<8x512xf32>
    %86 = arith.maximumf %84, %85 : vector<8x512xf32>
    %c17_i32_20 = arith.constant 17 : i32
    %87 = tpu.dynamic_rotate %86 by %c17_i32_20 dim 1 : vector<8x512xf32>, i32 -> vector<8x512xf32>
    %88 = vector.extract_strided_slice %1 {offsets = [0, 0], sizes = [1, 512], strides = [1, 1]} : vector<9x512xf32> to vector<1x512xf32>
    %89 = vector.broadcast %88 : vector<1x512xf32> to vector<8x512xf32>
    %90 = arith.mulf %87, %89 : vector<8x512xf32>
    %c16_i32_21 = arith.constant 16 : i32
    %91 = tpu.dynamic_rotate %86 by %c16_i32_21 dim 1 : vector<8x512xf32>, i32 -> vector<8x512xf32>
    %92 = vector.extract_strided_slice %1 {offsets = [1, 0], sizes = [1, 512], strides = [1, 1]} : vector<9x512xf32> to vector<1x512xf32>
    %93 = vector.broadcast %92 : vector<1x512xf32> to vector<8x512xf32>
    %94 = arith.mulf %91, %93 : vector<8x512xf32>
    %c15_i32_22 = arith.constant 15 : i32
    %95 = tpu.dynamic_rotate %86 by %c15_i32_22 dim 1 : vector<8x512xf32>, i32 -> vector<8x512xf32>
    %96 = vector.extract_strided_slice %1 {offsets = [2, 0], sizes = [1, 512], strides = [1, 1]} : vector<9x512xf32> to vector<1x512xf32>
    %97 = vector.broadcast %96 : vector<1x512xf32> to vector<8x512xf32>
    %98 = arith.mulf %95, %97 : vector<8x512xf32>
    %c1_i32_23 = arith.constant 1 : i32
    %99 = tpu.dynamic_rotate %86 by %c1_i32_23 dim 1 : vector<8x512xf32>, i32 -> vector<8x512xf32>
    %100 = vector.extract_strided_slice %1 {offsets = [3, 0], sizes = [1, 512], strides = [1, 1]} : vector<9x512xf32> to vector<1x512xf32>
    %101 = vector.broadcast %100 : vector<1x512xf32> to vector<8x512xf32>
    %102 = arith.mulf %99, %101 : vector<8x512xf32>
    %c511_i32_24 = arith.constant 511 : i32
    %103 = tpu.dynamic_rotate %86 by %c511_i32_24 dim 1 : vector<8x512xf32>, i32 -> vector<8x512xf32>
    %104 = vector.extract_strided_slice %1 {offsets = [5, 0], sizes = [1, 512], strides = [1, 1]} : vector<9x512xf32> to vector<1x512xf32>
    %105 = vector.broadcast %104 : vector<1x512xf32> to vector<8x512xf32>
    %106 = arith.mulf %103, %105 : vector<8x512xf32>
    %c497_i32_25 = arith.constant 497 : i32
    %107 = tpu.dynamic_rotate %86 by %c497_i32_25 dim 1 : vector<8x512xf32>, i32 -> vector<8x512xf32>
    %108 = vector.extract_strided_slice %1 {offsets = [6, 0], sizes = [1, 512], strides = [1, 1]} : vector<9x512xf32> to vector<1x512xf32>
    %109 = vector.broadcast %108 : vector<1x512xf32> to vector<8x512xf32>
    %110 = arith.mulf %107, %109 : vector<8x512xf32>
    %c496_i32_26 = arith.constant 496 : i32
    %111 = tpu.dynamic_rotate %86 by %c496_i32_26 dim 1 : vector<8x512xf32>, i32 -> vector<8x512xf32>
    %112 = vector.extract_strided_slice %1 {offsets = [7, 0], sizes = [1, 512], strides = [1, 1]} : vector<9x512xf32> to vector<1x512xf32>
    %113 = vector.broadcast %112 : vector<1x512xf32> to vector<8x512xf32>
    %114 = arith.mulf %111, %113 : vector<8x512xf32>
    %c495_i32_27 = arith.constant 495 : i32
    %115 = tpu.dynamic_rotate %86 by %c495_i32_27 dim 1 : vector<8x512xf32>, i32 -> vector<8x512xf32>
    %116 = vector.extract_strided_slice %1 {offsets = [8, 0], sizes = [1, 512], strides = [1, 1]} : vector<9x512xf32> to vector<1x512xf32>
    %117 = vector.broadcast %116 : vector<1x512xf32> to vector<8x512xf32>
    %118 = arith.mulf %115, %117 : vector<8x512xf32>
    %119 = tpu.concatenate %90, %94, %98, %102, %86, %106, %110, %114, %118, %84 in 0 : vector<8x512xf32>, vector<8x512xf32>, vector<8x512xf32>, vector<8x512xf32>, vector<8x512xf32>, vector<8x512xf32>, vector<8x512xf32>, vector<8x512xf32>, vector<8x512xf32>, vector<8x512xf32> -> vector<80x512xf32>
    %c24 = arith.constant 24 : index
    %c0_28 = arith.constant 0 : index
    %120 = vector.load %arg2[%c24, %c0_28] : memref<216x321xf32, #tpu.memory_space<vmem>>, vector<16x80xf32>
    %c24_29 = arith.constant 24 : index
    %c80_30 = arith.constant 80 : index
    %121 = vector.load %arg2[%c24_29, %c80_30] : memref<216x321xf32, #tpu.memory_space<vmem>>, vector<16x1xf32>
    %cst_31 = arith.constant dense<0.000000e+00> : vector<16x512xf32>
    %122 = tpu.matmul %120, %119, %cst_31 {dimension_numbers = #tpu.dot_dimension_numbers<[1], [0], [0], [1], [0, 0, 1, 1], [], []>} : vector<16x80xf32>, vector<80x512xf32>, vector<16x512xf32> -> vector<16x512xf32>
    %123 = vector.broadcast %121 : vector<16x1xf32> to vector<16x512xf32>
    %124 = arith.addf %122, %123 : vector<16x512xf32>
    %125 = vector.extract_strided_slice %124 {offsets = [0, 0], sizes = [8, 512], strides = [1, 1]} : vector<16x512xf32> to vector<8x512xf32>
    %126 = vector.extract_strided_slice %124 {offsets = [8, 0], sizes = [8, 512], strides = [1, 1]} : vector<16x512xf32> to vector<8x512xf32>
    %cst_32 = arith.constant 0.000000e+00 : f32
    %127 = vector.broadcast %cst_32 : f32 to vector<8x512xf32>
    %128 = arith.maximumf %125, %127 : vector<8x512xf32>
    %c17_i32_33 = arith.constant 17 : i32
    %129 = tpu.dynamic_rotate %128 by %c17_i32_33 dim 1 : vector<8x512xf32>, i32 -> vector<8x512xf32>
    %130 = vector.extract_strided_slice %1 {offsets = [0, 0], sizes = [1, 512], strides = [1, 1]} : vector<9x512xf32> to vector<1x512xf32>
    %131 = vector.broadcast %130 : vector<1x512xf32> to vector<8x512xf32>
    %132 = arith.mulf %129, %131 : vector<8x512xf32>
    %c16_i32_34 = arith.constant 16 : i32
    %133 = tpu.dynamic_rotate %128 by %c16_i32_34 dim 1 : vector<8x512xf32>, i32 -> vector<8x512xf32>
    %134 = vector.extract_strided_slice %1 {offsets = [1, 0], sizes = [1, 512], strides = [1, 1]} : vector<9x512xf32> to vector<1x512xf32>
    %135 = vector.broadcast %134 : vector<1x512xf32> to vector<8x512xf32>
    %136 = arith.mulf %133, %135 : vector<8x512xf32>
    %c15_i32_35 = arith.constant 15 : i32
    %137 = tpu.dynamic_rotate %128 by %c15_i32_35 dim 1 : vector<8x512xf32>, i32 -> vector<8x512xf32>
    %138 = vector.extract_strided_slice %1 {offsets = [2, 0], sizes = [1, 512], strides = [1, 1]} : vector<9x512xf32> to vector<1x512xf32>
    %139 = vector.broadcast %138 : vector<1x512xf32> to vector<8x512xf32>
    %140 = arith.mulf %137, %139 : vector<8x512xf32>
    %c1_i32_36 = arith.constant 1 : i32
    %141 = tpu.dynamic_rotate %128 by %c1_i32_36 dim 1 : vector<8x512xf32>, i32 -> vector<8x512xf32>
    %142 = vector.extract_strided_slice %1 {offsets = [3, 0], sizes = [1, 512], strides = [1, 1]} : vector<9x512xf32> to vector<1x512xf32>
    %143 = vector.broadcast %142 : vector<1x512xf32> to vector<8x512xf32>
    %144 = arith.mulf %141, %143 : vector<8x512xf32>
    %c511_i32_37 = arith.constant 511 : i32
    %145 = tpu.dynamic_rotate %128 by %c511_i32_37 dim 1 : vector<8x512xf32>, i32 -> vector<8x512xf32>
    %146 = vector.extract_strided_slice %1 {offsets = [5, 0], sizes = [1, 512], strides = [1, 1]} : vector<9x512xf32> to vector<1x512xf32>
    %147 = vector.broadcast %146 : vector<1x512xf32> to vector<8x512xf32>
    %148 = arith.mulf %145, %147 : vector<8x512xf32>
    %c497_i32_38 = arith.constant 497 : i32
    %149 = tpu.dynamic_rotate %128 by %c497_i32_38 dim 1 : vector<8x512xf32>, i32 -> vector<8x512xf32>
    %150 = vector.extract_strided_slice %1 {offsets = [6, 0], sizes = [1, 512], strides = [1, 1]} : vector<9x512xf32> to vector<1x512xf32>
    %151 = vector.broadcast %150 : vector<1x512xf32> to vector<8x512xf32>
    %152 = arith.mulf %149, %151 : vector<8x512xf32>
    %c496_i32_39 = arith.constant 496 : i32
    %153 = tpu.dynamic_rotate %128 by %c496_i32_39 dim 1 : vector<8x512xf32>, i32 -> vector<8x512xf32>
    %154 = vector.extract_strided_slice %1 {offsets = [7, 0], sizes = [1, 512], strides = [1, 1]} : vector<9x512xf32> to vector<1x512xf32>
    %155 = vector.broadcast %154 : vector<1x512xf32> to vector<8x512xf32>
    %156 = arith.mulf %153, %155 : vector<8x512xf32>
    %c495_i32_40 = arith.constant 495 : i32
    %157 = tpu.dynamic_rotate %128 by %c495_i32_40 dim 1 : vector<8x512xf32>, i32 -> vector<8x512xf32>
    %158 = vector.extract_strided_slice %1 {offsets = [8, 0], sizes = [1, 512], strides = [1, 1]} : vector<9x512xf32> to vector<1x512xf32>
    %159 = vector.broadcast %158 : vector<1x512xf32> to vector<8x512xf32>
    %160 = arith.mulf %157, %159 : vector<8x512xf32>
    %161 = tpu.concatenate %132, %136, %140, %144, %128, %148, %152, %156, %160 in 0 : vector<8x512xf32>, vector<8x512xf32>, vector<8x512xf32>, vector<8x512xf32>, vector<8x512xf32>, vector<8x512xf32>, vector<8x512xf32>, vector<8x512xf32>, vector<8x512xf32> -> vector<72x512xf32>
    %c40 = arith.constant 40 : index
    %c0_41 = arith.constant 0 : index
    %162 = vector.load %arg2[%c40, %c0_41] : memref<216x321xf32, #tpu.memory_space<vmem>>, vector<8x72xf32>
    %c40_42 = arith.constant 40 : index
    %c72_43 = arith.constant 72 : index
    %163 = vector.load %arg2[%c40_42, %c72_43] : memref<216x321xf32, #tpu.memory_space<vmem>>, vector<8x1xf32>
    %cst_44 = arith.constant dense<0.000000e+00> : vector<8x512xf32>
    %164 = tpu.matmul %162, %161, %cst_44 {dimension_numbers = #tpu.dot_dimension_numbers<[1], [0], [0], [1], [0, 0, 1, 1], [], []>} : vector<8x72xf32>, vector<72x512xf32>, vector<8x512xf32> -> vector<8x512xf32>
    %165 = vector.broadcast %163 : vector<8x1xf32> to vector<8x512xf32>
    %166 = arith.addf %164, %165 : vector<8x512xf32>
    %167 = arith.addf %126, %166 : vector<8x512xf32>
    %c0_45 = arith.constant 0 : index
    %c0_46 = arith.constant 0 : index
    %168 = vector.load %arg5[%c0_45, %c0_46] : memref<512x128xf32, #tpu.memory_space<vmem>>, vector<512x128xf32>
    %cst_47 = arith.constant dense<0.000000e+00> : vector<8x128xf32>
    %169 = tpu.matmul %167, %168, %cst_47 {dimension_numbers = #tpu.dot_dimension_numbers<[1], [0], [0], [1], [0, 0, 1, 1], [], []>} : vector<8x512xf32>, vector<512x128xf32>, vector<8x128xf32> -> vector<8x128xf32>
    %c0_48 = arith.constant 0 : index
    %c0_49 = arith.constant 0 : index
    %170 = vector.load %arg4[%c0_48, %c0_49] : memref<9x128xf32, #tpu.memory_space<vmem>>, vector<9x128xf32>
    %cst_50 = arith.constant 0.000000e+00 : f32
    %171 = vector.broadcast %cst_50 : f32 to vector<8x128xf32>
    %172 = arith.maximumf %169, %171 : vector<8x128xf32>
    %c9_i32 = arith.constant 9 : i32
    %173 = tpu.dynamic_rotate %172 by %c9_i32 dim 1 : vector<8x128xf32>, i32 -> vector<8x128xf32>
    %174 = vector.extract_strided_slice %170 {offsets = [0, 0], sizes = [1, 128], strides = [1, 1]} : vector<9x128xf32> to vector<1x128xf32>
    %175 = vector.broadcast %174 : vector<1x128xf32> to vector<8x128xf32>
    %176 = arith.mulf %173, %175 : vector<8x128xf32>
    %c8_i32 = arith.constant 8 : i32
    %177 = tpu.dynamic_rotate %172 by %c8_i32 dim 1 : vector<8x128xf32>, i32 -> vector<8x128xf32>
    %178 = vector.extract_strided_slice %170 {offsets = [1, 0], sizes = [1, 128], strides = [1, 1]} : vector<9x128xf32> to vector<1x128xf32>
    %179 = vector.broadcast %178 : vector<1x128xf32> to vector<8x128xf32>
    %180 = arith.mulf %177, %179 : vector<8x128xf32>
    %c7_i32 = arith.constant 7 : i32
    %181 = tpu.dynamic_rotate %172 by %c7_i32 dim 1 : vector<8x128xf32>, i32 -> vector<8x128xf32>
    %182 = vector.extract_strided_slice %170 {offsets = [2, 0], sizes = [1, 128], strides = [1, 1]} : vector<9x128xf32> to vector<1x128xf32>
    %183 = vector.broadcast %182 : vector<1x128xf32> to vector<8x128xf32>
    %184 = arith.mulf %181, %183 : vector<8x128xf32>
    %c1_i32_51 = arith.constant 1 : i32
    %185 = tpu.dynamic_rotate %172 by %c1_i32_51 dim 1 : vector<8x128xf32>, i32 -> vector<8x128xf32>
    %186 = vector.extract_strided_slice %170 {offsets = [3, 0], sizes = [1, 128], strides = [1, 1]} : vector<9x128xf32> to vector<1x128xf32>
    %187 = vector.broadcast %186 : vector<1x128xf32> to vector<8x128xf32>
    %188 = arith.mulf %185, %187 : vector<8x128xf32>
    %c127_i32 = arith.constant 127 : i32
    %189 = tpu.dynamic_rotate %172 by %c127_i32 dim 1 : vector<8x128xf32>, i32 -> vector<8x128xf32>
    %190 = vector.extract_strided_slice %170 {offsets = [5, 0], sizes = [1, 128], strides = [1, 1]} : vector<9x128xf32> to vector<1x128xf32>
    %191 = vector.broadcast %190 : vector<1x128xf32> to vector<8x128xf32>
    %192 = arith.mulf %189, %191 : vector<8x128xf32>
    %c121_i32 = arith.constant 121 : i32
    %193 = tpu.dynamic_rotate %172 by %c121_i32 dim 1 : vector<8x128xf32>, i32 -> vector<8x128xf32>
    %194 = vector.extract_strided_slice %170 {offsets = [6, 0], sizes = [1, 128], strides = [1, 1]} : vector<9x128xf32> to vector<1x128xf32>
    %195 = vector.broadcast %194 : vector<1x128xf32> to vector<8x128xf32>
    %196 = arith.mulf %193, %195 : vector<8x128xf32>
    %c120_i32 = arith.constant 120 : i32
    %197 = tpu.dynamic_rotate %172 by %c120_i32 dim 1 : vector<8x128xf32>, i32 -> vector<8x128xf32>
    %198 = vector.extract_strided_slice %170 {offsets = [7, 0], sizes = [1, 128], strides = [1, 1]} : vector<9x128xf32> to vector<1x128xf32>
    %199 = vector.broadcast %198 : vector<1x128xf32> to vector<8x128xf32>
    %200 = arith.mulf %197, %199 : vector<8x128xf32>
    %c119_i32 = arith.constant 119 : i32
    %201 = tpu.dynamic_rotate %172 by %c119_i32 dim 1 : vector<8x128xf32>, i32 -> vector<8x128xf32>
    %202 = vector.extract_strided_slice %170 {offsets = [8, 0], sizes = [1, 128], strides = [1, 1]} : vector<9x128xf32> to vector<1x128xf32>
    %203 = vector.broadcast %202 : vector<1x128xf32> to vector<8x128xf32>
    %204 = arith.mulf %201, %203 : vector<8x128xf32>
    %205 = tpu.concatenate %176, %180, %184, %188, %172, %192, %196, %200, %204, %169 in 0 : vector<8x128xf32>, vector<8x128xf32>, vector<8x128xf32>, vector<8x128xf32>, vector<8x128xf32>, vector<8x128xf32>, vector<8x128xf32>, vector<8x128xf32>, vector<8x128xf32>, vector<8x128xf32> -> vector<80x128xf32>
    %c96 = arith.constant 96 : index
    %c0_52 = arith.constant 0 : index
    %206 = vector.load %arg2[%c96, %c0_52] : memref<216x321xf32, #tpu.memory_space<vmem>>, vector<16x80xf32>
    %c96_53 = arith.constant 96 : index
    %c80_54 = arith.constant 80 : index
    %207 = vector.load %arg2[%c96_53, %c80_54] : memref<216x321xf32, #tpu.memory_space<vmem>>, vector<16x1xf32>
    %cst_55 = arith.constant dense<0.000000e+00> : vector<16x128xf32>
    %208 = tpu.matmul %206, %205, %cst_55 {dimension_numbers = #tpu.dot_dimension_numbers<[1], [0], [0], [1], [0, 0, 1, 1], [], []>} : vector<16x80xf32>, vector<80x128xf32>, vector<16x128xf32> -> vector<16x128xf32>
    %209 = vector.broadcast %207 : vector<16x1xf32> to vector<16x128xf32>
    %210 = arith.addf %208, %209 : vector<16x128xf32>
    %211 = vector.extract_strided_slice %210 {offsets = [0, 0], sizes = [8, 128], strides = [1, 1]} : vector<16x128xf32> to vector<8x128xf32>
    %212 = vector.extract_strided_slice %210 {offsets = [8, 0], sizes = [8, 128], strides = [1, 1]} : vector<16x128xf32> to vector<8x128xf32>
    %cst_56 = arith.constant 0.000000e+00 : f32
    %213 = vector.broadcast %cst_56 : f32 to vector<8x128xf32>
    %214 = arith.maximumf %211, %213 : vector<8x128xf32>
    %c9_i32_57 = arith.constant 9 : i32
    %215 = tpu.dynamic_rotate %214 by %c9_i32_57 dim 1 : vector<8x128xf32>, i32 -> vector<8x128xf32>
    %216 = vector.extract_strided_slice %170 {offsets = [0, 0], sizes = [1, 128], strides = [1, 1]} : vector<9x128xf32> to vector<1x128xf32>
    %217 = vector.broadcast %216 : vector<1x128xf32> to vector<8x128xf32>
    %218 = arith.mulf %215, %217 : vector<8x128xf32>
    %c8_i32_58 = arith.constant 8 : i32
    %219 = tpu.dynamic_rotate %214 by %c8_i32_58 dim 1 : vector<8x128xf32>, i32 -> vector<8x128xf32>
    %220 = vector.extract_strided_slice %170 {offsets = [1, 0], sizes = [1, 128], strides = [1, 1]} : vector<9x128xf32> to vector<1x128xf32>
    %221 = vector.broadcast %220 : vector<1x128xf32> to vector<8x128xf32>
    %222 = arith.mulf %219, %221 : vector<8x128xf32>
    %c7_i32_59 = arith.constant 7 : i32
    %223 = tpu.dynamic_rotate %214 by %c7_i32_59 dim 1 : vector<8x128xf32>, i32 -> vector<8x128xf32>
    %224 = vector.extract_strided_slice %170 {offsets = [2, 0], sizes = [1, 128], strides = [1, 1]} : vector<9x128xf32> to vector<1x128xf32>
    %225 = vector.broadcast %224 : vector<1x128xf32> to vector<8x128xf32>
    %226 = arith.mulf %223, %225 : vector<8x128xf32>
    %c1_i32_60 = arith.constant 1 : i32
    %227 = tpu.dynamic_rotate %214 by %c1_i32_60 dim 1 : vector<8x128xf32>, i32 -> vector<8x128xf32>
    %228 = vector.extract_strided_slice %170 {offsets = [3, 0], sizes = [1, 128], strides = [1, 1]} : vector<9x128xf32> to vector<1x128xf32>
    %229 = vector.broadcast %228 : vector<1x128xf32> to vector<8x128xf32>
    %230 = arith.mulf %227, %229 : vector<8x128xf32>
    %c127_i32_61 = arith.constant 127 : i32
    %231 = tpu.dynamic_rotate %214 by %c127_i32_61 dim 1 : vector<8x128xf32>, i32 -> vector<8x128xf32>
    %232 = vector.extract_strided_slice %170 {offsets = [5, 0], sizes = [1, 128], strides = [1, 1]} : vector<9x128xf32> to vector<1x128xf32>
    %233 = vector.broadcast %232 : vector<1x128xf32> to vector<8x128xf32>
    %234 = arith.mulf %231, %233 : vector<8x128xf32>
    %c121_i32_62 = arith.constant 121 : i32
    %235 = tpu.dynamic_rotate %214 by %c121_i32_62 dim 1 : vector<8x128xf32>, i32 -> vector<8x128xf32>
    %236 = vector.extract_strided_slice %170 {offsets = [6, 0], sizes = [1, 128], strides = [1, 1]} : vector<9x128xf32> to vector<1x128xf32>
    %237 = vector.broadcast %236 : vector<1x128xf32> to vector<8x128xf32>
    %238 = arith.mulf %235, %237 : vector<8x128xf32>
    %c120_i32_63 = arith.constant 120 : i32
    %239 = tpu.dynamic_rotate %214 by %c120_i32_63 dim 1 : vector<8x128xf32>, i32 -> vector<8x128xf32>
    %240 = vector.extract_strided_slice %170 {offsets = [7, 0], sizes = [1, 128], strides = [1, 1]} : vector<9x128xf32> to vector<1x128xf32>
    %241 = vector.broadcast %240 : vector<1x128xf32> to vector<8x128xf32>
    %242 = arith.mulf %239, %241 : vector<8x128xf32>
    %c119_i32_64 = arith.constant 119 : i32
    %243 = tpu.dynamic_rotate %214 by %c119_i32_64 dim 1 : vector<8x128xf32>, i32 -> vector<8x128xf32>
    %244 = vector.extract_strided_slice %170 {offsets = [8, 0], sizes = [1, 128], strides = [1, 1]} : vector<9x128xf32> to vector<1x128xf32>
    %245 = vector.broadcast %244 : vector<1x128xf32> to vector<8x128xf32>
    %246 = arith.mulf %243, %245 : vector<8x128xf32>
    %247 = tpu.concatenate %218, %222, %226, %230, %214, %234, %238, %242, %246 in 0 : vector<8x128xf32>, vector<8x128xf32>, vector<8x128xf32>, vector<8x128xf32>, vector<8x128xf32>, vector<8x128xf32>, vector<8x128xf32>, vector<8x128xf32>, vector<8x128xf32> -> vector<72x128xf32>
    %c112 = arith.constant 112 : index
    %c0_65 = arith.constant 0 : index
    %248 = vector.load %arg2[%c112, %c0_65] : memref<216x321xf32, #tpu.memory_space<vmem>>, vector<8x72xf32>
    %c112_66 = arith.constant 112 : index
    %c72_67 = arith.constant 72 : index
    %249 = vector.load %arg2[%c112_66, %c72_67] : memref<216x321xf32, #tpu.memory_space<vmem>>, vector<8x1xf32>
    %cst_68 = arith.constant dense<0.000000e+00> : vector<8x128xf32>
    %250 = tpu.matmul %248, %247, %cst_68 {dimension_numbers = #tpu.dot_dimension_numbers<[1], [0], [0], [1], [0, 0, 1, 1], [], []>} : vector<8x72xf32>, vector<72x128xf32>, vector<8x128xf32> -> vector<8x128xf32>
    %251 = vector.broadcast %249 : vector<8x1xf32> to vector<8x128xf32>
    %252 = arith.addf %250, %251 : vector<8x128xf32>
    %253 = arith.addf %212, %252 : vector<8x128xf32>
    %cst_69 = arith.constant 0.000000e+00 : f32
    %254 = vector.broadcast %cst_69 : f32 to vector<8x128xf32>
    %255 = arith.maximumf %253, %254 : vector<8x128xf32>
    %c9_i32_70 = arith.constant 9 : i32
    %256 = tpu.dynamic_rotate %255 by %c9_i32_70 dim 1 : vector<8x128xf32>, i32 -> vector<8x128xf32>
    %257 = vector.extract_strided_slice %170 {offsets = [0, 0], sizes = [1, 128], strides = [1, 1]} : vector<9x128xf32> to vector<1x128xf32>
    %258 = vector.broadcast %257 : vector<1x128xf32> to vector<8x128xf32>
    %259 = arith.mulf %256, %258 : vector<8x128xf32>
    %c8_i32_71 = arith.constant 8 : i32
    %260 = tpu.dynamic_rotate %255 by %c8_i32_71 dim 1 : vector<8x128xf32>, i32 -> vector<8x128xf32>
    %261 = vector.extract_strided_slice %170 {offsets = [1, 0], sizes = [1, 128], strides = [1, 1]} : vector<9x128xf32> to vector<1x128xf32>
    %262 = vector.broadcast %261 : vector<1x128xf32> to vector<8x128xf32>
    %263 = arith.mulf %260, %262 : vector<8x128xf32>
    %c7_i32_72 = arith.constant 7 : i32
    %264 = tpu.dynamic_rotate %255 by %c7_i32_72 dim 1 : vector<8x128xf32>, i32 -> vector<8x128xf32>
    %265 = vector.extract_strided_slice %170 {offsets = [2, 0], sizes = [1, 128], strides = [1, 1]} : vector<9x128xf32> to vector<1x128xf32>
    %266 = vector.broadcast %265 : vector<1x128xf32> to vector<8x128xf32>
    %267 = arith.mulf %264, %266 : vector<8x128xf32>
    %c1_i32_73 = arith.constant 1 : i32
    %268 = tpu.dynamic_rotate %255 by %c1_i32_73 dim 1 : vector<8x128xf32>, i32 -> vector<8x128xf32>
    %269 = vector.extract_strided_slice %170 {offsets = [3, 0], sizes = [1, 128], strides = [1, 1]} : vector<9x128xf32> to vector<1x128xf32>
    %270 = vector.broadcast %269 : vector<1x128xf32> to vector<8x128xf32>
    %271 = arith.mulf %268, %270 : vector<8x128xf32>
    %c127_i32_74 = arith.constant 127 : i32
    %272 = tpu.dynamic_rotate %255 by %c127_i32_74 dim 1 : vector<8x128xf32>, i32 -> vector<8x128xf32>
    %273 = vector.extract_strided_slice %170 {offsets = [5, 0], sizes = [1, 128], strides = [1, 1]} : vector<9x128xf32> to vector<1x128xf32>
    %274 = vector.broadcast %273 : vector<1x128xf32> to vector<8x128xf32>
    %275 = arith.mulf %272, %274 : vector<8x128xf32>
    %c121_i32_75 = arith.constant 121 : i32
    %276 = tpu.dynamic_rotate %255 by %c121_i32_75 dim 1 : vector<8x128xf32>, i32 -> vector<8x128xf32>
    %277 = vector.extract_strided_slice %170 {offsets = [6, 0], sizes = [1, 128], strides = [1, 1]} : vector<9x128xf32> to vector<1x128xf32>
    %278 = vector.broadcast %277 : vector<1x128xf32> to vector<8x128xf32>
    %279 = arith.mulf %276, %278 : vector<8x128xf32>
    %c120_i32_76 = arith.constant 120 : i32
    %280 = tpu.dynamic_rotate %255 by %c120_i32_76 dim 1 : vector<8x128xf32>, i32 -> vector<8x128xf32>
    %281 = vector.extract_strided_slice %170 {offsets = [7, 0], sizes = [1, 128], strides = [1, 1]} : vector<9x128xf32> to vector<1x128xf32>
    %282 = vector.broadcast %281 : vector<1x128xf32> to vector<8x128xf32>
    %283 = arith.mulf %280, %282 : vector<8x128xf32>
    %c119_i32_77 = arith.constant 119 : i32
    %284 = tpu.dynamic_rotate %255 by %c119_i32_77 dim 1 : vector<8x128xf32>, i32 -> vector<8x128xf32>
    %285 = vector.extract_strided_slice %170 {offsets = [8, 0], sizes = [1, 128], strides = [1, 1]} : vector<9x128xf32> to vector<1x128xf32>
    %286 = vector.broadcast %285 : vector<1x128xf32> to vector<8x128xf32>
    %287 = arith.mulf %284, %286 : vector<8x128xf32>
    %288 = tpu.concatenate %259, %263, %267, %271, %255, %275, %279, %283, %287, %253 in 0 : vector<8x128xf32>, vector<8x128xf32>, vector<8x128xf32>, vector<8x128xf32>, vector<8x128xf32>, vector<8x128xf32>, vector<8x128xf32>, vector<8x128xf32>, vector<8x128xf32>, vector<8x128xf32> -> vector<80x128xf32>
    %c120 = arith.constant 120 : index
    %c0_78 = arith.constant 0 : index
    %289 = vector.load %arg2[%c120, %c0_78] : memref<216x321xf32, #tpu.memory_space<vmem>>, vector<32x80xf32>
    %c120_79 = arith.constant 120 : index
    %c80_80 = arith.constant 80 : index
    %290 = vector.load %arg2[%c120_79, %c80_80] : memref<216x321xf32, #tpu.memory_space<vmem>>, vector<32x1xf32>
    %cst_81 = arith.constant dense<0.000000e+00> : vector<32x128xf32>
    %291 = tpu.matmul %289, %288, %cst_81 {dimension_numbers = #tpu.dot_dimension_numbers<[1], [0], [0], [1], [0, 0, 1, 1], [], []>} : vector<32x80xf32>, vector<80x128xf32>, vector<32x128xf32> -> vector<32x128xf32>
    %292 = vector.broadcast %290 : vector<32x1xf32> to vector<32x128xf32>
    %293 = arith.addf %291, %292 : vector<32x128xf32>
    %294 = vector.extract_strided_slice %293 {offsets = [0, 0], sizes = [16, 128], strides = [1, 1]} : vector<32x128xf32> to vector<16x128xf32>
    %295 = vector.extract_strided_slice %293 {offsets = [16, 0], sizes = [16, 128], strides = [1, 1]} : vector<32x128xf32> to vector<16x128xf32>
    %cst_82 = arith.constant 0.000000e+00 : f32
    %296 = vector.broadcast %cst_82 : f32 to vector<16x128xf32>
    %297 = arith.maximumf %294, %296 : vector<16x128xf32>
    %c9_i32_83 = arith.constant 9 : i32
    %298 = tpu.dynamic_rotate %297 by %c9_i32_83 dim 1 : vector<16x128xf32>, i32 -> vector<16x128xf32>
    %299 = vector.extract_strided_slice %170 {offsets = [0, 0], sizes = [1, 128], strides = [1, 1]} : vector<9x128xf32> to vector<1x128xf32>
    %300 = vector.broadcast %299 : vector<1x128xf32> to vector<16x128xf32>
    %301 = arith.mulf %298, %300 : vector<16x128xf32>
    %c8_i32_84 = arith.constant 8 : i32
    %302 = tpu.dynamic_rotate %297 by %c8_i32_84 dim 1 : vector<16x128xf32>, i32 -> vector<16x128xf32>
    %303 = vector.extract_strided_slice %170 {offsets = [1, 0], sizes = [1, 128], strides = [1, 1]} : vector<9x128xf32> to vector<1x128xf32>
    %304 = vector.broadcast %303 : vector<1x128xf32> to vector<16x128xf32>
    %305 = arith.mulf %302, %304 : vector<16x128xf32>
    %c7_i32_85 = arith.constant 7 : i32
    %306 = tpu.dynamic_rotate %297 by %c7_i32_85 dim 1 : vector<16x128xf32>, i32 -> vector<16x128xf32>
    %307 = vector.extract_strided_slice %170 {offsets = [2, 0], sizes = [1, 128], strides = [1, 1]} : vector<9x128xf32> to vector<1x128xf32>
    %308 = vector.broadcast %307 : vector<1x128xf32> to vector<16x128xf32>
    %309 = arith.mulf %306, %308 : vector<16x128xf32>
    %c1_i32_86 = arith.constant 1 : i32
    %310 = tpu.dynamic_rotate %297 by %c1_i32_86 dim 1 : vector<16x128xf32>, i32 -> vector<16x128xf32>
    %311 = vector.extract_strided_slice %170 {offsets = [3, 0], sizes = [1, 128], strides = [1, 1]} : vector<9x128xf32> to vector<1x128xf32>
    %312 = vector.broadcast %311 : vector<1x128xf32> to vector<16x128xf32>
    %313 = arith.mulf %310, %312 : vector<16x128xf32>
    %c127_i32_87 = arith.constant 127 : i32
    %314 = tpu.dynamic_rotate %297 by %c127_i32_87 dim 1 : vector<16x128xf32>, i32 -> vector<16x128xf32>
    %315 = vector.extract_strided_slice %170 {offsets = [5, 0], sizes = [1, 128], strides = [1, 1]} : vector<9x128xf32> to vector<1x128xf32>
    %316 = vector.broadcast %315 : vector<1x128xf32> to vector<16x128xf32>
    %317 = arith.mulf %314, %316 : vector<16x128xf32>
    %c121_i32_88 = arith.constant 121 : i32
    %318 = tpu.dynamic_rotate %297 by %c121_i32_88 dim 1 : vector<16x128xf32>, i32 -> vector<16x128xf32>
    %319 = vector.extract_strided_slice %170 {offsets = [6, 0], sizes = [1, 128], strides = [1, 1]} : vector<9x128xf32> to vector<1x128xf32>
    %320 = vector.broadcast %319 : vector<1x128xf32> to vector<16x128xf32>
    %321 = arith.mulf %318, %320 : vector<16x128xf32>
    %c120_i32_89 = arith.constant 120 : i32
    %322 = tpu.dynamic_rotate %297 by %c120_i32_89 dim 1 : vector<16x128xf32>, i32 -> vector<16x128xf32>
    %323 = vector.extract_strided_slice %170 {offsets = [7, 0], sizes = [1, 128], strides = [1, 1]} : vector<9x128xf32> to vector<1x128xf32>
    %324 = vector.broadcast %323 : vector<1x128xf32> to vector<16x128xf32>
    %325 = arith.mulf %322, %324 : vector<16x128xf32>
    %c119_i32_90 = arith.constant 119 : i32
    %326 = tpu.dynamic_rotate %297 by %c119_i32_90 dim 1 : vector<16x128xf32>, i32 -> vector<16x128xf32>
    %327 = vector.extract_strided_slice %170 {offsets = [8, 0], sizes = [1, 128], strides = [1, 1]} : vector<9x128xf32> to vector<1x128xf32>
    %328 = vector.broadcast %327 : vector<1x128xf32> to vector<16x128xf32>
    %329 = arith.mulf %326, %328 : vector<16x128xf32>
    %330 = tpu.concatenate %301, %305, %309, %313, %297, %317, %321, %325, %329 in 0 : vector<16x128xf32>, vector<16x128xf32>, vector<16x128xf32>, vector<16x128xf32>, vector<16x128xf32>, vector<16x128xf32>, vector<16x128xf32>, vector<16x128xf32>, vector<16x128xf32> -> vector<144x128xf32>
    %c152 = arith.constant 152 : index
    %c0_91 = arith.constant 0 : index
    %331 = vector.load %arg2[%c152, %c0_91] : memref<216x321xf32, #tpu.memory_space<vmem>>, vector<16x144xf32>
    %c152_92 = arith.constant 152 : index
    %c144 = arith.constant 144 : index
    %332 = vector.load %arg2[%c152_92, %c144] : memref<216x321xf32, #tpu.memory_space<vmem>>, vector<16x1xf32>
    %cst_93 = arith.constant dense<0.000000e+00> : vector<16x128xf32>
    %333 = tpu.matmul %331, %330, %cst_93 {dimension_numbers = #tpu.dot_dimension_numbers<[1], [0], [0], [1], [0, 0, 1, 1], [], []>} : vector<16x144xf32>, vector<144x128xf32>, vector<16x128xf32> -> vector<16x128xf32>
    %334 = vector.broadcast %332 : vector<16x1xf32> to vector<16x128xf32>
    %335 = arith.addf %333, %334 : vector<16x128xf32>
    %336 = arith.addf %295, %335 : vector<16x128xf32>
    %c0_94 = arith.constant 0 : index
    %c0_95 = arith.constant 0 : index
    %337 = vector.load %arg6[%c0_94, %c0_95] : memref<128x32xf32, #tpu.memory_space<vmem>>, vector<128x32xf32>
    %cst_96 = arith.constant dense<0.000000e+00> : vector<16x32xf32>
    %338 = tpu.matmul %336, %337, %cst_96 {dimension_numbers = #tpu.dot_dimension_numbers<[1], [0], [0], [1], [0, 0, 1, 1], [], []>} : vector<16x128xf32>, vector<128x32xf32>, vector<16x32xf32> -> vector<16x32xf32>
    %c0_97 = arith.constant 0 : index
    %c0_98 = arith.constant 0 : index
    %339 = vector.load %arg8[%c0_97, %c0_98] : memref<32x128xf32, #tpu.memory_space<vmem>>, vector<32x128xf32>
    %cst_99 = arith.constant dense<0.000000e+00> : vector<16x128xf32>
    %340 = tpu.matmul %338, %339, %cst_99 {dimension_numbers = #tpu.dot_dimension_numbers<[1], [0], [0], [1], [0, 0, 1, 1], [], []>} : vector<16x32xf32>, vector<32x128xf32>, vector<16x128xf32> -> vector<16x128xf32>
    %341 = tpu.concatenate %340, %336 in 0 : vector<16x128xf32>, vector<16x128xf32> -> vector<32x128xf32>
    %cst_100 = arith.constant 0.000000e+00 : f32
    %342 = vector.broadcast %cst_100 : f32 to vector<32x128xf32>
    %343 = arith.maximumf %341, %342 : vector<32x128xf32>
    %c9_i32_101 = arith.constant 9 : i32
    %344 = tpu.dynamic_rotate %343 by %c9_i32_101 dim 1 : vector<32x128xf32>, i32 -> vector<32x128xf32>
    %345 = vector.extract_strided_slice %170 {offsets = [0, 0], sizes = [1, 128], strides = [1, 1]} : vector<9x128xf32> to vector<1x128xf32>
    %346 = vector.broadcast %345 : vector<1x128xf32> to vector<32x128xf32>
    %347 = arith.mulf %344, %346 : vector<32x128xf32>
    %c8_i32_102 = arith.constant 8 : i32
    %348 = tpu.dynamic_rotate %343 by %c8_i32_102 dim 1 : vector<32x128xf32>, i32 -> vector<32x128xf32>
    %349 = vector.extract_strided_slice %170 {offsets = [1, 0], sizes = [1, 128], strides = [1, 1]} : vector<9x128xf32> to vector<1x128xf32>
    %350 = vector.broadcast %349 : vector<1x128xf32> to vector<32x128xf32>
    %351 = arith.mulf %348, %350 : vector<32x128xf32>
    %c7_i32_103 = arith.constant 7 : i32
    %352 = tpu.dynamic_rotate %343 by %c7_i32_103 dim 1 : vector<32x128xf32>, i32 -> vector<32x128xf32>
    %353 = vector.extract_strided_slice %170 {offsets = [2, 0], sizes = [1, 128], strides = [1, 1]} : vector<9x128xf32> to vector<1x128xf32>
    %354 = vector.broadcast %353 : vector<1x128xf32> to vector<32x128xf32>
    %355 = arith.mulf %352, %354 : vector<32x128xf32>
    %c1_i32_104 = arith.constant 1 : i32
    %356 = tpu.dynamic_rotate %343 by %c1_i32_104 dim 1 : vector<32x128xf32>, i32 -> vector<32x128xf32>
    %357 = vector.extract_strided_slice %170 {offsets = [3, 0], sizes = [1, 128], strides = [1, 1]} : vector<9x128xf32> to vector<1x128xf32>
    %358 = vector.broadcast %357 : vector<1x128xf32> to vector<32x128xf32>
    %359 = arith.mulf %356, %358 : vector<32x128xf32>
    %c127_i32_105 = arith.constant 127 : i32
    %360 = tpu.dynamic_rotate %343 by %c127_i32_105 dim 1 : vector<32x128xf32>, i32 -> vector<32x128xf32>
    %361 = vector.extract_strided_slice %170 {offsets = [5, 0], sizes = [1, 128], strides = [1, 1]} : vector<9x128xf32> to vector<1x128xf32>
    %362 = vector.broadcast %361 : vector<1x128xf32> to vector<32x128xf32>
    %363 = arith.mulf %360, %362 : vector<32x128xf32>
    %c121_i32_106 = arith.constant 121 : i32
    %364 = tpu.dynamic_rotate %343 by %c121_i32_106 dim 1 : vector<32x128xf32>, i32 -> vector<32x128xf32>
    %365 = vector.extract_strided_slice %170 {offsets = [6, 0], sizes = [1, 128], strides = [1, 1]} : vector<9x128xf32> to vector<1x128xf32>
    %366 = vector.broadcast %365 : vector<1x128xf32> to vector<32x128xf32>
    %367 = arith.mulf %364, %366 : vector<32x128xf32>
    %c120_i32_107 = arith.constant 120 : i32
    %368 = tpu.dynamic_rotate %343 by %c120_i32_107 dim 1 : vector<32x128xf32>, i32 -> vector<32x128xf32>
    %369 = vector.extract_strided_slice %170 {offsets = [7, 0], sizes = [1, 128], strides = [1, 1]} : vector<9x128xf32> to vector<1x128xf32>
    %370 = vector.broadcast %369 : vector<1x128xf32> to vector<32x128xf32>
    %371 = arith.mulf %368, %370 : vector<32x128xf32>
    %c119_i32_108 = arith.constant 119 : i32
    %372 = tpu.dynamic_rotate %343 by %c119_i32_108 dim 1 : vector<32x128xf32>, i32 -> vector<32x128xf32>
    %373 = vector.extract_strided_slice %170 {offsets = [8, 0], sizes = [1, 128], strides = [1, 1]} : vector<9x128xf32> to vector<1x128xf32>
    %374 = vector.broadcast %373 : vector<1x128xf32> to vector<32x128xf32>
    %375 = arith.mulf %372, %374 : vector<32x128xf32>
    %376 = tpu.concatenate %347, %351, %355, %359, %343, %363, %367, %371, %375, %341 in 0 : vector<32x128xf32>, vector<32x128xf32>, vector<32x128xf32>, vector<32x128xf32>, vector<32x128xf32>, vector<32x128xf32>, vector<32x128xf32>, vector<32x128xf32>, vector<32x128xf32>, vector<32x128xf32> -> vector<320x128xf32>
    %c168 = arith.constant 168 : index
    %c0_109 = arith.constant 0 : index
    %377 = vector.load %arg2[%c168, %c0_109] : memref<216x321xf32, #tpu.memory_space<vmem>>, vector<16x320xf32>
    %c168_110 = arith.constant 168 : index
    %c320 = arith.constant 320 : index
    %378 = vector.load %arg2[%c168_110, %c320] : memref<216x321xf32, #tpu.memory_space<vmem>>, vector<16x1xf32>
    %cst_111 = arith.constant dense<0.000000e+00> : vector<16x128xf32>
    %379 = tpu.matmul %377, %376, %cst_111 {dimension_numbers = #tpu.dot_dimension_numbers<[1], [0], [0], [1], [0, 0, 1, 1], [], []>} : vector<16x320xf32>, vector<320x128xf32>, vector<16x128xf32> -> vector<16x128xf32>
    %380 = vector.broadcast %378 : vector<16x1xf32> to vector<16x128xf32>
    %381 = arith.addf %379, %380 : vector<16x128xf32>
    %382 = vector.extract_strided_slice %381 {offsets = [0, 0], sizes = [8, 128], strides = [1, 1]} : vector<16x128xf32> to vector<8x128xf32>
    %383 = vector.extract_strided_slice %381 {offsets = [8, 0], sizes = [8, 128], strides = [1, 1]} : vector<16x128xf32> to vector<8x128xf32>
    %cst_112 = arith.constant 0.000000e+00 : f32
    %384 = vector.broadcast %cst_112 : f32 to vector<8x128xf32>
    %385 = arith.maximumf %382, %384 : vector<8x128xf32>
    %c9_i32_113 = arith.constant 9 : i32
    %386 = tpu.dynamic_rotate %385 by %c9_i32_113 dim 1 : vector<8x128xf32>, i32 -> vector<8x128xf32>
    %387 = vector.extract_strided_slice %170 {offsets = [0, 0], sizes = [1, 128], strides = [1, 1]} : vector<9x128xf32> to vector<1x128xf32>
    %388 = vector.broadcast %387 : vector<1x128xf32> to vector<8x128xf32>
    %389 = arith.mulf %386, %388 : vector<8x128xf32>
    %c8_i32_114 = arith.constant 8 : i32
    %390 = tpu.dynamic_rotate %385 by %c8_i32_114 dim 1 : vector<8x128xf32>, i32 -> vector<8x128xf32>
    %391 = vector.extract_strided_slice %170 {offsets = [1, 0], sizes = [1, 128], strides = [1, 1]} : vector<9x128xf32> to vector<1x128xf32>
    %392 = vector.broadcast %391 : vector<1x128xf32> to vector<8x128xf32>
    %393 = arith.mulf %390, %392 : vector<8x128xf32>
    %c7_i32_115 = arith.constant 7 : i32
    %394 = tpu.dynamic_rotate %385 by %c7_i32_115 dim 1 : vector<8x128xf32>, i32 -> vector<8x128xf32>
    %395 = vector.extract_strided_slice %170 {offsets = [2, 0], sizes = [1, 128], strides = [1, 1]} : vector<9x128xf32> to vector<1x128xf32>
    %396 = vector.broadcast %395 : vector<1x128xf32> to vector<8x128xf32>
    %397 = arith.mulf %394, %396 : vector<8x128xf32>
    %c1_i32_116 = arith.constant 1 : i32
    %398 = tpu.dynamic_rotate %385 by %c1_i32_116 dim 1 : vector<8x128xf32>, i32 -> vector<8x128xf32>
    %399 = vector.extract_strided_slice %170 {offsets = [3, 0], sizes = [1, 128], strides = [1, 1]} : vector<9x128xf32> to vector<1x128xf32>
    %400 = vector.broadcast %399 : vector<1x128xf32> to vector<8x128xf32>
    %401 = arith.mulf %398, %400 : vector<8x128xf32>
    %c127_i32_117 = arith.constant 127 : i32
    %402 = tpu.dynamic_rotate %385 by %c127_i32_117 dim 1 : vector<8x128xf32>, i32 -> vector<8x128xf32>
    %403 = vector.extract_strided_slice %170 {offsets = [5, 0], sizes = [1, 128], strides = [1, 1]} : vector<9x128xf32> to vector<1x128xf32>
    %404 = vector.broadcast %403 : vector<1x128xf32> to vector<8x128xf32>
    %405 = arith.mulf %402, %404 : vector<8x128xf32>
    %c121_i32_118 = arith.constant 121 : i32
    %406 = tpu.dynamic_rotate %385 by %c121_i32_118 dim 1 : vector<8x128xf32>, i32 -> vector<8x128xf32>
    %407 = vector.extract_strided_slice %170 {offsets = [6, 0], sizes = [1, 128], strides = [1, 1]} : vector<9x128xf32> to vector<1x128xf32>
    %408 = vector.broadcast %407 : vector<1x128xf32> to vector<8x128xf32>
    %409 = arith.mulf %406, %408 : vector<8x128xf32>
    %c120_i32_119 = arith.constant 120 : i32
    %410 = tpu.dynamic_rotate %385 by %c120_i32_119 dim 1 : vector<8x128xf32>, i32 -> vector<8x128xf32>
    %411 = vector.extract_strided_slice %170 {offsets = [7, 0], sizes = [1, 128], strides = [1, 1]} : vector<9x128xf32> to vector<1x128xf32>
    %412 = vector.broadcast %411 : vector<1x128xf32> to vector<8x128xf32>
    %413 = arith.mulf %410, %412 : vector<8x128xf32>
    %c119_i32_120 = arith.constant 119 : i32
    %414 = tpu.dynamic_rotate %385 by %c119_i32_120 dim 1 : vector<8x128xf32>, i32 -> vector<8x128xf32>
    %415 = vector.extract_strided_slice %170 {offsets = [8, 0], sizes = [1, 128], strides = [1, 1]} : vector<9x128xf32> to vector<1x128xf32>
    %416 = vector.broadcast %415 : vector<1x128xf32> to vector<8x128xf32>
    %417 = arith.mulf %414, %416 : vector<8x128xf32>
    %418 = tpu.concatenate %389, %393, %397, %401, %385, %405, %409, %413, %417 in 0 : vector<8x128xf32>, vector<8x128xf32>, vector<8x128xf32>, vector<8x128xf32>, vector<8x128xf32>, vector<8x128xf32>, vector<8x128xf32>, vector<8x128xf32>, vector<8x128xf32> -> vector<72x128xf32>
    %c184 = arith.constant 184 : index
    %c0_121 = arith.constant 0 : index
    %419 = vector.load %arg2[%c184, %c0_121] : memref<216x321xf32, #tpu.memory_space<vmem>>, vector<8x72xf32>
    %c184_122 = arith.constant 184 : index
    %c72_123 = arith.constant 72 : index
    %420 = vector.load %arg2[%c184_122, %c72_123] : memref<216x321xf32, #tpu.memory_space<vmem>>, vector<8x1xf32>
    %cst_124 = arith.constant dense<0.000000e+00> : vector<8x128xf32>
    %421 = tpu.matmul %419, %418, %cst_124 {dimension_numbers = #tpu.dot_dimension_numbers<[1], [0], [0], [1], [0, 0, 1, 1], [], []>} : vector<8x72xf32>, vector<72x128xf32>, vector<8x128xf32> -> vector<8x128xf32>
    %422 = vector.broadcast %420 : vector<8x1xf32> to vector<8x128xf32>
    %423 = arith.addf %421, %422 : vector<8x128xf32>
    %424 = arith.addf %383, %423 : vector<8x128xf32>
    %cst_125 = arith.constant 0.000000e+00 : f32
    %425 = vector.broadcast %cst_125 : f32 to vector<8x128xf32>
    %426 = arith.maximumf %424, %425 : vector<8x128xf32>
    %c9_i32_126 = arith.constant 9 : i32
    %427 = tpu.dynamic_rotate %426 by %c9_i32_126 dim 1 : vector<8x128xf32>, i32 -> vector<8x128xf32>
    %428 = vector.extract_strided_slice %170 {offsets = [0, 0], sizes = [1, 128], strides = [1, 1]} : vector<9x128xf32> to vector<1x128xf32>
    %429 = vector.broadcast %428 : vector<1x128xf32> to vector<8x128xf32>
    %430 = arith.mulf %427, %429 : vector<8x128xf32>
    %c8_i32_127 = arith.constant 8 : i32
    %431 = tpu.dynamic_rotate %426 by %c8_i32_127 dim 1 : vector<8x128xf32>, i32 -> vector<8x128xf32>
    %432 = vector.extract_strided_slice %170 {offsets = [1, 0], sizes = [1, 128], strides = [1, 1]} : vector<9x128xf32> to vector<1x128xf32>
    %433 = vector.broadcast %432 : vector<1x128xf32> to vector<8x128xf32>
    %434 = arith.mulf %431, %433 : vector<8x128xf32>
    %c7_i32_128 = arith.constant 7 : i32
    %435 = tpu.dynamic_rotate %426 by %c7_i32_128 dim 1 : vector<8x128xf32>, i32 -> vector<8x128xf32>
    %436 = vector.extract_strided_slice %170 {offsets = [2, 0], sizes = [1, 128], strides = [1, 1]} : vector<9x128xf32> to vector<1x128xf32>
    %437 = vector.broadcast %436 : vector<1x128xf32> to vector<8x128xf32>
    %438 = arith.mulf %435, %437 : vector<8x128xf32>
    %c1_i32_129 = arith.constant 1 : i32
    %439 = tpu.dynamic_rotate %426 by %c1_i32_129 dim 1 : vector<8x128xf32>, i32 -> vector<8x128xf32>
    %440 = vector.extract_strided_slice %170 {offsets = [3, 0], sizes = [1, 128], strides = [1, 1]} : vector<9x128xf32> to vector<1x128xf32>
    %441 = vector.broadcast %440 : vector<1x128xf32> to vector<8x128xf32>
    %442 = arith.mulf %439, %441 : vector<8x128xf32>
    %c127_i32_130 = arith.constant 127 : i32
    %443 = tpu.dynamic_rotate %426 by %c127_i32_130 dim 1 : vector<8x128xf32>, i32 -> vector<8x128xf32>
    %444 = vector.extract_strided_slice %170 {offsets = [5, 0], sizes = [1, 128], strides = [1, 1]} : vector<9x128xf32> to vector<1x128xf32>
    %445 = vector.broadcast %444 : vector<1x128xf32> to vector<8x128xf32>
    %446 = arith.mulf %443, %445 : vector<8x128xf32>
    %c121_i32_131 = arith.constant 121 : i32
    %447 = tpu.dynamic_rotate %426 by %c121_i32_131 dim 1 : vector<8x128xf32>, i32 -> vector<8x128xf32>
    %448 = vector.extract_strided_slice %170 {offsets = [6, 0], sizes = [1, 128], strides = [1, 1]} : vector<9x128xf32> to vector<1x128xf32>
    %449 = vector.broadcast %448 : vector<1x128xf32> to vector<8x128xf32>
    %450 = arith.mulf %447, %449 : vector<8x128xf32>
    %c120_i32_132 = arith.constant 120 : i32
    %451 = tpu.dynamic_rotate %426 by %c120_i32_132 dim 1 : vector<8x128xf32>, i32 -> vector<8x128xf32>
    %452 = vector.extract_strided_slice %170 {offsets = [7, 0], sizes = [1, 128], strides = [1, 1]} : vector<9x128xf32> to vector<1x128xf32>
    %453 = vector.broadcast %452 : vector<1x128xf32> to vector<8x128xf32>
    %454 = arith.mulf %451, %453 : vector<8x128xf32>
    %c119_i32_133 = arith.constant 119 : i32
    %455 = tpu.dynamic_rotate %426 by %c119_i32_133 dim 1 : vector<8x128xf32>, i32 -> vector<8x128xf32>
    %456 = vector.extract_strided_slice %170 {offsets = [8, 0], sizes = [1, 128], strides = [1, 1]} : vector<9x128xf32> to vector<1x128xf32>
    %457 = vector.broadcast %456 : vector<1x128xf32> to vector<8x128xf32>
    %458 = arith.mulf %455, %457 : vector<8x128xf32>
    %459 = tpu.concatenate %430, %434, %438, %442, %426, %446, %450, %454, %458, %424 in 0 : vector<8x128xf32>, vector<8x128xf32>, vector<8x128xf32>, vector<8x128xf32>, vector<8x128xf32>, vector<8x128xf32>, vector<8x128xf32>, vector<8x128xf32>, vector<8x128xf32>, vector<8x128xf32> -> vector<80x128xf32>
    %c192 = arith.constant 192 : index
    %c0_134 = arith.constant 0 : index
    %460 = vector.load %arg2[%c192, %c0_134] : memref<216x321xf32, #tpu.memory_space<vmem>>, vector<16x80xf32>
    %c192_135 = arith.constant 192 : index
    %c80_136 = arith.constant 80 : index
    %461 = vector.load %arg2[%c192_135, %c80_136] : memref<216x321xf32, #tpu.memory_space<vmem>>, vector<16x1xf32>
    %cst_137 = arith.constant dense<0.000000e+00> : vector<16x128xf32>
    %462 = tpu.matmul %460, %459, %cst_137 {dimension_numbers = #tpu.dot_dimension_numbers<[1], [0], [0], [1], [0, 0, 1, 1], [], []>} : vector<16x80xf32>, vector<80x128xf32>, vector<16x128xf32> -> vector<16x128xf32>
    %463 = vector.broadcast %461 : vector<16x1xf32> to vector<16x128xf32>
    %464 = arith.addf %462, %463 : vector<16x128xf32>
    %465 = vector.extract_strided_slice %464 {offsets = [0, 0], sizes = [8, 128], strides = [1, 1]} : vector<16x128xf32> to vector<8x128xf32>
    %466 = vector.extract_strided_slice %464 {offsets = [8, 0], sizes = [8, 128], strides = [1, 1]} : vector<16x128xf32> to vector<8x128xf32>
    %cst_138 = arith.constant 0.000000e+00 : f32
    %467 = vector.broadcast %cst_138 : f32 to vector<8x128xf32>
    %468 = arith.maximumf %465, %467 : vector<8x128xf32>
    %c9_i32_139 = arith.constant 9 : i32
    %469 = tpu.dynamic_rotate %468 by %c9_i32_139 dim 1 : vector<8x128xf32>, i32 -> vector<8x128xf32>
    %470 = vector.extract_strided_slice %170 {offsets = [0, 0], sizes = [1, 128], strides = [1, 1]} : vector<9x128xf32> to vector<1x128xf32>
    %471 = vector.broadcast %470 : vector<1x128xf32> to vector<8x128xf32>
    %472 = arith.mulf %469, %471 : vector<8x128xf32>
    %c8_i32_140 = arith.constant 8 : i32
    %473 = tpu.dynamic_rotate %468 by %c8_i32_140 dim 1 : vector<8x128xf32>, i32 -> vector<8x128xf32>
    %474 = vector.extract_strided_slice %170 {offsets = [1, 0], sizes = [1, 128], strides = [1, 1]} : vector<9x128xf32> to vector<1x128xf32>
    %475 = vector.broadcast %474 : vector<1x128xf32> to vector<8x128xf32>
    %476 = arith.mulf %473, %475 : vector<8x128xf32>
    %c7_i32_141 = arith.constant 7 : i32
    %477 = tpu.dynamic_rotate %468 by %c7_i32_141 dim 1 : vector<8x128xf32>, i32 -> vector<8x128xf32>
    %478 = vector.extract_strided_slice %170 {offsets = [2, 0], sizes = [1, 128], strides = [1, 1]} : vector<9x128xf32> to vector<1x128xf32>
    %479 = vector.broadcast %478 : vector<1x128xf32> to vector<8x128xf32>
    %480 = arith.mulf %477, %479 : vector<8x128xf32>
    %c1_i32_142 = arith.constant 1 : i32
    %481 = tpu.dynamic_rotate %468 by %c1_i32_142 dim 1 : vector<8x128xf32>, i32 -> vector<8x128xf32>
    %482 = vector.extract_strided_slice %170 {offsets = [3, 0], sizes = [1, 128], strides = [1, 1]} : vector<9x128xf32> to vector<1x128xf32>
    %483 = vector.broadcast %482 : vector<1x128xf32> to vector<8x128xf32>
    %484 = arith.mulf %481, %483 : vector<8x128xf32>
    %c127_i32_143 = arith.constant 127 : i32
    %485 = tpu.dynamic_rotate %468 by %c127_i32_143 dim 1 : vector<8x128xf32>, i32 -> vector<8x128xf32>
    %486 = vector.extract_strided_slice %170 {offsets = [5, 0], sizes = [1, 128], strides = [1, 1]} : vector<9x128xf32> to vector<1x128xf32>
    %487 = vector.broadcast %486 : vector<1x128xf32> to vector<8x128xf32>
    %488 = arith.mulf %485, %487 : vector<8x128xf32>
    %c121_i32_144 = arith.constant 121 : i32
    %489 = tpu.dynamic_rotate %468 by %c121_i32_144 dim 1 : vector<8x128xf32>, i32 -> vector<8x128xf32>
    %490 = vector.extract_strided_slice %170 {offsets = [6, 0], sizes = [1, 128], strides = [1, 1]} : vector<9x128xf32> to vector<1x128xf32>
    %491 = vector.broadcast %490 : vector<1x128xf32> to vector<8x128xf32>
    %492 = arith.mulf %489, %491 : vector<8x128xf32>
    %c120_i32_145 = arith.constant 120 : i32
    %493 = tpu.dynamic_rotate %468 by %c120_i32_145 dim 1 : vector<8x128xf32>, i32 -> vector<8x128xf32>
    %494 = vector.extract_strided_slice %170 {offsets = [7, 0], sizes = [1, 128], strides = [1, 1]} : vector<9x128xf32> to vector<1x128xf32>
    %495 = vector.broadcast %494 : vector<1x128xf32> to vector<8x128xf32>
    %496 = arith.mulf %493, %495 : vector<8x128xf32>
    %c119_i32_146 = arith.constant 119 : i32
    %497 = tpu.dynamic_rotate %468 by %c119_i32_146 dim 1 : vector<8x128xf32>, i32 -> vector<8x128xf32>
    %498 = vector.extract_strided_slice %170 {offsets = [8, 0], sizes = [1, 128], strides = [1, 1]} : vector<9x128xf32> to vector<1x128xf32>
    %499 = vector.broadcast %498 : vector<1x128xf32> to vector<8x128xf32>
    %500 = arith.mulf %497, %499 : vector<8x128xf32>
    %501 = tpu.concatenate %472, %476, %480, %484, %468, %488, %492, %496, %500 in 0 : vector<8x128xf32>, vector<8x128xf32>, vector<8x128xf32>, vector<8x128xf32>, vector<8x128xf32>, vector<8x128xf32>, vector<8x128xf32>, vector<8x128xf32>, vector<8x128xf32> -> vector<72x128xf32>
    %c208 = arith.constant 208 : index
    %c0_147 = arith.constant 0 : index
    %502 = vector.load %arg2[%c208, %c0_147] : memref<216x321xf32, #tpu.memory_space<vmem>>, vector<8x72xf32>
    %c208_148 = arith.constant 208 : index
    %c72_149 = arith.constant 72 : index
    %503 = vector.load %arg2[%c208_148, %c72_149] : memref<216x321xf32, #tpu.memory_space<vmem>>, vector<8x1xf32>
    %cst_150 = arith.constant dense<0.000000e+00> : vector<8x128xf32>
    %504 = tpu.matmul %502, %501, %cst_150 {dimension_numbers = #tpu.dot_dimension_numbers<[1], [0], [0], [1], [0, 0, 1, 1], [], []>} : vector<8x72xf32>, vector<72x128xf32>, vector<8x128xf32> -> vector<8x128xf32>
    %505 = vector.broadcast %503 : vector<8x1xf32> to vector<8x128xf32>
    %506 = arith.addf %504, %505 : vector<8x128xf32>
    %507 = arith.addf %466, %506 : vector<8x128xf32>
    %c0_151 = arith.constant 0 : index
    %c0_152 = arith.constant 0 : index
    %508 = vector.load %arg7[%c0_151, %c0_152] : memref<128x512xf32, #tpu.memory_space<vmem>>, vector<128x512xf32>
    %cst_153 = arith.constant dense<0.000000e+00> : vector<8x512xf32>
    %509 = tpu.matmul %507, %508, %cst_153 {dimension_numbers = #tpu.dot_dimension_numbers<[1], [0], [0], [1], [0, 0, 1, 1], [], []>} : vector<8x128xf32>, vector<128x512xf32>, vector<8x512xf32> -> vector<8x512xf32>
    %510 = tpu.concatenate %509, %167 in 0 : vector<8x512xf32>, vector<8x512xf32> -> vector<16x512xf32>
    %cst_154 = arith.constant 0.000000e+00 : f32
    %511 = vector.broadcast %cst_154 : f32 to vector<16x512xf32>
    %512 = arith.maximumf %510, %511 : vector<16x512xf32>
    %c17_i32_155 = arith.constant 17 : i32
    %513 = tpu.dynamic_rotate %512 by %c17_i32_155 dim 1 : vector<16x512xf32>, i32 -> vector<16x512xf32>
    %514 = vector.extract_strided_slice %1 {offsets = [0, 0], sizes = [1, 512], strides = [1, 1]} : vector<9x512xf32> to vector<1x512xf32>
    %515 = vector.broadcast %514 : vector<1x512xf32> to vector<16x512xf32>
    %516 = arith.mulf %513, %515 : vector<16x512xf32>
    %c16_i32_156 = arith.constant 16 : i32
    %517 = tpu.dynamic_rotate %512 by %c16_i32_156 dim 1 : vector<16x512xf32>, i32 -> vector<16x512xf32>
    %518 = vector.extract_strided_slice %1 {offsets = [1, 0], sizes = [1, 512], strides = [1, 1]} : vector<9x512xf32> to vector<1x512xf32>
    %519 = vector.broadcast %518 : vector<1x512xf32> to vector<16x512xf32>
    %520 = arith.mulf %517, %519 : vector<16x512xf32>
    %c15_i32_157 = arith.constant 15 : i32
    %521 = tpu.dynamic_rotate %512 by %c15_i32_157 dim 1 : vector<16x512xf32>, i32 -> vector<16x512xf32>
    %522 = vector.extract_strided_slice %1 {offsets = [2, 0], sizes = [1, 512], strides = [1, 1]} : vector<9x512xf32> to vector<1x512xf32>
    %523 = vector.broadcast %522 : vector<1x512xf32> to vector<16x512xf32>
    %524 = arith.mulf %521, %523 : vector<16x512xf32>
    %c1_i32_158 = arith.constant 1 : i32
    %525 = tpu.dynamic_rotate %512 by %c1_i32_158 dim 1 : vector<16x512xf32>, i32 -> vector<16x512xf32>
    %526 = vector.extract_strided_slice %1 {offsets = [3, 0], sizes = [1, 512], strides = [1, 1]} : vector<9x512xf32> to vector<1x512xf32>
    %527 = vector.broadcast %526 : vector<1x512xf32> to vector<16x512xf32>
    %528 = arith.mulf %525, %527 : vector<16x512xf32>
    %c511_i32_159 = arith.constant 511 : i32
    %529 = tpu.dynamic_rotate %512 by %c511_i32_159 dim 1 : vector<16x512xf32>, i32 -> vector<16x512xf32>
    %530 = vector.extract_strided_slice %1 {offsets = [5, 0], sizes = [1, 512], strides = [1, 1]} : vector<9x512xf32> to vector<1x512xf32>
    %531 = vector.broadcast %530 : vector<1x512xf32> to vector<16x512xf32>
    %532 = arith.mulf %529, %531 : vector<16x512xf32>
    %c497_i32_160 = arith.constant 497 : i32
    %533 = tpu.dynamic_rotate %512 by %c497_i32_160 dim 1 : vector<16x512xf32>, i32 -> vector<16x512xf32>
    %534 = vector.extract_strided_slice %1 {offsets = [6, 0], sizes = [1, 512], strides = [1, 1]} : vector<9x512xf32> to vector<1x512xf32>
    %535 = vector.broadcast %534 : vector<1x512xf32> to vector<16x512xf32>
    %536 = arith.mulf %533, %535 : vector<16x512xf32>
    %c496_i32_161 = arith.constant 496 : i32
    %537 = tpu.dynamic_rotate %512 by %c496_i32_161 dim 1 : vector<16x512xf32>, i32 -> vector<16x512xf32>
    %538 = vector.extract_strided_slice %1 {offsets = [7, 0], sizes = [1, 512], strides = [1, 1]} : vector<9x512xf32> to vector<1x512xf32>
    %539 = vector.broadcast %538 : vector<1x512xf32> to vector<16x512xf32>
    %540 = arith.mulf %537, %539 : vector<16x512xf32>
    %c495_i32_162 = arith.constant 495 : i32
    %541 = tpu.dynamic_rotate %512 by %c495_i32_162 dim 1 : vector<16x512xf32>, i32 -> vector<16x512xf32>
    %542 = vector.extract_strided_slice %1 {offsets = [8, 0], sizes = [1, 512], strides = [1, 1]} : vector<9x512xf32> to vector<1x512xf32>
    %543 = vector.broadcast %542 : vector<1x512xf32> to vector<16x512xf32>
    %544 = arith.mulf %541, %543 : vector<16x512xf32>
    %545 = tpu.concatenate %516, %520, %524, %528, %512, %532, %536, %540, %544, %510 in 0 : vector<16x512xf32>, vector<16x512xf32>, vector<16x512xf32>, vector<16x512xf32>, vector<16x512xf32>, vector<16x512xf32>, vector<16x512xf32>, vector<16x512xf32>, vector<16x512xf32>, vector<16x512xf32> -> vector<160x512xf32>
    %c48 = arith.constant 48 : index
    %c0_163 = arith.constant 0 : index
    %546 = vector.load %arg2[%c48, %c0_163] : memref<216x321xf32, #tpu.memory_space<vmem>>, vector<16x160xf32>
    %c48_164 = arith.constant 48 : index
    %c160 = arith.constant 160 : index
    %547 = vector.load %arg2[%c48_164, %c160] : memref<216x321xf32, #tpu.memory_space<vmem>>, vector<16x1xf32>
    %cst_165 = arith.constant dense<0.000000e+00> : vector<16x512xf32>
    %548 = tpu.matmul %546, %545, %cst_165 {dimension_numbers = #tpu.dot_dimension_numbers<[1], [0], [0], [1], [0, 0, 1, 1], [], []>} : vector<16x160xf32>, vector<160x512xf32>, vector<16x512xf32> -> vector<16x512xf32>
    %549 = vector.broadcast %547 : vector<16x1xf32> to vector<16x512xf32>
    %550 = arith.addf %548, %549 : vector<16x512xf32>
    %551 = vector.extract_strided_slice %550 {offsets = [0, 0], sizes = [8, 512], strides = [1, 1]} : vector<16x512xf32> to vector<8x512xf32>
    %552 = vector.extract_strided_slice %550 {offsets = [8, 0], sizes = [8, 512], strides = [1, 1]} : vector<16x512xf32> to vector<8x512xf32>
    %cst_166 = arith.constant 0.000000e+00 : f32
    %553 = vector.broadcast %cst_166 : f32 to vector<8x512xf32>
    %554 = arith.maximumf %551, %553 : vector<8x512xf32>
    %c17_i32_167 = arith.constant 17 : i32
    %555 = tpu.dynamic_rotate %554 by %c17_i32_167 dim 1 : vector<8x512xf32>, i32 -> vector<8x512xf32>
    %556 = vector.extract_strided_slice %1 {offsets = [0, 0], sizes = [1, 512], strides = [1, 1]} : vector<9x512xf32> to vector<1x512xf32>
    %557 = vector.broadcast %556 : vector<1x512xf32> to vector<8x512xf32>
    %558 = arith.mulf %555, %557 : vector<8x512xf32>
    %c16_i32_168 = arith.constant 16 : i32
    %559 = tpu.dynamic_rotate %554 by %c16_i32_168 dim 1 : vector<8x512xf32>, i32 -> vector<8x512xf32>
    %560 = vector.extract_strided_slice %1 {offsets = [1, 0], sizes = [1, 512], strides = [1, 1]} : vector<9x512xf32> to vector<1x512xf32>
    %561 = vector.broadcast %560 : vector<1x512xf32> to vector<8x512xf32>
    %562 = arith.mulf %559, %561 : vector<8x512xf32>
    %c15_i32_169 = arith.constant 15 : i32
    %563 = tpu.dynamic_rotate %554 by %c15_i32_169 dim 1 : vector<8x512xf32>, i32 -> vector<8x512xf32>
    %564 = vector.extract_strided_slice %1 {offsets = [2, 0], sizes = [1, 512], strides = [1, 1]} : vector<9x512xf32> to vector<1x512xf32>
    %565 = vector.broadcast %564 : vector<1x512xf32> to vector<8x512xf32>
    %566 = arith.mulf %563, %565 : vector<8x512xf32>
    %c1_i32_170 = arith.constant 1 : i32
    %567 = tpu.dynamic_rotate %554 by %c1_i32_170 dim 1 : vector<8x512xf32>, i32 -> vector<8x512xf32>
    %568 = vector.extract_strided_slice %1 {offsets = [3, 0], sizes = [1, 512], strides = [1, 1]} : vector<9x512xf32> to vector<1x512xf32>
    %569 = vector.broadcast %568 : vector<1x512xf32> to vector<8x512xf32>
    %570 = arith.mulf %567, %569 : vector<8x512xf32>
    %c511_i32_171 = arith.constant 511 : i32
    %571 = tpu.dynamic_rotate %554 by %c511_i32_171 dim 1 : vector<8x512xf32>, i32 -> vector<8x512xf32>
    %572 = vector.extract_strided_slice %1 {offsets = [5, 0], sizes = [1, 512], strides = [1, 1]} : vector<9x512xf32> to vector<1x512xf32>
    %573 = vector.broadcast %572 : vector<1x512xf32> to vector<8x512xf32>
    %574 = arith.mulf %571, %573 : vector<8x512xf32>
    %c497_i32_172 = arith.constant 497 : i32
    %575 = tpu.dynamic_rotate %554 by %c497_i32_172 dim 1 : vector<8x512xf32>, i32 -> vector<8x512xf32>
    %576 = vector.extract_strided_slice %1 {offsets = [6, 0], sizes = [1, 512], strides = [1, 1]} : vector<9x512xf32> to vector<1x512xf32>
    %577 = vector.broadcast %576 : vector<1x512xf32> to vector<8x512xf32>
    %578 = arith.mulf %575, %577 : vector<8x512xf32>
    %c496_i32_173 = arith.constant 496 : i32
    %579 = tpu.dynamic_rotate %554 by %c496_i32_173 dim 1 : vector<8x512xf32>, i32 -> vector<8x512xf32>
    %580 = vector.extract_strided_slice %1 {offsets = [7, 0], sizes = [1, 512], strides = [1, 1]} : vector<9x512xf32> to vector<1x512xf32>
    %581 = vector.broadcast %580 : vector<1x512xf32> to vector<8x512xf32>
    %582 = arith.mulf %579, %581 : vector<8x512xf32>
    %c495_i32_174 = arith.constant 495 : i32
    %583 = tpu.dynamic_rotate %554 by %c495_i32_174 dim 1 : vector<8x512xf32>, i32 -> vector<8x512xf32>
    %584 = vector.extract_strided_slice %1 {offsets = [8, 0], sizes = [1, 512], strides = [1, 1]} : vector<9x512xf32> to vector<1x512xf32>
    %585 = vector.broadcast %584 : vector<1x512xf32> to vector<8x512xf32>
    %586 = arith.mulf %583, %585 : vector<8x512xf32>
    %587 = tpu.concatenate %558, %562, %566, %570, %554, %574, %578, %582, %586 in 0 : vector<8x512xf32>, vector<8x512xf32>, vector<8x512xf32>, vector<8x512xf32>, vector<8x512xf32>, vector<8x512xf32>, vector<8x512xf32>, vector<8x512xf32>, vector<8x512xf32> -> vector<72x512xf32>
    %c64 = arith.constant 64 : index
    %c0_175 = arith.constant 0 : index
    %588 = vector.load %arg2[%c64, %c0_175] : memref<216x321xf32, #tpu.memory_space<vmem>>, vector<8x72xf32>
    %c64_176 = arith.constant 64 : index
    %c72_177 = arith.constant 72 : index
    %589 = vector.load %arg2[%c64_176, %c72_177] : memref<216x321xf32, #tpu.memory_space<vmem>>, vector<8x1xf32>
    %cst_178 = arith.constant dense<0.000000e+00> : vector<8x512xf32>
    %590 = tpu.matmul %588, %587, %cst_178 {dimension_numbers = #tpu.dot_dimension_numbers<[1], [0], [0], [1], [0, 0, 1, 1], [], []>} : vector<8x72xf32>, vector<72x512xf32>, vector<8x512xf32> -> vector<8x512xf32>
    %591 = vector.broadcast %589 : vector<8x1xf32> to vector<8x512xf32>
    %592 = arith.addf %590, %591 : vector<8x512xf32>
    %593 = arith.addf %552, %592 : vector<8x512xf32>
    %cst_179 = arith.constant 0.000000e+00 : f32
    %594 = vector.broadcast %cst_179 : f32 to vector<8x512xf32>
    %595 = arith.maximumf %593, %594 : vector<8x512xf32>
    %c17_i32_180 = arith.constant 17 : i32
    %596 = tpu.dynamic_rotate %595 by %c17_i32_180 dim 1 : vector<8x512xf32>, i32 -> vector<8x512xf32>
    %597 = vector.extract_strided_slice %1 {offsets = [0, 0], sizes = [1, 512], strides = [1, 1]} : vector<9x512xf32> to vector<1x512xf32>
    %598 = vector.broadcast %597 : vector<1x512xf32> to vector<8x512xf32>
    %599 = arith.mulf %596, %598 : vector<8x512xf32>
    %c16_i32_181 = arith.constant 16 : i32
    %600 = tpu.dynamic_rotate %595 by %c16_i32_181 dim 1 : vector<8x512xf32>, i32 -> vector<8x512xf32>
    %601 = vector.extract_strided_slice %1 {offsets = [1, 0], sizes = [1, 512], strides = [1, 1]} : vector<9x512xf32> to vector<1x512xf32>
    %602 = vector.broadcast %601 : vector<1x512xf32> to vector<8x512xf32>
    %603 = arith.mulf %600, %602 : vector<8x512xf32>
    %c15_i32_182 = arith.constant 15 : i32
    %604 = tpu.dynamic_rotate %595 by %c15_i32_182 dim 1 : vector<8x512xf32>, i32 -> vector<8x512xf32>
    %605 = vector.extract_strided_slice %1 {offsets = [2, 0], sizes = [1, 512], strides = [1, 1]} : vector<9x512xf32> to vector<1x512xf32>
    %606 = vector.broadcast %605 : vector<1x512xf32> to vector<8x512xf32>
    %607 = arith.mulf %604, %606 : vector<8x512xf32>
    %c1_i32_183 = arith.constant 1 : i32
    %608 = tpu.dynamic_rotate %595 by %c1_i32_183 dim 1 : vector<8x512xf32>, i32 -> vector<8x512xf32>
    %609 = vector.extract_strided_slice %1 {offsets = [3, 0], sizes = [1, 512], strides = [1, 1]} : vector<9x512xf32> to vector<1x512xf32>
    %610 = vector.broadcast %609 : vector<1x512xf32> to vector<8x512xf32>
    %611 = arith.mulf %608, %610 : vector<8x512xf32>
    %c511_i32_184 = arith.constant 511 : i32
    %612 = tpu.dynamic_rotate %595 by %c511_i32_184 dim 1 : vector<8x512xf32>, i32 -> vector<8x512xf32>
    %613 = vector.extract_strided_slice %1 {offsets = [5, 0], sizes = [1, 512], strides = [1, 1]} : vector<9x512xf32> to vector<1x512xf32>
    %614 = vector.broadcast %613 : vector<1x512xf32> to vector<8x512xf32>
    %615 = arith.mulf %612, %614 : vector<8x512xf32>
    %c497_i32_185 = arith.constant 497 : i32
    %616 = tpu.dynamic_rotate %595 by %c497_i32_185 dim 1 : vector<8x512xf32>, i32 -> vector<8x512xf32>
    %617 = vector.extract_strided_slice %1 {offsets = [6, 0], sizes = [1, 512], strides = [1, 1]} : vector<9x512xf32> to vector<1x512xf32>
    %618 = vector.broadcast %617 : vector<1x512xf32> to vector<8x512xf32>
    %619 = arith.mulf %616, %618 : vector<8x512xf32>
    %c496_i32_186 = arith.constant 496 : i32
    %620 = tpu.dynamic_rotate %595 by %c496_i32_186 dim 1 : vector<8x512xf32>, i32 -> vector<8x512xf32>
    %621 = vector.extract_strided_slice %1 {offsets = [7, 0], sizes = [1, 512], strides = [1, 1]} : vector<9x512xf32> to vector<1x512xf32>
    %622 = vector.broadcast %621 : vector<1x512xf32> to vector<8x512xf32>
    %623 = arith.mulf %620, %622 : vector<8x512xf32>
    %c495_i32_187 = arith.constant 495 : i32
    %624 = tpu.dynamic_rotate %595 by %c495_i32_187 dim 1 : vector<8x512xf32>, i32 -> vector<8x512xf32>
    %625 = vector.extract_strided_slice %1 {offsets = [8, 0], sizes = [1, 512], strides = [1, 1]} : vector<9x512xf32> to vector<1x512xf32>
    %626 = vector.broadcast %625 : vector<1x512xf32> to vector<8x512xf32>
    %627 = arith.mulf %624, %626 : vector<8x512xf32>
    %628 = tpu.concatenate %599, %603, %607, %611, %595, %615, %619, %623, %627, %593 in 0 : vector<8x512xf32>, vector<8x512xf32>, vector<8x512xf32>, vector<8x512xf32>, vector<8x512xf32>, vector<8x512xf32>, vector<8x512xf32>, vector<8x512xf32>, vector<8x512xf32>, vector<8x512xf32> -> vector<80x512xf32>
    %c72_188 = arith.constant 72 : index
    %c0_189 = arith.constant 0 : index
    %629 = vector.load %arg2[%c72_188, %c0_189] : memref<216x321xf32, #tpu.memory_space<vmem>>, vector<16x80xf32>
    %c72_190 = arith.constant 72 : index
    %c80_191 = arith.constant 80 : index
    %630 = vector.load %arg2[%c72_190, %c80_191] : memref<216x321xf32, #tpu.memory_space<vmem>>, vector<16x1xf32>
    %cst_192 = arith.constant dense<0.000000e+00> : vector<16x512xf32>
    %631 = tpu.matmul %629, %628, %cst_192 {dimension_numbers = #tpu.dot_dimension_numbers<[1], [0], [0], [1], [0, 0, 1, 1], [], []>} : vector<16x80xf32>, vector<80x512xf32>, vector<16x512xf32> -> vector<16x512xf32>
    %632 = vector.broadcast %630 : vector<16x1xf32> to vector<16x512xf32>
    %633 = arith.addf %631, %632 : vector<16x512xf32>
    %634 = vector.extract_strided_slice %633 {offsets = [0, 0], sizes = [8, 512], strides = [1, 1]} : vector<16x512xf32> to vector<8x512xf32>
    %635 = vector.extract_strided_slice %633 {offsets = [8, 0], sizes = [8, 512], strides = [1, 1]} : vector<16x512xf32> to vector<8x512xf32>
    %cst_193 = arith.constant 0.000000e+00 : f32
    %636 = vector.broadcast %cst_193 : f32 to vector<8x512xf32>
    %637 = arith.maximumf %634, %636 : vector<8x512xf32>
    %c17_i32_194 = arith.constant 17 : i32
    %638 = tpu.dynamic_rotate %637 by %c17_i32_194 dim 1 : vector<8x512xf32>, i32 -> vector<8x512xf32>
    %639 = vector.extract_strided_slice %1 {offsets = [0, 0], sizes = [1, 512], strides = [1, 1]} : vector<9x512xf32> to vector<1x512xf32>
    %640 = vector.broadcast %639 : vector<1x512xf32> to vector<8x512xf32>
    %641 = arith.mulf %638, %640 : vector<8x512xf32>
    %c16_i32_195 = arith.constant 16 : i32
    %642 = tpu.dynamic_rotate %637 by %c16_i32_195 dim 1 : vector<8x512xf32>, i32 -> vector<8x512xf32>
    %643 = vector.extract_strided_slice %1 {offsets = [1, 0], sizes = [1, 512], strides = [1, 1]} : vector<9x512xf32> to vector<1x512xf32>
    %644 = vector.broadcast %643 : vector<1x512xf32> to vector<8x512xf32>
    %645 = arith.mulf %642, %644 : vector<8x512xf32>
    %c15_i32_196 = arith.constant 15 : i32
    %646 = tpu.dynamic_rotate %637 by %c15_i32_196 dim 1 : vector<8x512xf32>, i32 -> vector<8x512xf32>
    %647 = vector.extract_strided_slice %1 {offsets = [2, 0], sizes = [1, 512], strides = [1, 1]} : vector<9x512xf32> to vector<1x512xf32>
    %648 = vector.broadcast %647 : vector<1x512xf32> to vector<8x512xf32>
    %649 = arith.mulf %646, %648 : vector<8x512xf32>
    %c1_i32_197 = arith.constant 1 : i32
    %650 = tpu.dynamic_rotate %637 by %c1_i32_197 dim 1 : vector<8x512xf32>, i32 -> vector<8x512xf32>
    %651 = vector.extract_strided_slice %1 {offsets = [3, 0], sizes = [1, 512], strides = [1, 1]} : vector<9x512xf32> to vector<1x512xf32>
    %652 = vector.broadcast %651 : vector<1x512xf32> to vector<8x512xf32>
    %653 = arith.mulf %650, %652 : vector<8x512xf32>
    %c511_i32_198 = arith.constant 511 : i32
    %654 = tpu.dynamic_rotate %637 by %c511_i32_198 dim 1 : vector<8x512xf32>, i32 -> vector<8x512xf32>
    %655 = vector.extract_strided_slice %1 {offsets = [5, 0], sizes = [1, 512], strides = [1, 1]} : vector<9x512xf32> to vector<1x512xf32>
    %656 = vector.broadcast %655 : vector<1x512xf32> to vector<8x512xf32>
    %657 = arith.mulf %654, %656 : vector<8x512xf32>
    %c497_i32_199 = arith.constant 497 : i32
    %658 = tpu.dynamic_rotate %637 by %c497_i32_199 dim 1 : vector<8x512xf32>, i32 -> vector<8x512xf32>
    %659 = vector.extract_strided_slice %1 {offsets = [6, 0], sizes = [1, 512], strides = [1, 1]} : vector<9x512xf32> to vector<1x512xf32>
    %660 = vector.broadcast %659 : vector<1x512xf32> to vector<8x512xf32>
    %661 = arith.mulf %658, %660 : vector<8x512xf32>
    %c496_i32_200 = arith.constant 496 : i32
    %662 = tpu.dynamic_rotate %637 by %c496_i32_200 dim 1 : vector<8x512xf32>, i32 -> vector<8x512xf32>
    %663 = vector.extract_strided_slice %1 {offsets = [7, 0], sizes = [1, 512], strides = [1, 1]} : vector<9x512xf32> to vector<1x512xf32>
    %664 = vector.broadcast %663 : vector<1x512xf32> to vector<8x512xf32>
    %665 = arith.mulf %662, %664 : vector<8x512xf32>
    %c495_i32_201 = arith.constant 495 : i32
    %666 = tpu.dynamic_rotate %637 by %c495_i32_201 dim 1 : vector<8x512xf32>, i32 -> vector<8x512xf32>
    %667 = vector.extract_strided_slice %1 {offsets = [8, 0], sizes = [1, 512], strides = [1, 1]} : vector<9x512xf32> to vector<1x512xf32>
    %668 = vector.broadcast %667 : vector<1x512xf32> to vector<8x512xf32>
    %669 = arith.mulf %666, %668 : vector<8x512xf32>
    %670 = tpu.concatenate %641, %645, %649, %653, %637, %657, %661, %665, %669 in 0 : vector<8x512xf32>, vector<8x512xf32>, vector<8x512xf32>, vector<8x512xf32>, vector<8x512xf32>, vector<8x512xf32>, vector<8x512xf32>, vector<8x512xf32>, vector<8x512xf32> -> vector<72x512xf32>
    %c88 = arith.constant 88 : index
    %c0_202 = arith.constant 0 : index
    %671 = vector.load %arg2[%c88, %c0_202] : memref<216x321xf32, #tpu.memory_space<vmem>>, vector<8x72xf32>
    %c88_203 = arith.constant 88 : index
    %c72_204 = arith.constant 72 : index
    %672 = vector.load %arg2[%c88_203, %c72_204] : memref<216x321xf32, #tpu.memory_space<vmem>>, vector<8x1xf32>
    %cst_205 = arith.constant dense<0.000000e+00> : vector<8x512xf32>
    %673 = tpu.matmul %671, %670, %cst_205 {dimension_numbers = #tpu.dot_dimension_numbers<[1], [0], [0], [1], [0, 0, 1, 1], [], []>} : vector<8x72xf32>, vector<72x512xf32>, vector<8x512xf32> -> vector<8x512xf32>
    %674 = vector.broadcast %672 : vector<8x1xf32> to vector<8x512xf32>
    %675 = arith.addf %673, %674 : vector<8x512xf32>
    %676 = arith.addf %635, %675 : vector<8x512xf32>
    %c0_206 = arith.constant 0 : index
    %c0_207 = arith.constant 0 : index
    %677 = vector.load %arg9[%c0_206, %c0_207] : memref<8x512xf32, #tpu.memory_space<vmem>>, vector<8x512xf32>
    tpu.vector_store %arg9[%c0_206, %c0_207], %676 {strides = array<i32>} : memref<8x512xf32, #tpu.memory_space<vmem>>, vector<8x512xf32>,
    return
  }
  func.func @transform_0(%arg0: i32) -> (i32, i32) {
    %c0_i32 = arith.constant 0 : i32
    %c0_i32_0 = arith.constant 0 : i32
    %c0_i32_1 = arith.constant 0 : i32
    return %c0_i32, %c0_i32_0 : i32, i32
  }
  func.func @transform_1(%arg0: i32) -> (i32, i32) {
    %c0_i32 = arith.constant 0 : i32
    %c0_i32_0 = arith.constant 0 : i32
    %c0_i32_1 = arith.constant 0 : i32
    return %c0_i32, %c0_i32_0 : i32, i32
  }
  func.func @transform_2(%arg0: i32) -> (i32, i32) {
    %c0_i32 = arith.constant 0 : i32
    %c0_i32_0 = arith.constant 0 : i32
    %c0_i32_1 = arith.constant 0 : i32
    return %c0_i32, %c0_i32_0 : i32, i32
  }
  func.func @transform_3(%arg0: i32) -> (i32, i32) {
    %c0_i32 = arith.constant 0 : i32
    %c0_i32_0 = arith.constant 0 : i32
    %c0_i32_1 = arith.constant 0 : i32
    return %c0_i32, %c0_i32_0 : i32, i32
  }
  func.func @transform_4(%arg0: i32) -> (i32, i32) {
    %c0_i32 = arith.constant 0 : i32
    %c0_i32_0 = arith.constant 0 : i32
    %c0_i32_1 = arith.constant 0 : i32
    return %c0_i32, %c0_i32_0 : i32, i32
  }
  func.func @transform_5(%arg0: i32) -> (i32, i32) {
    %c0_i32 = arith.constant 0 : i32
    %c0_i32_0 = arith.constant 0 : i32
    %c0_i32_1 = arith.constant 0 : i32
    return %c0_i32, %c0_i32_0 : i32, i32
  }
  func.func @transform_6(%arg0: i32) -> (i32, i32) {
    %c0_i32 = arith.constant 0 : i32
    %c0_i32_0 = arith.constant 0 : i32
    %c0_i32_1 = arith.constant 0 : i32
    return %c0_i32, %c0_i32_0 : i32, i32
  }
  func.func @transform_7(%arg0: i32) -> (i32, i32) {
    %c0_i32 = arith.constant 0 : i32
    %c0_i32_0 = arith.constant 0 : i32
    %c0_i32_1 = arith.constant 0 : i32
    return %c0_i32, %c0_i32_0 : i32, i32
  }
  func.func @transform_8(%arg0: i32) -> (i32, i32) {
    %c0_i32 = arith.constant 0 : i32
    %c0_i32_0 = arith.constant 0 : i32
    %c0_i32_1 = arith.constant 0 : i32
    return %c0_i32, %c0_i32_0 : i32, i32
  }
}

</mosaic_0001>

<bundles_post_ra>
// kernel: _lambda_.1
= control target key start
LH: loop header
LB: loop body
LE: loop exit
PB: predicated region body
PF: predicated region fallthrough
CT: control target
= control target key end

     0   :  { %13 = vsyncpa [#allocation3], 0  ;;  %s8415_s0 = inlined_call_operand.vmem [shape: f32[8,512], index: 0, kind: input, shape index: {}]   ;;  %s8416_s1 = inlined_call_operand.hbm [shape: f32[216,321], index: 1, kind: input, shape index: {}]   ;;  %s8417_s2 = inlined_call_operand.vmem [shape: f32[9,512], index: 2, kind: input, shape index: {}]   ;;  %s8418_s3 = inlined_call_operand.vmem [shape: f32[9,128], index: 3, kind: input, shape index: {}]   ;;  %s8419_s4 = inlined_call_operand.hbm [shape: f32[512,128], index: 4, kind: input, shape index: {}]   ;;  %s8420_s5 = inlined_call_operand.vmem [shape: f32[128,32], index: 5, kind: input, shape index: {}]   ;;  %s8421_s6 = inlined_call_operand.hbm [shape: f32[128,512], index: 6, kind: input, shape index: {}]   ;;  %s8422_s7 = inlined_call_operand.vmem [shape: f32[32,128], index: 7, kind: input, shape index: {}]   ;;  %s8423_s8 = inlined_call_operand.vmem [shape: f32[8,512], index: 8, kind: output, shape index: {}]  }
   0x1   :  { %14 = vsyncpa [#allocation5], 0  ;;  %s5740_s27 = smov [#allocation4]   ;;  %s5670_s9 = scalar_lea.hbm %s8419_s4, 8192 }
   0x2   :  { %s38_s28 = sshll.u32 %s5740_s27, 4  ;;  %p5671_p0 = scmp.ne.s32.totalorder %s8419_s4, %s5670_s9  ;;  %s39_s28 = int_to_ptr.vmem [resolvable:$true] %s38_s28 }
   0x3   :  { %p5674_p1 = scmp.lt.u32.totalorder %s5670_s9, %s8419_s4 }
   0x5   :  { %p5676_p2 = pnand %p5674_p1, %p5671_p0 }
   0x7   :  { %5679 = shalt.err (!%p5676_p2)
}
   0x8   :  { %s5680_s14 = scalar_lea.vmem %s39_s28, 8192  ;;  %p5685_p4 = scmp.lt.s32.totalorder %s39_s28, %s39_s28 }
   0x9   :  { %p5681_p3 = scmp.ne.s32.totalorder %s39_s28, %s5680_s14  ;;  %p5686_p5 = scmp.lt.s32.totalorder %s5680_s14, %s5680_s14 }
   0xb   :  { %p5687_p6 = por %p5686_p5, %p5685_p4 }
   0xd   :  { %p5688_p7 = pnand %p5687_p6, %p5681_p3 }
   0xf   :  { %5691 = shalt.err (!%p5688_p7)
}
  0x10   :  { %s5741_s15 = smov 128   ;;  %s5742_s16 = smov 8  }
  0x11   :  { %44 = dma.hbm_to_vmem [thread:$0]  %s8419_s4, 8192, %s39_s28, [#allocation5], %s5741_s15, %s5741_s15, %s5742_s16  }
  0x12   :  { %s5743_s19 = smov [#allocation2]   ;;  %s5692_s23 = scalar_lea.hbm %s8416_s1, 10368 }
  0x13   :  { %s22_s20 = sshll.u32 %s5743_s19, 4  ;;  %p5693_p8 = scmp.ne.s32.totalorder %s8416_s1, %s5692_s23  ;;  %s23_s20 = int_to_ptr.vmem [resolvable:$true] %s22_s20 }
  0x14   :  { %p5696_p9 = scmp.lt.u32.totalorder %s5692_s23, %s8416_s1 }
  0x16   :  { %p5698_p10 = pnand %p5696_p9, %p5693_p8 }
  0x18   :  { %5701 = shalt.err (!%p5698_p10)
}
  0x19   :  { %s5702_s29 = scalar_lea.vmem %s23_s20, 10368  ;;  %p5707_p12 = scmp.lt.s32.totalorder %s23_s20, %s23_s20 }
  0x1a   :  { %p5703_p11 = scmp.ne.s32.totalorder %s23_s20, %s5702_s29  ;;  %p5708_p13 = scmp.lt.s32.totalorder %s5702_s29, %s5702_s29 }
  0x1c   :  { %p5709_p0 = por %p5708_p13, %p5707_p12 }
  0x1e   :  { %p5710_p1 = pnand %p5709_p0, %p5703_p11 }
  0x20   :  { %5713 = shalt.err (!%p5710_p1)
}
  0x21   :  { %s5744_s4 = smov 384   ;;  %s5745_s28 = smov 24  }
  0x22   :  { %28 = dma.hbm_to_vmem [thread:$0]  %s8416_s1, 10368, %s23_s20, [#allocation3], %s5744_s4, %s5744_s4, %s5745_s28  }
  0x23   :  { %s5746_s10 = smov [#allocation6]   ;;  %s5714_s14 = scalar_lea.hbm %s8421_s6, 8192 }
  0x24   :  { %s52_s11 = sshll.u32 %s5746_s10, 4  ;;  %p5715_p2 = scmp.ne.s32.totalorder %s8421_s6, %s5714_s14  ;;  %s53_s11 = int_to_ptr.vmem [resolvable:$true] %s52_s11 }
  0x25   :  { %p5718_p3 = scmp.lt.u32.totalorder %s5714_s14, %s8421_s6 }
  0x27   :  { %p5720_p4 = pnand %p5718_p3, %p5715_p2 }
  0x29   :  { %5723 = shalt.err (!%p5720_p4)
}
  0x2a   :  { %s5724_s21 = scalar_lea.vmem %s53_s11, 8192  ;;  %p5729_p6 = scmp.lt.s32.totalorder %s53_s11, %s53_s11 }
  0x2b   :  { %p5725_p5 = scmp.ne.s32.totalorder %s53_s11, %s5724_s21  ;;  %p5730_p7 = scmp.lt.s32.totalorder %s5724_s21, %s5724_s21 }
  0x2d   :  { %p5731_p8 = por %p5730_p7, %p5729_p6 }
  0x2f   :  { %p5732_p9 = pnand %p5731_p8, %p5725_p5 }
  0x31   :  { %5735 = shalt.err (!%p5732_p9)
}
  0x32   :  { %s5747_s1 = smov 512   ;;  %s5748_s20 = smov 32  }
  0x33   :  { %58 = dma.hbm_to_vmem [thread:$0]  %s8421_s6, 8192, %s53_s11, [#allocation5], %s5747_s1, %s5747_s1, %s5748_s20  }
  0x34   :  { %5736 = dma.done.wait [#allocation3], 10368  }
  0x35   :  { %5737 = vsyncadd [#allocation3], 4294956928 }
  0x36   :  { %5738 = dma.done.wait [#allocation5], 16384  }
  0x37   :  { %5739 = vsyncadd [#allocation5], 4294950912  ;;  %v5855_v0 = vld [vmem:[%s8415_s0 + $0x10] sm:$0xff]  ;;  %v5860_v1 = vld [vmem:[%s8415_s0] sm:$0xff]  ;;  %s5749_s30 = smov 17   ;;  %s5751_s9 = smov 15   ;;  %v94_v11 = vlaneseq }
  0x38   :  { %v5865_v2 = vld [vmem:[%s8415_s0 + $0x18] sm:$0xff]  ;;  %v5868_v3 = vmax.f32 %v5855_v0, 0.0  ;;  %v5871_v4 = vmax.f32 %v5860_v1, 0.0  ;;  %v5876_v5 = vld [vmem:[%s8415_s0 + $0x8] sm:$0xff]  ;;  %s5750_s0 = smov 16   ;;  %s5752_s10 = smov 1  }
  0x39   :  { %v5883_v6 = vmax.f32 %v5865_v2, 0.0  ;;  %v5886_v7 = vmax.f32 %v5876_v5, 0.0  ;;  %s5753_s11 = smov 127   ;;  %s5754_s12 = smov 113   ;;  %v8428_v8 = vmov 0.0   ;;  %v8424_v9 = vmov 80  }
  0x3a   :  { %90 = vrot.lane.b32.xlu1 %v5868_v3, %s5749_s30  ;;  %86 = vrot.lane.b32.xlu0 %v5871_v4, %s5749_s30  ;;  %s5755_s13 = smov 112   ;;  %s5757_s14 = smov 111   ;;  %v5951_v10 = vld [vmem:[#allocation2] sm:$0xff]  ;;  %v5954_v12 = vshrl.u32 %v94_v11, 7  ;;  %v5956_v15 = vand.u32 127, %v94_v11  ;;  %v5967_v18 = vld [vmem:[%s8417_s2 + $0x8] sm:$0xff] }
  0x3b   :  { %433 = vmatprep.mubr.f32.mxu0 %v8428_v8  ;;  %510 = vmatprep.mubr.f32.mxu1 %v8428_v8  ;;  %v5973_v21 = vld [vmem:[%s8417_s2] sm:$0xff]  ;;  %v5978_v22 = vld [vmem:[%s8417_s2 + $0x18] sm:$0xff]  ;;  %v5992_v25 = vld [vmem:[%s8417_s2 + $0x10] sm:$0xff]  ;;  %vm364_vm8 = vcmask 654336   ;;  %vm661_vm9 = vcmask 588800   ;;  %s5760_s22 = smov 7  }
  0x3c   :  { %5643 = vset.pattern.permute.xlu0 %v8424_v9  ;;  %v5959_v16 = vsub.s32 0, %v5954_v12  ;;  %v5962_v17 = vsub.s32 1, %v5954_v12  ;;  %vm96_vm0 = vcmp.lt.s32.totalorder %v5956_v15, 17  ;;  %vm129_vm1 = vcmp.lt.s32.totalorder %v5956_v15, 16  ;;  %s5761_s23 = smov 9   ;;  %s5762_s24 = smov 120  }
  0x3d   :  { %v6043_v58 = vsub.s32 2, %v5954_v12  ;;  %v6046_v59 = vsub.s32 3, %v5954_v12  ;;  %vm162_vm2 = vcmp.lt.s32.totalorder %v5956_v15, 15  ;;  %vm195_vm3 = vcmp.lt.s32.totalorder %v5956_v15, 1  ;;  %s5763_s25 = smov 121   ;;  %s5764_s26 = smov 119  }
  0x3e   :  { %92 = vrot.lane.b32.xlu1 %v5883_v6, %s5749_s30  ;;  %88 = vrot.lane.b32.xlu0 %v5886_v7, %s5749_s30  ;;  %8487 = vst [vmem:[#allocation9_spill] sm:$0xff] %v5959_v16  ;;  %8488 = vst [vmem:[#allocation10_spill] sm:$0xff] %v5962_v17  ;;  %v5983_v23 = vrot.slane %v5967_v18, %v5959_v16  ;;  %v5987_v24 = vrot.slane %v5967_v18, %v5962_v17  ;;  %vm228_vm4 = vcmp.lt.s32.totalorder %v5956_v15, 127  ;;  %vm5766_vm10 = vmmov 0  }
  0x3f   :  { %v5998_v29 = vrot.slane %v5973_v21, %v5959_v16  ;;  %v6002_v30 = vrot.slane %v5973_v21, %v5962_v17  ;;  %v6006_v31 = vrot.slane %v5978_v22, %v5959_v16  ;;  %v6014_v34 = vrot.slane %v5978_v22, %v5962_v17  ;;  %8490 = vst [vmem:[#allocation12_spill] sm:$0xff] %v6043_v58 }
  0x40   :  { %8489 = vst [vmem:[#allocation11_spill] sm:$0xff] %v5983_v23  ;;  %v6018_v35 = vrot.slane %v5992_v25, %v5959_v16  ;;  %v6026_v39 = vrot.slane %v5992_v25, %v5962_v17  ;;  %8491 = vst [vmem:[#allocation13_spill] sm:$0xff] %v6046_v59  ;;  %v6052_v62 = vrot.slane %v5967_v18, %v6043_v58  ;;  %vm294_vm5 = vcmp.lt.s32.totalorder %v5956_v15, 112 }
  0x41   :  { %v6056_v63 = vrot.slane %v5967_v18, %v6046_v59  ;;  %vm261_vm6 = vcmp.lt.s32.totalorder %v5956_v15, 113  ;;  %vm327_vm7 = vcmp.lt.s32.totalorder %v5956_v15, 111  ;;  %vm2062_vm11 = vcmask 130048  }
  0x42   :  { %123 = vrot.lane.b32.xlu1 %v5886_v7, %s5750_s0  ;;  %121 = vrot.lane.b32.xlu0 %v5871_v4, %s5750_s0  ;;  %vm2239_vm12 = vcmask 261120   ;;  %vm2437_vm13 = vcmask 523264  }
  0x46   :  { %127 = vrot.lane.b32.xlu1 %v5883_v6, %s5750_s0  ;;  %125 = vrot.lane.b32.xlu0 %v5868_v3, %s5750_s0 }
  0x4a   :  { %156 = vrot.lane.b32.xlu1 %v5886_v7, %s5751_s9  ;;  %154 = vrot.lane.b32.xlu0 %v5871_v4, %s5751_s9 }
  0x4e   :  { %160 = vrot.lane.b32.xlu1 %v5883_v6, %s5751_s9  ;;  %158 = vrot.lane.b32.xlu0 %v5868_v3, %s5751_s9 }
  0x52   :  { %189 = vrot.lane.b32.xlu1 %v5886_v7, %s5752_s10  ;;  %187 = vrot.lane.b32.xlu0 %v5871_v4, %s5752_s10 }
  0x56   :  { %193 = vrot.lane.b32.xlu1 %v5883_v6, %s5752_s10  ;;  %191 = vrot.lane.b32.xlu0 %v5868_v3, %s5752_s10 }
  0x5a   :  { %222 = vrot.lane.b32.xlu1 %v5886_v7, %s5753_s11  ;;  %220 = vrot.lane.b32.xlu0 %v5871_v4, %s5753_s11 }
  0x5e   :  { %226 = vrot.lane.b32.xlu1 %v5883_v6, %s5753_s11  ;;  %224 = vrot.lane.b32.xlu0 %v5868_v3, %s5753_s11 }
  0x62   :  { %255 = vrot.lane.b32.xlu1 %v5886_v7, %s5754_s12  ;;  %253 = vrot.lane.b32.xlu0 %v5871_v4, %s5754_s12 }
  0x66   :  { %259 = vrot.lane.b32.xlu1 %v5883_v6, %s5754_s12  ;;  %257 = vrot.lane.b32.xlu0 %v5868_v3, %s5754_s12 }
  0x6a   :  { %288 = vrot.lane.b32.xlu1 %v5886_v7, %s5755_s13  ;;  %286 = vrot.lane.b32.xlu0 %v5871_v4, %s5755_s13 }
  0x6e   :  { %292 = vrot.lane.b32.xlu1 %v5883_v6, %s5755_s13  ;;  %290 = vrot.lane.b32.xlu0 %v5868_v3, %s5755_s13 }
  0x72   :  { %321 = vrot.lane.b32.xlu1 %v5886_v7, %s5757_s14  ;;  %319 = vrot.lane.b32.xlu0 %v5871_v4, %s5757_s14 }
  0x76   :  { %325 = vrot.lane.b32.xlu1 %v5883_v6, %s5757_s14  ;;  %323 = vrot.lane.b32.xlu0 %v5868_v3, %s5757_s14 }
  0x7a   :  { %356 = vperm.xlu0 %5643, %v5951_v10  }
  0xac   :  { %v91_v13 = vpop.permute.xlu1 %90  ;;  %v87_v14 = vpop.permute.xlu0 %86 }
  0xb0   :  { %v93_v19 = vpop.permute.xlu1 %92  ;;  %v89_v20 = vpop.permute.xlu0 %88 }
  0xb1   :  { %v99_v26 = vsel %vm96_vm0, %v87_v14, %v89_v20  ;;  %v100_v32 = vsel %vm96_vm0, %v93_v19, %v87_v14  ;;  %v97_v38 = vsel %vm96_vm0, %v91_v13, %v93_v19  ;;  %v98_v40 = vsel %vm96_vm0, %v89_v20, %v91_v13 }
  0xb2   :  { %v118_v36 = vmul.f32 %v5983_v23, %v99_v26  ;;  %v117_v44 = vmul.f32 %v5998_v29, %v100_v32  ;;  %v120_v47 = vmul.f32 %v6006_v31, %v97_v38  ;;  %v119_v51 = vmul.f32 %v6018_v35, %v98_v40 }
  0xb3   :  { %v6062_v13 = vrot.slane %v5973_v21, %v6043_v58  ;;  %v6066_v14 = vrot.slane %v5992_v25, %v6043_v58  ;;  %v6070_v19 = vrot.slane %v5978_v22, %v6043_v58  ;;  %v6078_v32 = vrot.slane %v5973_v21, %v6046_v59 }
  0xb4   :  { %v124_v27 = vpop.permute.xlu1 %123  ;;  %v122_v28 = vpop.permute.xlu0 %121  ;;  %v6090_v40 = vrot.slane %v5978_v22, %v6046_v59 }
  0xb5   :  { %v132_v33 = vsel %vm129_vm1, %v122_v28, %v124_v27 }
  0xb6   :  { %v151_v37 = vmul.f32 %v5987_v24, %v132_v33  ;;  %v6082_v33 = vrot.slane %v5992_v25, %v6046_v59 }
  0xb8   :  { %v128_v41 = vpop.permute.xlu1 %127  ;;  %v126_v42 = vpop.permute.xlu0 %125  ;;  %v4898_v43 = vpack.c.bf16 %v151_v37, %v118_v36 }
  0xb9   :  { %v133_v45 = vsel %vm129_vm1, %v128_v41, %v122_v28  ;;  %v131_v46 = vsel %vm129_vm1, %v124_v27, %v126_v42  ;;  %v130_v48 = vsel %vm129_vm1, %v126_v42, %v128_v41 }
  0xba   :  { %4899 = vmatprep.subr.bf16.mxu0 %v4898_v43  ;;  %v150_v49 = vmul.f32 %v6002_v30, %v133_v45  ;;  %v153_v50 = vmul.f32 %v6014_v34, %v130_v48  ;;  %v152_v52 = vmul.f32 %v6026_v39, %v131_v46  ;;  %v6096_v46 = vsub.s32 5, %v5954_v12 }
  0xbc   :  { %v157_v53 = vpop.permute.xlu1 %156  ;;  %v155_v54 = vpop.permute.xlu0 %154  ;;  %v4900_v55 = vpack.c.bf16 %v150_v49, %v117_v44  ;;  %v4918_v56 = vpack.c.bf16 %v153_v50, %v120_v47  ;;  %v4920_v57 = vpack.c.bf16 %v152_v52, %v119_v51  ;;  %8492 = vst [vmem:[#allocation14_spill] sm:$0xff] %v6096_v46 }
  0xbd   :  { %v165_v11 = vsel %vm162_vm2, %v155_v54, %v157_v53 }
  0xbe   :  { %4901 = vmatpush1.bf16.msra.mxu0 %v4900_v55  ;;  %4919 = vmatprep.subr.bf16.mxu1 %v4918_v56  ;;  %v184_v36 = vmul.f32 %v6052_v62, %v165_v11  ;;  %v6112_v11 = vrot.slane %v5973_v21, %v6096_v46 }
  0xbf   :  { %4921 = vmatpush1.bf16.msra.mxu1 %v4920_v57 }
  0xc0   :  { %v161_v60 = vpop.permute.xlu1 %160  ;;  %v159_v61 = vpop.permute.xlu0 %158  ;;  %8493 = vst [vmem:[#allocation15_spill] sm:$0xff] %v6112_v11 }
  0xc1   :  { %v166_v27 = vsel %vm162_vm2, %v161_v60, %v155_v54  ;;  %v164_v37 = vsel %vm162_vm2, %v157_v53, %v159_v61  ;;  %v163_v41 = vsel %vm162_vm2, %v159_v61, %v161_v60 }
  0xc2   :  { %v183_v42 = vmul.f32 %v6062_v13, %v166_v27  ;;  %v185_v47 = vmul.f32 %v6066_v14, %v164_v37  ;;  %v186_v51 = vmul.f32 %v6070_v19, %v163_v41  ;;  %v6122_v27 = vrot.slane %v5967_v18, %v6096_v46 }
  0xc4   :  { %v190_v20 = vpop.permute.xlu1 %189  ;;  %v188_v26 = vpop.permute.xlu0 %187 }
  0xc5   :  { %v198_v28 = vsel %vm195_vm3, %v188_v26, %v190_v20 }
  0xc6   :  { %v217_v38 = vmul.f32 %v6056_v63, %v198_v28  ;;  %v6126_v28 = vrot.slane %v5992_v25, %v6096_v46 }
  0xc8   :  { %v194_v43 = vpop.permute.xlu1 %193  ;;  %v192_v44 = vpop.permute.xlu0 %191  ;;  %v4902_v45 = vpack.c.bf16 %v217_v38, %v184_v36  ;;  %8495 = vst [vmem:[#allocation17_spill] sm:$0xff] %v6126_v28 }
  0xc9   :  { %v199_v48 = vsel %vm195_vm3, %v194_v43, %v188_v26  ;;  %v196_v49 = vsel %vm195_vm3, %v192_v44, %v194_v43  ;;  %v197_v50 = vsel %vm195_vm3, %v190_v20, %v192_v44  ;;  %v6116_v20 = vrot.slane %v5978_v22, %v6096_v46 }
  0xca   :  { %v216_v52 = vmul.f32 %v6078_v32, %v199_v48  ;;  %v218_v53 = vmul.f32 %v6082_v33, %v197_v50  ;;  %v219_v54 = vmul.f32 %v6090_v40, %v196_v49  ;;  %4903 = vmatprep.subr.bf16.mxu0 %v4902_v45 }
  0xcb   :  { %8494 = vst [vmem:[#allocation16_spill] sm:$0xff] %v6116_v20 }
  0xcc   :  { %v223_v55 = vpop.permute.xlu1 %222  ;;  %v221_v56 = vpop.permute.xlu0 %220  ;;  %v4904_v57 = vpack.c.bf16 %v216_v52, %v183_v42  ;;  %v4922_v60 = vpack.c.bf16 %v219_v54, %v186_v51  ;;  %v4924_v61 = vpack.c.bf16 %v218_v53, %v185_v47 }
  0xcd   :  { %v231_v26 = vsel %vm228_vm4, %v221_v56, %v223_v55 }
  0xce   :  { %4905 = vmatpush1.bf16.msra.mxu0 %v4904_v57  ;;  %4923 = vmatprep.subr.bf16.mxu1 %v4922_v60  ;;  %v249_v38 = vmul.f32 %v6112_v11, %v231_v26  ;;  %v6146_v57 = vsub.s32 6, %v5954_v12 }
  0xcf   :  { %4925 = vmatpush1.bf16.msra.mxu1 %v4924_v61 }
  0xd0   :  { %v227_v36 = vpop.permute.xlu1 %226  ;;  %v225_v37 = vpop.permute.xlu0 %224  ;;  %v4908_v53 = vpack.c.bf16 %v249_v38, %v5871_v4  ;;  %8497 = vst [vmem:[#allocation19_spill] sm:$0xff] %v6146_v57  ;;  %v6156_v4 = vrot.slane %v5967_v18, %v6146_v57 }
  0xd1   :  { %v232_v41 = vsel %vm228_vm4, %v227_v36, %v221_v56  ;;  %v229_v42 = vsel %vm228_vm4, %v225_v37, %v227_v36  ;;  %v230_v43 = vsel %vm228_vm4, %v223_v55, %v225_v37  ;;  %v6143_v56 = vsub.s32 7, %v5954_v12 }
  0xd2   :  { %v252_v44 = vmul.f32 %v6116_v20, %v232_v41  ;;  %v250_v45 = vmul.f32 %v6122_v27, %v230_v43  ;;  %v251_v47 = vmul.f32 %v6126_v28, %v229_v42  ;;  %8499 = vst [vmem:[#allocation21_spill] sm:$0xff] %v6156_v4  ;;  %v6162_v12 = vrot.slane %v5992_v25, %v6146_v57 }
  0xd3   :  { %8496 = vst [vmem:[#allocation18_spill] sm:$0xff] %v6143_v56  ;;  %v6168_v26 = vrot.slane %v5973_v21, %v6143_v56  ;;  %v6174_v37 = vrot.slane %v5978_v22, %v6143_v56  ;;  %v6178_v38 = vrot.slane %v5967_v18, %v6143_v56  ;;  %v6182_v41 = vrot.slane %v5992_v25, %v6143_v56 }
  0xd4   :  { %v256_v48 = vpop.permute.xlu1 %255  ;;  %v254_v49 = vpop.permute.xlu0 %253  ;;  %v4906_v50 = vpack.c.bf16 %v250_v45, %v5886_v7  ;;  %v4926_v51 = vpack.c.bf16 %v252_v44, %v5883_v6  ;;  %v4928_v52 = vpack.c.bf16 %v251_v47, %v5868_v3  ;;  %v6152_v3 = vrot.slane %v5978_v22, %v6146_v57  ;;  %8500 = vst [vmem:[#allocation22_spill] sm:$0xff] %v6162_v12 }
  0xd5   :  { %8501 = vst [vmem:[#allocation23_spill] sm:$0xff] %v6168_v26  ;;  %8502 = vst [vmem:[#allocation24_spill] sm:$0xff] %v6174_v37  ;;  %v6186_v42 = vrot.slane %v5973_v21, %v6146_v57  ;;  %v264_v44 = vsel %vm261_vm6, %v254_v49, %v256_v48 }
  0xd6   :  { %4907 = vmatprep.subr.bf16.mxu0 %v4906_v50  ;;  %4927 = vmatprep.subr.bf16.mxu1 %v4926_v51  ;;  %8498 = vst [vmem:[#allocation20_spill] sm:$0xff] %v6152_v3  ;;  %8503 = vst [vmem:[#allocation25_spill] sm:$0xff] %v6178_v38 }
  0xd7   :  { %4909 = vmatpush1.bf16.msra.mxu0 %v4908_v53  ;;  %4929 = vmatpush1.bf16.msra.mxu1 %v4928_v52  ;;  %8504 = vst [vmem:[#allocation26_spill] sm:$0xff] %v6182_v41  ;;  %8505 = vst [vmem:[#allocation27_spill] sm:$0xff] %v6186_v42 }
  0xd8   :  { %v260_v54 = vpop.permute.xlu1 %259  ;;  %v258_v55 = vpop.permute.xlu0 %257 }
  0xd9   :  { %v265_v60 = vsel %vm261_vm6, %v260_v54, %v254_v49  ;;  %v263_v61 = vsel %vm261_vm6, %v256_v48, %v258_v55  ;;  %v262_v43 = vsel %vm261_vm6, %v258_v55, %v260_v54  ;;  %v282_v54 = vmul.f32 %v6186_v42, %v264_v44  ;;  %v6217_v44 = vld [vmem:[%s8417_s2 + $0x38] ss:$0 sm:$0xff] }
  0xda   :  { %v285_v22 = vmul.f32 %v6152_v3, %v265_v60  ;;  %v283_v45 = vmul.f32 %v6156_v4, %v263_v61  ;;  %v284_v52 = vmul.f32 %v6162_v12, %v262_v43 }
  0xdc   :  { %v289_v6 = vpop.permute.xlu1 %288  ;;  %v287_v7 = vpop.permute.xlu0 %286 }
  0xdd   :  { %v297_v36 = vsel %vm294_vm5, %v287_v7, %v289_v6 }
  0xde   :  { %v315_v50 = vmul.f32 %v6168_v26, %v297_v36 }
  0xe0   :  { %v293_v18 = vpop.permute.xlu1 %292  ;;  %v291_v47 = vpop.permute.xlu0 %290 }
  0xe1   :  { %v298_v25 = vsel %vm294_vm5, %v293_v18, %v287_v7  ;;  %v295_v21 = vsel %vm294_vm5, %v291_v47, %v293_v18  ;;  %v296_v51 = vsel %vm294_vm5, %v289_v6, %v291_v47  ;;  %v4912_v18 = vpack.c.bf16 %v315_v50, %v282_v54  ;;  %v6210_v6 = vld [vmem:[%s8417_s2 + $0x20] ss:$0 sm:$0xff] }
  0xe2   :  { %v318_v48 = vmul.f32 %v6174_v37, %v298_v25  ;;  %v316_v49 = vmul.f32 %v6178_v38, %v296_v51  ;;  %v317_v53 = vmul.f32 %v6182_v41, %v295_v21 }
  0xe4   :  { %v322_v55 = vpop.permute.xlu1 %321  ;;  %v320_v7 = vpop.permute.xlu0 %319  ;;  %v4910_v60 = vpack.c.bf16 %v316_v49, %v283_v45  ;;  %v4930_v61 = vpack.c.bf16 %v318_v48, %v285_v22  ;;  %v4932_v36 = vpack.c.bf16 %v317_v53, %v284_v52  ;;  %v6222_v22 = vld [vmem:[%s8417_s2 + $0x28] ss:$0 sm:$0xff]  ;;  %v6227_v45 = vld [vmem:[%s8417_s2 + $0x30] ss:$0 sm:$0xff] }
  0xe5   :  { %v330_v43 = vsel %vm327_vm7, %v320_v7, %v322_v55 }
  0xe6   :  { %4911 = vmatprep.subr.bf16.mxu0 %v4910_v60  ;;  %4931 = vmatprep.subr.bf16.mxu1 %v4930_v61  ;;  %v348_v25 = vmul.f32 %v6210_v6, %v330_v43 }
  0xe7   :  { %4913 = vmatpush1.bf16.msra.mxu0 %v4912_v18  ;;  %4933 = vmatpush1.bf16.msra.mxu1 %v4932_v36 }
  0xe8   :  { %v326_v47 = vpop.permute.xlu1 %325  ;;  %v324_v50 = vpop.permute.xlu0 %323 }
  0xe9   :  { %v331_v21 = vsel %vm327_vm7, %v326_v47, %v320_v7  ;;  %v328_v51 = vsel %vm327_vm7, %v324_v50, %v326_v47  ;;  %v329_v52 = vsel %vm327_vm7, %v322_v55, %v324_v50  ;;  %v4916_v7 = vpack.c.bf16 %v5860_v1, %v348_v25 }
  0xea   :  { %v351_v48 = vmul.f32 %v6217_v44, %v331_v21  ;;  %v349_v49 = vmul.f32 %v6222_v22, %v329_v52  ;;  %v350_v53 = vmul.f32 %v6227_v45, %v328_v51 }
  0xec   :  { %v4914_v54 = vpack.c.bf16 %v5876_v5, %v349_v49  ;;  %v4934_v60 = vpack.c.bf16 %v5865_v2, %v351_v48  ;;  %v4936_v61 = vpack.c.bf16 %v5855_v0, %v350_v53  ;;  %v353_v2 = vld [vmem:[#allocation2 + $0x18] sm:$0xff]  ;;  %v8426_v0 = vmov 72   ;;  %v6326_v48 = vld [vmem:[#allocation2 + $0x30] sm:$0xff] }
  0xed   :  { %5644 = vset.pattern.permute.xlu1 %v8426_v0 }
  0xee   :  { %4915 = vmatprep.subr.bf16.mxu0 %v4914_v54  ;;  %4935 = vmatprep.subr.bf16.mxu1 %v4934_v60 }
  0xef   :  { %4917 = vmatpush1.bf16.msra.mxu0 %v4916_v7  ;;  %4937 = vmatpush1.bf16.msra.mxu1 %v4936_v61 }
  0xf2   :  { %4446 = vmatmul.mubr.msk.f32.vlgmr.msra.gmra.mrb[0].mxu0 %vm364_vm8, %v5951_v10  ;;  %4448 = vmatmul.mubr.msk.f32.vlgmr.msra.gmra.mrb[0].mxu1 %vm364_vm8, %v5951_v10 }
  0xf3   :  { %439 = vmatprep.mubr.f32.mxu0 %v8428_v8  ;;  %516 = vmatprep.mubr.f32.mxu1 %v8428_v8 }
  0xf6   :  { %4447 = vmatmul.mubr.msk.f32.gmra.mrb[2].mxu0 %vm364_vm8, %v353_v2  ;;  %4449 = vmatmul.mubr.msk.f32.gmra.mrb[2].mxu1 %vm364_vm8, %v353_v2 }
  0xf7   :  { %728 = vmatprep.mubr.f32.mxu0 %v8428_v8  ;;  %799 = vmatprep.mubr.f32.mxu1 %v8428_v8 }
  0xf9   :  { %v357_v1 = vpop.permute.xlu0 %356 }
 0x1c5   :  { %v435_v5 = vpop.f32.mrb[0].mxu0  ;;  %v512_v55 = vpop.f32.mrb[0].mxu1 }
 0x1c6   :  { %v436_v10 = vadd.f32 %v435_v5, %v357_v1  ;;  %v513_v36 = vadd.f32 %v512_v55, %v357_v1  ;;  %v437_v18 = vpop.f32.mrb[1].mxu0  ;;  %v514_v43 = vpop.f32.mrb[1].mxu1 }
 0x1c7   :  { %v438_v25 = vadd.f32 %v437_v18, %v357_v1  ;;  %v515_v51 = vadd.f32 %v514_v43, %v357_v1 }
 0x1c8   :  { %v6254_v47 = vmax.f32 %v436_v10, 0.0  ;;  %v6256_v50 = vmax.f32 %v513_v36, 0.0 }
 0x1c9   :  { %v6262_v21 = vmax.f32 %v438_v25, 0.0  ;;  %v6268_v52 = vmax.f32 %v515_v51, 0.0 }
 0x1ca   :  { %531 = vrot.lane.b32.xlu0 %v6256_v50, %s5749_s30  ;;  %527 = vrot.lane.b32.xlu1 %v6254_v47, %s5749_s30 }
 0x1ce   :  { %543 = vrot.lane.b32.xlu0 %v6254_v47, %s5750_s0  ;;  %529 = vrot.lane.b32.xlu1 %v6262_v21, %s5749_s30 }
 0x1d2   :  { %547 = vrot.lane.b32.xlu0 %v6256_v50, %s5750_s0  ;;  %533 = vrot.lane.b32.xlu1 %v6268_v52, %s5749_s30 }
 0x1d6   :  { %559 = vrot.lane.b32.xlu0 %v6254_v47, %s5751_s9  ;;  %545 = vrot.lane.b32.xlu1 %v6262_v21, %s5750_s0 }
 0x1da   :  { %563 = vrot.lane.b32.xlu0 %v6256_v50, %s5751_s9  ;;  %549 = vrot.lane.b32.xlu1 %v6268_v52, %s5750_s0 }
 0x1de   :  { %575 = vrot.lane.b32.xlu0 %v6254_v47, %s5752_s10  ;;  %561 = vrot.lane.b32.xlu1 %v6262_v21, %s5751_s9 }
 0x1e2   :  { %579 = vrot.lane.b32.xlu0 %v6256_v50, %s5752_s10  ;;  %565 = vrot.lane.b32.xlu1 %v6268_v52, %s5751_s9 }
 0x1e6   :  { %591 = vrot.lane.b32.xlu0 %v6254_v47, %s5753_s11  ;;  %577 = vrot.lane.b32.xlu1 %v6262_v21, %s5752_s10 }
 0x1ea   :  { %595 = vrot.lane.b32.xlu0 %v6256_v50, %s5753_s11  ;;  %581 = vrot.lane.b32.xlu1 %v6268_v52, %s5752_s10 }
 0x1ee   :  { %607 = vrot.lane.b32.xlu0 %v6254_v47, %s5754_s12  ;;  %593 = vrot.lane.b32.xlu1 %v6262_v21, %s5753_s11 }
 0x1f2   :  { %611 = vrot.lane.b32.xlu0 %v6256_v50, %s5754_s12  ;;  %597 = vrot.lane.b32.xlu1 %v6268_v52, %s5753_s11 }
 0x1f6   :  { %623 = vrot.lane.b32.xlu0 %v6254_v47, %s5755_s13  ;;  %609 = vrot.lane.b32.xlu1 %v6262_v21, %s5754_s12 }
 0x1fa   :  { %627 = vrot.lane.b32.xlu0 %v6256_v50, %s5755_s13  ;;  %613 = vrot.lane.b32.xlu1 %v6268_v52, %s5754_s12 }
 0x1fe   :  { %639 = vrot.lane.b32.xlu0 %v6254_v47, %s5757_s14  ;;  %625 = vrot.lane.b32.xlu1 %v6262_v21, %s5755_s13 }
 0x202   :  { %643 = vrot.lane.b32.xlu0 %v6256_v50, %s5757_s14  ;;  %629 = vrot.lane.b32.xlu1 %v6268_v52, %s5755_s13 }
 0x206   :  { %361 = vperm.xlu0 %5643, %v353_v2   ;;  %641 = vrot.lane.b32.xlu1 %v6262_v21, %s5757_s14 }
 0x20a   :  { %645 = vrot.lane.b32.xlu1 %v6268_v52, %s5757_s14 }
 0x20e   :  { %658 = vperm.xlu1 %5644, %v6326_v48  }
 0x212   :  { %5645 = vset.pattern.permute.xlu1 %v8424_v9 }
 0x23c   :  { %v532_v49 = vpop.permute.xlu0 %531  ;;  %v528_v53 = vpop.permute.xlu1 %527 }
 0x240   :  { %v544_v54 = vpop.permute.xlu0 %543  ;;  %v530_v60 = vpop.permute.xlu1 %529 }
 0x241   :  { %v537_v2 = vsel %vm96_vm0, %v528_v53, %v530_v60  ;;  %v536_v51 = vsel %vm96_vm0, %v530_v60, %v532_v49 }
 0x242   :  { %v540_v10 = vmul.f32 %v537_v2, %v5983_v23 }
 0x244   :  { %v548_v61 = vpop.permute.xlu0 %547  ;;  %v534_v7 = vpop.permute.xlu1 %533 }
 0x245   :  { %v535_v43 = vsel %vm96_vm0, %v532_v49, %v534_v7  ;;  %v538_v25 = vsel %vm96_vm0, %v534_v7, %v528_v53  ;;  %v541_v49 = vmul.f32 %v536_v51, %v6018_v35 }
 0x246   :  { %v542_v57 = vmul.f32 %v535_v43, %v6006_v31 }
 0x248   :  { %v560_v1 = vpop.permute.xlu0 %559  ;;  %v546_v5 = vpop.permute.xlu1 %545 }
 0x249   :  { %v553_v55 = vsel %vm129_vm1, %v544_v54, %v546_v5  ;;  %v552_v36 = vsel %vm129_vm1, %v546_v5, %v548_v61 }
 0x24a   :  { %v556_v18 = vmul.f32 %v553_v55, %v5987_v24  ;;  %v557_v56 = vmul.f32 %v552_v36, %v6026_v39  ;;  %v539_v55 = vmul.f32 %v538_v25, %v5998_v29 }
 0x24c   :  { %v564_v9 = vpop.permute.xlu0 %563  ;;  %v550_v0 = vpop.permute.xlu1 %549  ;;  %v4938_v8 = vpack.c.bf16 %v556_v18, %v540_v10  ;;  %v4956_v46 = vpack.c.bf16 %v557_v56, %v541_v49 }
 0x24d   :  { %v551_v2 = vsel %vm129_vm1, %v548_v61, %v550_v0  ;;  %v554_v5 = vsel %vm129_vm1, %v550_v0, %v544_v54 }
 0x24e   :  { %v555_v53 = vmul.f32 %v554_v5, %v6002_v30  ;;  %v558_v7 = vmul.f32 %v551_v2, %v6014_v34  ;;  %4939 = vmatprep.subr.bf16.mxu0 %v4938_v8 }
 0x250   :  { %v4940_v60 = vpack.c.bf16 %v555_v53, %v539_v55  ;;  %v576_v10 = vpop.permute.xlu0 %575  ;;  %v562_v36 = vpop.permute.xlu1 %561  ;;  %v4954_v18 = vpack.c.bf16 %v558_v7, %v542_v57 }
 0x251   :  { %v569_v61 = vsel %vm162_vm2, %v560_v1, %v562_v36  ;;  %v568_v5 = vsel %vm162_vm2, %v562_v36, %v564_v9 }
 0x252   :  { %4941 = vmatpush1.bf16.msra.mxu0 %v4940_v60  ;;  %4955 = vmatprep.subr.bf16.mxu1 %v4954_v18  ;;  %v572_v51 = vmul.f32 %v569_v61, %v6052_v62 }
 0x253   :  { %4957 = vmatpush1.bf16.msra.mxu1 %v4956_v46 }
 0x254   :  { %v580_v0 = vpop.permute.xlu0 %579  ;;  %v566_v54 = vpop.permute.xlu1 %565 }
 0x255   :  { %v567_v46 = vsel %vm162_vm2, %v564_v9, %v566_v54  ;;  %v570_v57 = vsel %vm162_vm2, %v566_v54, %v560_v1  ;;  %v573_v9 = vmul.f32 %v568_v5, %v6066_v14 }
 0x256   :  { %v571_v61 = vmul.f32 %v570_v57, %v6062_v13 }
 0x258   :  { %v592_v43 = vpop.permute.xlu0 %591  ;;  %v578_v25 = vpop.permute.xlu1 %577 }
 0x259   :  { %v585_v8 = vsel %vm195_vm3, %v576_v10, %v578_v25  ;;  %v584_v2 = vsel %vm195_vm3, %v578_v25, %v580_v0  ;;  %v574_v25 = vmul.f32 %v567_v46, %v6070_v19 }
 0x25a   :  { %v588_v56 = vmul.f32 %v585_v8, %v6056_v63  ;;  %v589_v49 = vmul.f32 %v584_v2, %v6082_v33 }
 0x25c   :  { %v596_v55 = vpop.permute.xlu0 %595  ;;  %v582_v53 = vpop.permute.xlu1 %581  ;;  %v4942_v7 = vpack.c.bf16 %v588_v56, %v572_v51  ;;  %v4960_v56 = vpack.c.bf16 %v589_v49, %v573_v9 }
 0x25d   :  { %v583_v60 = vsel %vm195_vm3, %v580_v0, %v582_v53  ;;  %v586_v18 = vsel %vm195_vm3, %v582_v53, %v576_v10 }
 0x25e   :  { %v587_v1 = vmul.f32 %v586_v18, %v6078_v32  ;;  %v590_v54 = vmul.f32 %v583_v60, %v6090_v40  ;;  %4943 = vmatprep.subr.bf16.mxu0 %v4942_v7 }
 0x260   :  { %v4944_v36 = vpack.c.bf16 %v587_v1, %v571_v61  ;;  %v608_v8 = vpop.permute.xlu0 %607  ;;  %v594_v51 = vpop.permute.xlu1 %593  ;;  %v4958_v2 = vpack.c.bf16 %v590_v54, %v574_v25 }
 0x261   :  { %v600_v0 = vsel %vm228_vm4, %v594_v51, %v596_v55  ;;  %v601_v10 = vsel %vm228_vm4, %v592_v43, %v594_v51 }
 0x262   :  { %v603_v46 = vmul.f32 %v601_v10, %v6112_v11  ;;  %v604_v57 = vmul.f32 %v600_v0, %v6122_v27  ;;  %4945 = vmatpush1.bf16.msra.mxu0 %v4944_v36  ;;  %4959 = vmatprep.subr.bf16.mxu1 %v4958_v2 }
 0x263   :  { %4961 = vmatpush1.bf16.msra.mxu1 %v4960_v56 }
 0x264   :  { %v4948_v5 = vpack.c.bf16 %v603_v46, %v6254_v47  ;;  %v612_v53 = vpop.permute.xlu0 %611  ;;  %v598_v7 = vpop.permute.xlu1 %597  ;;  %v4946_v60 = vpack.c.bf16 %v604_v57, %v6262_v21 }
 0x265   :  { %v599_v49 = vsel %vm228_vm4, %v596_v55, %v598_v7  ;;  %v602_v18 = vsel %vm228_vm4, %v598_v7, %v592_v43 }
 0x266   :  { %v605_v61 = vmul.f32 %v599_v49, %v6126_v28  ;;  %v606_v25 = vmul.f32 %v602_v18, %v6116_v20  ;;  %4947 = vmatprep.subr.bf16.mxu0 %v4946_v60 }
 0x267   :  { %4949 = vmatpush1.bf16.msra.mxu0 %v4948_v5 }
 0x268   :  { %v4964_v1 = vpack.c.bf16 %v605_v61, %v6256_v50  ;;  %v624_v54 = vpop.permute.xlu0 %623  ;;  %v610_v47 = vpop.permute.xlu1 %609  ;;  %v4962_v9 = vpack.c.bf16 %v606_v25, %v6268_v52 }
 0x269   :  { %v616_v55 = vsel %vm261_vm6, %v610_v47, %v612_v53  ;;  %v617_v43 = vsel %vm261_vm6, %v608_v8, %v610_v47 }
 0x26a   :  { %4963 = vmatprep.subr.bf16.mxu1 %v4962_v9  ;;  %v619_v56 = vmul.f32 %v617_v43, %v6186_v42  ;;  %v620_v52 = vmul.f32 %v616_v55, %v6156_v4 }
 0x26b   :  { %4965 = vmatpush1.bf16.msra.mxu1 %v4964_v1 }
 0x26c   :  { %v628_v21 = vpop.permute.xlu0 %627  ;;  %v614_v36 = vpop.permute.xlu1 %613 }
 0x26d   :  { %v615_v57 = vsel %vm261_vm6, %v612_v53, %v614_v36  ;;  %v618_v5 = vsel %vm261_vm6, %v614_v36, %v608_v8 }
 0x26e   :  { %v621_v25 = vmul.f32 %v615_v57, %v6162_v12  ;;  %v622_v1 = vmul.f32 %v618_v5, %v6152_v3 }
 0x270   :  { %v626_v51 = vpop.permute.xlu1 %625  ;;  %v640_v0 = vpop.permute.xlu0 %639 }
 0x271   :  { %v632_v2 = vsel %vm294_vm5, %v626_v51, %v628_v21  ;;  %v633_v50 = vsel %vm294_vm5, %v624_v54, %v626_v51 }
 0x272   :  { %v635_v10 = vmul.f32 %v633_v50, %v6168_v26  ;;  %v636_v46 = vmul.f32 %v632_v2, %v6178_v38 }
 0x274   :  { %v4952_v7 = vpack.c.bf16 %v635_v10, %v619_v56  ;;  %v630_v60 = vpop.permute.xlu1 %629  ;;  %v4950_v49 = vpack.c.bf16 %v636_v46, %v620_v52  ;;  %v644_v8 = vpop.permute.xlu0 %643  ;;  %v8506_v46 = vmov 0.0  }
 0x275   :  { %v631_v18 = vsel %vm294_vm5, %v628_v21, %v630_v60  ;;  %v634_v61 = vsel %vm294_vm5, %v630_v60, %v624_v54 }
 0x276   :  { %v637_v47 = vmul.f32 %v631_v18, %v6182_v41  ;;  %v638_v53 = vmul.f32 %v634_v61, %v6174_v37  ;;  %4951 = vmatprep.subr.bf16.mxu0 %v4950_v49 }
 0x277   :  { %4953 = vmatpush1.bf16.msra.mxu0 %v4952_v7 }
 0x278   :  { %v4968_v9 = vpack.c.bf16 %v637_v47, %v621_v25  ;;  %v642_v36 = vpop.permute.xlu1 %641  ;;  %v4966_v55 = vpack.c.bf16 %v638_v53, %v622_v1 }
 0x279   :  { %v648_v21 = vsel %vm327_vm7, %v642_v36, %v644_v8  ;;  %v649_v54 = vsel %vm327_vm7, %v640_v0, %v642_v36  ;;  %v6520_v36 = vld [vmem:[#allocation2 + $0x48] sm:$0xff] }
 0x27a   :  { %v651_v43 = vmul.f32 %v6210_v6, %v649_v54  ;;  %4967 = vmatprep.subr.bf16.mxu1 %v4966_v55  ;;  %v652_v51 = vmul.f32 %v6222_v22, %v648_v21  ;;  %v8507_v55 = vmov 72  }
 0x27b   :  { %4969 = vmatpush1.bf16.msra.mxu1 %v4968_v9 }
 0x27c   :  { %680 = vmatprep.subr.mxu0 %v652_v51  ;;  %v646_v2 = vpop.permute.xlu1 %645 }
 0x27d   :  { %v647_v50 = vsel %vm327_vm7, %v644_v8, %v646_v2  ;;  %v650_v56 = vsel %vm327_vm7, %v646_v2, %v640_v0  ;;  %681 = vmatpush1.msra.mxu0 %v651_v43 }
 0x27e   :  { %v653_v52 = vmul.f32 %v6227_v45, %v647_v50  ;;  %4450 = vmatmul.mubr.msk.f32.vlgmr.msra.gmra.mrb[2].mxu0 %vm661_vm9, %v6326_v48  ;;  %v654_v10 = vmul.f32 %v6217_v44, %v650_v56 }
 0x27f   :  { %1022 = vmatprep.mubr.f32.mxu0 %v8506_v46 }
 0x280   :  { %751 = vmatprep.subr.mxu1 %v654_v10 }
 0x281   :  { %752 = vmatpush1.msra.mxu1 %v653_v52 }
 0x282   :  { %4451 = vmatmul.mubr.msk.f32.vlgmr.msra.gmra.mrb[2].mxu1 %vm661_vm9, %v6326_v48 }
 0x283   :  { %1099 = vmatprep.mubr.f32.mxu1 %v8506_v46 }
 0x285   :  { %v362_v5 = vpop.permute.xlu0 %361 }
 0x28d   :  { %v659_v57 = vpop.permute.xlu1 %658 }
 0x28e   :  { %v5565_v0 = vadd.f32 %v659_v57, %v362_v5 }
 0x351   :  { %v730_v7 = vpop.f32.mrb[2].mxu0 }
 0x352   :  { %v6436_v60 = vadd.f32 %v5565_v0, %v730_v7  ;;  %v732_v49 = vpop.f32.mrb[3].mxu0 }
 0x353   :  { %v6438_v18 = vadd.f32 %v5565_v0, %v732_v49 }
 0x354   :  { %v6441_v61 = vmax.f32 %v6436_v60, 0.0 }
 0x355   :  { %v6444_v25 = vmax.f32 %v6438_v18, 0.0  ;;  %v801_v1 = vpop.f32.mrb[2].mxu1 }
 0x356   :  { %v6446_v47 = vadd.f32 %v5565_v0, %v801_v1  ;;  %v803_v48 = vpop.f32.mrb[3].mxu1  ;;  %814 = vrot.lane.b32.xlu0 %v6441_v61, %s5749_s30 }
 0x357   :  { %v6450_v53 = vadd.f32 %v5565_v0, %v803_v48  ;;  %816 = vrot.lane.b32.xlu1 %v6444_v25, %s5749_s30 }
 0x358   :  { %v6455_v8 = vmax.f32 %v6446_v47, 0.0 }
 0x359   :  { %v6458_v9 = vmax.f32 %v6450_v53, 0.0 }
 0x35a   :  { %818 = vrot.lane.b32.xlu0 %v6455_v8, %s5749_s30 }
 0x35b   :  { %820 = vrot.lane.b32.xlu1 %v6458_v9, %s5749_s30 }
 0x35e   :  { %830 = vrot.lane.b32.xlu0 %v6441_v61, %s5750_s0 }
 0x35f   :  { %832 = vrot.lane.b32.xlu1 %v6444_v25, %s5750_s0 }
 0x362   :  { %834 = vrot.lane.b32.xlu0 %v6455_v8, %s5750_s0 }
 0x363   :  { %836 = vrot.lane.b32.xlu1 %v6458_v9, %s5750_s0 }
 0x366   :  { %846 = vrot.lane.b32.xlu0 %v6441_v61, %s5751_s9 }
 0x367   :  { %848 = vrot.lane.b32.xlu1 %v6444_v25, %s5751_s9 }
 0x36a   :  { %850 = vrot.lane.b32.xlu0 %v6455_v8, %s5751_s9 }
 0x36b   :  { %852 = vrot.lane.b32.xlu1 %v6458_v9, %s5751_s9 }
 0x36e   :  { %862 = vrot.lane.b32.xlu0 %v6441_v61, %s5752_s10 }
 0x36f   :  { %864 = vrot.lane.b32.xlu1 %v6444_v25, %s5752_s10 }
 0x372   :  { %866 = vrot.lane.b32.xlu0 %v6455_v8, %s5752_s10 }
 0x373   :  { %868 = vrot.lane.b32.xlu1 %v6458_v9, %s5752_s10 }
 0x376   :  { %878 = vrot.lane.b32.xlu0 %v6441_v61, %s5753_s11 }
 0x377   :  { %880 = vrot.lane.b32.xlu1 %v6444_v25, %s5753_s11 }
 0x37a   :  { %882 = vrot.lane.b32.xlu0 %v6455_v8, %s5753_s11 }
 0x37b   :  { %884 = vrot.lane.b32.xlu1 %v6458_v9, %s5753_s11 }
 0x37e   :  { %894 = vrot.lane.b32.xlu0 %v6441_v61, %s5754_s12 }
 0x37f   :  { %896 = vrot.lane.b32.xlu1 %v6444_v25, %s5754_s12 }
 0x382   :  { %898 = vrot.lane.b32.xlu0 %v6455_v8, %s5754_s12 }
 0x383   :  { %900 = vrot.lane.b32.xlu1 %v6458_v9, %s5754_s12 }
 0x386   :  { %910 = vrot.lane.b32.xlu0 %v6441_v61, %s5755_s13 }
 0x387   :  { %912 = vrot.lane.b32.xlu1 %v6444_v25, %s5755_s13 }
 0x38a   :  { %914 = vrot.lane.b32.xlu0 %v6455_v8, %s5755_s13 }
 0x38b   :  { %916 = vrot.lane.b32.xlu1 %v6458_v9, %s5755_s13 }
 0x38e   :  { %926 = vrot.lane.b32.xlu0 %v6441_v61, %s5757_s14 }
 0x38f   :  { %928 = vrot.lane.b32.xlu1 %v6444_v25, %s5757_s14 }
 0x392   :  { %930 = vrot.lane.b32.xlu0 %v6455_v8, %s5757_s14 }
 0x393   :  { %932 = vrot.lane.b32.xlu1 %v6458_v9, %s5757_s14 }
 0x396   :  { %946 = vperm.xlu0 %5643, %v6520_v36  }
 0x39a   :  { %5646 = vset.pattern.permute.xlu0 %v8507_v55 }
 0x3c8   :  { %v815_v21 = vpop.permute.xlu0 %814 }
 0x3c9   :  { %v817_v54 = vpop.permute.xlu1 %816 }
 0x3ca   :  { %v824_v2 = vsel %vm96_vm0, %v815_v21, %v817_v54 }
 0x3cb   :  { %v827_v10 = vmul.f32 %v824_v2, %v5983_v23 }
 0x3cc   :  { %v819_v43 = vpop.permute.xlu0 %818 }
 0x3cd   :  { %v821_v51 = vpop.permute.xlu1 %820  ;;  %v823_v49 = vsel %vm96_vm0, %v817_v54, %v819_v43 }
 0x3ce   :  { %v822_v5 = vsel %vm96_vm0, %v819_v43, %v821_v51  ;;  %v825_v0 = vsel %vm96_vm0, %v821_v51, %v815_v21  ;;  %v828_v43 = vmul.f32 %v823_v49, %v6018_v35 }
 0x3cf   :  { %v826_v17 = vmul.f32 %v825_v0, %v5998_v29  ;;  %v829_v21 = vmul.f32 %v822_v5, %v6006_v31 }
 0x3d0   :  { %v831_v50 = vpop.permute.xlu0 %830 }
 0x3d1   :  { %v833_v56 = vpop.permute.xlu1 %832 }
 0x3d2   :  { %v840_v52 = vsel %vm129_vm1, %v831_v50, %v833_v56 }
 0x3d3   :  { %v843_v57 = vmul.f32 %v840_v52, %v5987_v24 }
 0x3d4   :  { %v835_v7 = vpop.permute.xlu0 %834 }
 0x3d5   :  { %v839_v1 = vsel %vm129_vm1, %v833_v56, %v835_v7  ;;  %v837_v48 = vpop.permute.xlu1 %836  ;;  %v4970_v59 = vpack.c.bf16 %v843_v57, %v827_v10 }
 0x3d6   :  { %v844_v58 = vmul.f32 %v839_v1, %v6026_v39  ;;  %v838_v2 = vsel %vm129_vm1, %v835_v7, %v837_v48  ;;  %v841_v52 = vsel %vm129_vm1, %v837_v48, %v831_v50 }
 0x3d7   :  { %v842_v51 = vmul.f32 %v841_v52, %v6002_v30  ;;  %v845_v54 = vmul.f32 %v838_v2, %v6014_v34  ;;  %4971 = vmatprep.subr.bf16.mxu0 %v4970_v59 }
 0x3d8   :  { %v847_v56 = vpop.permute.xlu0 %846  ;;  %v4992_v16 = vpack.c.bf16 %v844_v58, %v828_v43 }
 0x3d9   :  { %v4972_v10 = vpack.c.bf16 %v842_v51, %v826_v17  ;;  %v849_v57 = vpop.permute.xlu1 %848  ;;  %v4990_v1 = vpack.c.bf16 %v845_v54, %v829_v21 }
 0x3da   :  { %v856_v5 = vsel %vm162_vm2, %v847_v56, %v849_v57 }
 0x3db   :  { %4973 = vmatpush1.bf16.msra.mxu0 %v4972_v10  ;;  %4991 = vmatprep.subr.bf16.mxu1 %v4990_v1  ;;  %v859_v49 = vmul.f32 %v856_v5, %v6052_v62 }
 0x3dc   :  { %4993 = vmatpush1.bf16.msra.mxu1 %v4992_v16  ;;  %v851_v50 = vpop.permute.xlu0 %850 }
 0x3dd   :  { %v853_v7 = vpop.permute.xlu1 %852  ;;  %v855_v52 = vsel %vm162_vm2, %v849_v57, %v851_v50 }
 0x3de   :  { %v854_v58 = vsel %vm162_vm2, %v851_v50, %v853_v7  ;;  %v857_v16 = vsel %vm162_vm2, %v853_v7, %v847_v56  ;;  %v860_v50 = vmul.f32 %v855_v52, %v6066_v14 }
 0x3df   :  { %v858_v5 = vmul.f32 %v857_v16, %v6062_v13  ;;  %v861_v56 = vmul.f32 %v854_v58, %v6070_v19 }
 0x3e0   :  { %v863_v0 = vpop.permute.xlu0 %862 }
 0x3e1   :  { %v865_v48 = vpop.permute.xlu1 %864 }
 0x3e2   :  { %v872_v59 = vsel %vm195_vm3, %v863_v0, %v865_v48 }
 0x3e3   :  { %v875_v17 = vmul.f32 %v872_v59, %v6056_v63 }
 0x3e4   :  { %v867_v2 = vpop.permute.xlu0 %866 }
 0x3e5   :  { %v871_v21 = vsel %vm195_vm3, %v865_v48, %v867_v2  ;;  %v869_v51 = vpop.permute.xlu1 %868  ;;  %v4974_v54 = vpack.c.bf16 %v875_v17, %v859_v49 }
 0x3e6   :  { %v876_v43 = vmul.f32 %v871_v21, %v6082_v33  ;;  %v870_v10 = vsel %vm195_vm3, %v867_v2, %v869_v51  ;;  %v873_v1 = vsel %vm195_vm3, %v869_v51, %v863_v0 }
 0x3e7   :  { %v874_v7 = vmul.f32 %v873_v1, %v6078_v32  ;;  %v877_v57 = vmul.f32 %v870_v10, %v6090_v40  ;;  %4975 = vmatprep.subr.bf16.mxu0 %v4974_v54 }
 0x3e8   :  { %v879_v48 = vpop.permute.xlu0 %878  ;;  %v4996_v21 = vpack.c.bf16 %v876_v43, %v860_v50 }
 0x3e9   :  { %v4976_v59 = vpack.c.bf16 %v874_v7, %v858_v5  ;;  %v881_v49 = vpop.permute.xlu1 %880  ;;  %v4994_v17 = vpack.c.bf16 %v877_v57, %v861_v56 }
 0x3ea   :  { %v888_v2 = vsel %vm228_vm4, %v879_v48, %v881_v49 }
 0x3eb   :  { %4977 = vmatpush1.bf16.msra.mxu0 %v4976_v59  ;;  %4995 = vmatprep.subr.bf16.mxu1 %v4994_v17  ;;  %v890_v58 = vmul.f32 %v888_v2, %v6112_v11 }
 0x3ec   :  { %4997 = vmatpush1.bf16.msra.mxu1 %v4996_v21  ;;  %v883_v0 = vpop.permute.xlu0 %882 }
 0x3ed   :  { %v887_v16 = vsel %vm228_vm4, %v881_v49, %v883_v0  ;;  %v885_v51 = vpop.permute.xlu1 %884  ;;  %v4980_v7 = vpack.c.bf16 %v890_v58, %v6441_v61 }
 0x3ee   :  { %v891_v52 = vmul.f32 %v887_v16, %v6122_v27  ;;  %v886_v54 = vsel %vm228_vm4, %v883_v0, %v885_v51  ;;  %v889_v43 = vsel %vm228_vm4, %v885_v51, %v879_v48 }
 0x3ef   :  { %v892_v10 = vmul.f32 %v886_v54, %v6126_v28  ;;  %v893_v1 = vmul.f32 %v889_v43, %v6116_v20 }
 0x3f0   :  { %v895_v5 = vpop.permute.xlu0 %894  ;;  %v4978_v56 = vpack.c.bf16 %v891_v52, %v6444_v25 }
 0x3f1   :  { %v5000_v57 = vpack.c.bf16 %v892_v10, %v6455_v8  ;;  %v897_v50 = vpop.permute.xlu1 %896  ;;  %v4998_v59 = vpack.c.bf16 %v893_v1, %v6458_v9 }
 0x3f2   :  { %4979 = vmatprep.subr.bf16.mxu0 %v4978_v56  ;;  %v904_v2 = vsel %vm261_vm6, %v895_v5, %v897_v50 }
 0x3f3   :  { %4981 = vmatpush1.bf16.msra.mxu0 %v4980_v7  ;;  %4999 = vmatprep.subr.bf16.mxu1 %v4998_v59  ;;  %v906_v58 = vmul.f32 %v904_v2, %v6186_v42 }
 0x3f4   :  { %5001 = vmatpush1.bf16.msra.mxu1 %v5000_v57  ;;  %v899_v49 = vpop.permute.xlu0 %898 }
 0x3f5   :  { %v901_v48 = vpop.permute.xlu1 %900  ;;  %v903_v61 = vsel %vm261_vm6, %v897_v50, %v899_v49 }
 0x3f6   :  { %v902_v8 = vsel %vm261_vm6, %v899_v49, %v901_v48  ;;  %v905_v9 = vsel %vm261_vm6, %v901_v48, %v895_v5  ;;  %v907_v54 = vmul.f32 %v903_v61, %v6156_v4 }
 0x3f7   :  { %v908_v5 = vmul.f32 %v902_v8, %v6162_v12  ;;  %v909_v56 = vmul.f32 %v905_v9, %v6152_v3 }
 0x3f8   :  { %v911_v17 = vpop.permute.xlu0 %910 }
 0x3f9   :  { %v913_v21 = vpop.permute.xlu1 %912 }
 0x3fa   :  { %v920_v25 = vsel %vm294_vm5, %v911_v17, %v913_v21 }
 0x3fb   :  { %v922_v16 = vmul.f32 %v920_v25, %v6168_v26 }
 0x3fc   :  { %v915_v0 = vpop.permute.xlu0 %914 }
 0x3fd   :  { %v919_v51 = vsel %vm294_vm5, %v913_v21, %v915_v0  ;;  %v917_v52 = vpop.permute.xlu1 %916  ;;  %v4984_v49 = vpack.c.bf16 %v922_v16, %v906_v58 }
 0x3fe   :  { %v923_v43 = vmul.f32 %v919_v51, %v6178_v38  ;;  %v918_v10 = vsel %vm294_vm5, %v915_v0, %v917_v52  ;;  %v921_v1 = vsel %vm294_vm5, %v917_v52, %v911_v17 }
 0x3ff   :  { %v924_v7 = vmul.f32 %v918_v10, %v6182_v41  ;;  %v925_v57 = vmul.f32 %v921_v1, %v6174_v37 }
 0x400   :  { %v927_v50 = vpop.permute.xlu0 %926  ;;  %v4982_v59 = vpack.c.bf16 %v923_v43, %v907_v54 }
 0x401   :  { %v5004_v48 = vpack.c.bf16 %v924_v7, %v908_v5  ;;  %v929_v21 = vpop.permute.xlu1 %928  ;;  %v5002_v2 = vpack.c.bf16 %v925_v57, %v909_v56 }
 0x402   :  { %v936_v25 = vsel %vm327_vm7, %v927_v50, %v929_v21  ;;  %4983 = vmatprep.subr.bf16.mxu0 %v4982_v59  ;;  %v6710_v59 = vld [vmem:[#allocation2 + $0x78] sm:$0xff] }
 0x403   :  { %4985 = vmatpush1.bf16.msra.mxu0 %v4984_v49  ;;  %5003 = vmatprep.subr.bf16.mxu1 %v5002_v2  ;;  %v938_v61 = vmul.f32 %v6210_v6, %v936_v25  ;;  %v8508_v49 = vmov 80  }
 0x404   :  { %5005 = vmatpush1.bf16.msra.mxu1 %v5004_v48  ;;  %v931_v17 = vpop.permute.xlu0 %930 }
 0x405   :  { %v935_v8 = vsel %vm327_vm7, %v929_v21, %v931_v17  ;;  %v933_v9 = vpop.permute.xlu1 %932  ;;  %v4988_v6 = vpack.c.bf16 %v6436_v60, %v938_v61 }
 0x406   :  { %v939_v0 = vmul.f32 %v6222_v22, %v935_v8  ;;  %v934_v58 = vsel %vm327_vm7, %v931_v17, %v933_v9  ;;  %v937_v16 = vsel %vm327_vm7, %v933_v9, %v927_v50  ;;  %v943_v50 = vld [vmem:[#allocation2 + $0x60] sm:$0xff] }
 0x407   :  { %v940_v51 = vmul.f32 %v6227_v45, %v934_v58  ;;  %v941_v52 = vmul.f32 %v6217_v44, %v937_v16 }
 0x408   :  { %v4986_v54 = vpack.c.bf16 %v6438_v18, %v939_v0 }
 0x409   :  { %v5008_v43 = vpack.c.bf16 %v6446_v47, %v940_v51  ;;  %v5006_v10 = vpack.c.bf16 %v6450_v53, %v941_v52 }
 0x40a   :  { %4987 = vmatprep.subr.bf16.mxu0 %v4986_v54 }
 0x40b   :  { %4989 = vmatpush1.bf16.msra.mxu0 %v4988_v6  ;;  %5007 = vmatprep.subr.bf16.mxu1 %v5006_v10 }
 0x40c   :  { %5009 = vmatpush1.bf16.msra.mxu1 %v5008_v43 }
 0x40e   :  { %4452 = vmatmul.mubr.msk.f32.vlgmr.msra.gmra.mrb[4].mxu0 %vm364_vm8, %v6520_v36 }
 0x40f   :  { %4454 = vmatmul.mubr.msk.f32.vlgmr.msra.gmra.mrb[4].mxu1 %vm364_vm8, %v6520_v36  ;;  %1028 = vmatprep.mubr.f32.mxu0 %v8506_v46 }
 0x410   :  { %1105 = vmatprep.mubr.f32.mxu1 %v8506_v46 }
 0x412   :  { %4453 = vmatmul.mubr.msk.f32.gmra.mrb[6].mxu0 %vm364_vm8, %v943_v50 }
 0x413   :  { %4455 = vmatmul.mubr.msk.f32.gmra.mrb[6].mxu1 %vm364_vm8, %v943_v50  ;;  %1316 = vmatprep.mubr.f32.mxu0 %v8506_v46 }
 0x414   :  { %1387 = vmatprep.mubr.f32.mxu1 %v8506_v46 }
 0x415   :  { %v947_v44 = vpop.permute.xlu0 %946 }
 0x4e1   :  { %v1024_v22 = vpop.f32.mrb[4].mxu0 }
 0x4e2   :  { %v1025_v45 = vadd.f32 %v1024_v22, %v947_v44  ;;  %v1026_v60 = vpop.f32.mrb[5].mxu0  ;;  %v1101_v18 = vpop.f32.mrb[4].mxu1 }
 0x4e3   :  { %v1027_v47 = vadd.f32 %v1026_v60, %v947_v44  ;;  %v1103_v53 = vpop.f32.mrb[5].mxu1  ;;  %v1102_v5 = vadd.f32 %v1101_v18, %v947_v44 }
 0x4e4   :  { %v6634_v1 = vmax.f32 %v1025_v45, 0.0  ;;  %v1104_v7 = vadd.f32 %v1103_v53, %v947_v44 }
 0x4e5   :  { %v6636_v56 = vmax.f32 %v1027_v47, 0.0  ;;  %v6642_v36 = vmax.f32 %v1102_v5, 0.0 }
 0x4e6   :  { %1116 = vrot.lane.b32.xlu1 %v6634_v1, %s5749_s30  ;;  %v6644_v57 = vmax.f32 %v1104_v7, 0.0 }
 0x4e7   :  { %1118 = vrot.lane.b32.xlu0 %v6636_v56, %s5749_s30 }
 0x4ea   :  { %1120 = vrot.lane.b32.xlu1 %v6642_v36, %s5749_s30 }
 0x4eb   :  { %1122 = vrot.lane.b32.xlu0 %v6644_v57, %s5749_s30 }
 0x4ee   :  { %1132 = vrot.lane.b32.xlu1 %v6634_v1, %s5750_s0 }
 0x4ef   :  { %1134 = vrot.lane.b32.xlu0 %v6636_v56, %s5750_s0 }
 0x4f2   :  { %1136 = vrot.lane.b32.xlu1 %v6642_v36, %s5750_s0 }
 0x4f3   :  { %1138 = vrot.lane.b32.xlu0 %v6644_v57, %s5750_s0 }
 0x4f6   :  { %1148 = vrot.lane.b32.xlu1 %v6634_v1, %s5751_s9 }
 0x4f7   :  { %1150 = vrot.lane.b32.xlu0 %v6636_v56, %s5751_s9 }
 0x4fa   :  { %1152 = vrot.lane.b32.xlu1 %v6642_v36, %s5751_s9 }
 0x4fb   :  { %1154 = vrot.lane.b32.xlu0 %v6644_v57, %s5751_s9 }
 0x4fe   :  { %1164 = vrot.lane.b32.xlu1 %v6634_v1, %s5752_s10 }
 0x4ff   :  { %1166 = vrot.lane.b32.xlu0 %v6636_v56, %s5752_s10 }
 0x502   :  { %1168 = vrot.lane.b32.xlu1 %v6642_v36, %s5752_s10 }
 0x503   :  { %1170 = vrot.lane.b32.xlu0 %v6644_v57, %s5752_s10 }
 0x506   :  { %1180 = vrot.lane.b32.xlu1 %v6634_v1, %s5753_s11 }
 0x507   :  { %1182 = vrot.lane.b32.xlu0 %v6636_v56, %s5753_s11 }
 0x50a   :  { %1184 = vrot.lane.b32.xlu1 %v6642_v36, %s5753_s11 }
 0x50b   :  { %1186 = vrot.lane.b32.xlu0 %v6644_v57, %s5753_s11 }
 0x50e   :  { %1196 = vrot.lane.b32.xlu1 %v6634_v1, %s5754_s12 }
 0x50f   :  { %1198 = vrot.lane.b32.xlu0 %v6636_v56, %s5754_s12 }
 0x512   :  { %1200 = vrot.lane.b32.xlu1 %v6642_v36, %s5754_s12 }
 0x513   :  { %1202 = vrot.lane.b32.xlu0 %v6644_v57, %s5754_s12 }
 0x516   :  { %1212 = vrot.lane.b32.xlu1 %v6634_v1, %s5755_s13 }
 0x517   :  { %1214 = vrot.lane.b32.xlu0 %v6636_v56, %s5755_s13 }
 0x51a   :  { %1216 = vrot.lane.b32.xlu1 %v6642_v36, %s5755_s13 }
 0x51b   :  { %1218 = vrot.lane.b32.xlu0 %v6644_v57, %s5755_s13 }
 0x51e   :  { %1228 = vrot.lane.b32.xlu1 %v6634_v1, %s5757_s14 }
 0x51f   :  { %1230 = vrot.lane.b32.xlu0 %v6636_v56, %s5757_s14 }
 0x522   :  { %1232 = vrot.lane.b32.xlu1 %v6642_v36, %s5757_s14 }
 0x523   :  { %1234 = vrot.lane.b32.xlu0 %v6644_v57, %s5757_s14 }
 0x526   :  { %951 = vperm.xlu1 %5645, %v943_v50  }
 0x527   :  { %1247 = vperm.xlu0 %5646, %v6710_v59  }
 0x52a   :  { %5648 = vset.pattern.permute.xlu1 %v8507_v55 }
 0x52b   :  { %5647 = vset.pattern.permute.xlu0 %v8508_v49 }
 0x558   :  { %v1117_v48 = vpop.permute.xlu1 %1116 }
 0x559   :  { %v1119_v21 = vpop.permute.xlu0 %1118 }
 0x55a   :  { %v1126_v17 = vsel %vm96_vm0, %v1117_v48, %v1119_v21 }
 0x55b   :  { %v1129_v0 = vmul.f32 %v1126_v17, %v5983_v23 }
 0x55c   :  { %v1121_v2 = vpop.permute.xlu1 %1120 }
 0x55d   :  { %v1123_v25 = vpop.permute.xlu0 %1122  ;;  %v1125_v54 = vsel %vm96_vm0, %v1119_v21, %v1121_v2 }
 0x55e   :  { %v1124_v16 = vsel %vm96_vm0, %v1121_v2, %v1123_v25  ;;  %v1127_v51 = vsel %vm96_vm0, %v1123_v25, %v1117_v48  ;;  %v1130_v5 = vmul.f32 %v1125_v54, %v6018_v35 }
 0x55f   :  { %v1128_v60 = vmul.f32 %v1127_v51, %v5998_v29  ;;  %v1131_v18 = vmul.f32 %v1124_v16, %v6006_v31 }
 0x560   :  { %v1133_v61 = vpop.permute.xlu1 %1132 }
 0x561   :  { %v1135_v8 = vpop.permute.xlu0 %1134 }
 0x562   :  { %v1142_v9 = vsel %vm129_vm1, %v1133_v61, %v1135_v8 }
 0x563   :  { %v1145_v58 = vmul.f32 %v1142_v9, %v5987_v24 }
 0x564   :  { %v1137_v52 = vpop.permute.xlu1 %1136 }
 0x565   :  { %v1141_v6 = vsel %vm129_vm1, %v1135_v8, %v1137_v52  ;;  %v1139_v43 = vpop.permute.xlu0 %1138  ;;  %v5010_v10 = vpack.c.bf16 %v1145_v58, %v1129_v0 }
 0x566   :  { %v1146_v44 = vmul.f32 %v1141_v6, %v6026_v39  ;;  %v1140_v22 = vsel %vm129_vm1, %v1137_v52, %v1139_v43  ;;  %v1143_v45 = vsel %vm129_vm1, %v1139_v43, %v1133_v61 }
 0x567   :  { %v1144_v47 = vmul.f32 %v1143_v45, %v6002_v30  ;;  %v1147_v53 = vmul.f32 %v1140_v22, %v6014_v34  ;;  %5011 = vmatprep.subr.bf16.mxu0 %v5010_v10 }
 0x568   :  { %v1149_v7 = vpop.permute.xlu1 %1148  ;;  %v5028_v2 = vpack.c.bf16 %v1146_v44, %v1130_v5 }
 0x569   :  { %v5012_v50 = vpack.c.bf16 %v1144_v47, %v1128_v60  ;;  %v1151_v48 = vpop.permute.xlu0 %1150  ;;  %v5026_v21 = vpack.c.bf16 %v1147_v53, %v1131_v18 }
 0x56a   :  { %v1158_v61 = vsel %vm162_vm2, %v1149_v7, %v1151_v48 }
 0x56b   :  { %5013 = vmatpush1.bf16.msra.mxu0 %v5012_v50  ;;  %5027 = vmatprep.subr.bf16.mxu1 %v5026_v21  ;;  %v1161_v58 = vmul.f32 %v1158_v61, %v6052_v62 }
 0x56c   :  { %5029 = vmatpush1.bf16.msra.mxu1 %v5028_v2  ;;  %v1153_v25 = vpop.permute.xlu1 %1152 }
 0x56d   :  { %v1155_v17 = vpop.permute.xlu0 %1154  ;;  %v1157_v6 = vsel %vm162_vm2, %v1151_v48, %v1153_v25 }
 0x56e   :  { %v1156_v51 = vsel %vm162_vm2, %v1153_v25, %v1155_v17  ;;  %v1159_v52 = vsel %vm162_vm2, %v1155_v17, %v1149_v7  ;;  %v1162_v7 = vmul.f32 %v1157_v6, %v6066_v14 }
 0x56f   :  { %v1160_v18 = vmul.f32 %v1159_v52, %v6062_v13  ;;  %v1163_v47 = vmul.f32 %v1156_v51, %v6070_v19 }
 0x570   :  { %v1165_v8 = vpop.permute.xlu1 %1164 }
 0x571   :  { %v1167_v9 = vpop.permute.xlu0 %1166 }
 0x572   :  { %v1174_v0 = vsel %vm195_vm3, %v1165_v8, %v1167_v9 }
 0x573   :  { %v1177_v16 = vmul.f32 %v1174_v0, %v6056_v63 }
 0x574   :  { %v1169_v54 = vpop.permute.xlu1 %1168 }
 0x575   :  { %v1173_v43 = vsel %vm195_vm3, %v1167_v9, %v1169_v54  ;;  %v1171_v10 = vpop.permute.xlu0 %1170  ;;  %v5014_v44 = vpack.c.bf16 %v1177_v16, %v1161_v58 }
 0x576   :  { %v1178_v22 = vmul.f32 %v1173_v43, %v6082_v33  ;;  %v1172_v45 = vsel %vm195_vm3, %v1169_v54, %v1171_v10  ;;  %v1175_v60 = vsel %vm195_vm3, %v1171_v10, %v1165_v8 }
 0x577   :  { %v1176_v53 = vmul.f32 %v1175_v60, %v6078_v32  ;;  %v1179_v5 = vmul.f32 %v1172_v45, %v6090_v40  ;;  %5015 = vmatprep.subr.bf16.mxu0 %v5014_v44 }
 0x578   :  { %v1181_v50 = vpop.permute.xlu1 %1180  ;;  %v5032_v25 = vpack.c.bf16 %v1178_v22, %v1162_v7 }
 0x579   :  { %v5016_v48 = vpack.c.bf16 %v1176_v53, %v1160_v18  ;;  %v1183_v21 = vpop.permute.xlu0 %1182  ;;  %v5030_v2 = vpack.c.bf16 %v1179_v5, %v1163_v47 }
 0x57a   :  { %v1190_v17 = vsel %vm228_vm4, %v1181_v50, %v1183_v21 }
 0x57b   :  { %5017 = vmatpush1.bf16.msra.mxu0 %v5016_v48  ;;  %5031 = vmatprep.subr.bf16.mxu1 %v5030_v2  ;;  %v1192_v8 = vmul.f32 %v1190_v17, %v6112_v11 }
 0x57c   :  { %5033 = vmatpush1.bf16.msra.mxu1 %v5032_v25  ;;  %v1185_v61 = vpop.permute.xlu1 %1184 }
 0x57d   :  { %v1189_v9 = vsel %vm228_vm4, %v1183_v21, %v1185_v61  ;;  %v1187_v0 = vpop.permute.xlu0 %1186  ;;  %v5020_v10 = vpack.c.bf16 %v1192_v8, %v6634_v1 }
 0x57e   :  { %v1193_v58 = vmul.f32 %v1189_v9, %v6122_v27  ;;  %v1188_v16 = vsel %vm228_vm4, %v1185_v61, %v1187_v0  ;;  %v1191_v51 = vsel %vm228_vm4, %v1187_v0, %v1181_v50 }
 0x57f   :  { %v1194_v52 = vmul.f32 %v1188_v16, %v6126_v28  ;;  %v1195_v54 = vmul.f32 %v1191_v51, %v6116_v20 }
 0x580   :  { %v1197_v6 = vpop.permute.xlu1 %1196  ;;  %v5018_v43 = vpack.c.bf16 %v1193_v58, %v6636_v56 }
 0x581   :  { %v5036_v44 = vpack.c.bf16 %v1194_v52, %v6642_v36  ;;  %v1199_v22 = vpop.permute.xlu0 %1198  ;;  %v5034_v45 = vpack.c.bf16 %v1195_v54, %v6644_v57 }
 0x582   :  { %5019 = vmatprep.subr.bf16.mxu0 %v5018_v43  ;;  %v1206_v5 = vsel %vm261_vm6, %v1197_v6, %v1199_v22 }
 0x583   :  { %5021 = vmatpush1.bf16.msra.mxu0 %v5020_v10  ;;  %5035 = vmatprep.subr.bf16.mxu1 %v5034_v45  ;;  %v1208_v50 = vmul.f32 %v1206_v5, %v6186_v42 }
 0x584   :  { %5037 = vmatpush1.bf16.msra.mxu1 %v5036_v44  ;;  %v1201_v60 = vpop.permute.xlu1 %1200  ;;  %v1414_v44 = vld [vmem:[#allocation4 + $0x80] sm:$0xff] }
 0x585   :  { %v1203_v18 = vpop.permute.xlu0 %1202  ;;  %v1205_v1 = vsel %vm261_vm6, %v1199_v22, %v1201_v60 }
 0x586   :  { %v1204_v36 = vsel %vm261_vm6, %v1201_v60, %v1203_v18  ;;  %v1207_v57 = vsel %vm261_vm6, %v1203_v18, %v1197_v6  ;;  %v1209_v25 = vmul.f32 %v1205_v1, %v6156_v4  ;;  %v1415_v60 = vld [vmem:[#allocation4 + $0x88] sm:$0xff]  ;;  %v1398_v18 = vld [vmem:[#allocation4] sm:$0xff] }
 0x587   :  { %v1210_v9 = vmul.f32 %v1204_v36, %v6162_v12  ;;  %v1211_v0 = vmul.f32 %v1207_v57, %v6152_v3  ;;  %v1447_v1 = vld [vmem:[#allocation4 + $0x188] sm:$0xff]  ;;  %v1430_v36 = vld [vmem:[#allocation4 + $0x100] sm:$0xff] }
 0x588   :  { %v1213_v47 = vpop.permute.xlu1 %1212 }
 0x589   :  { %v1215_v53 = vpop.permute.xlu0 %1214 }
 0x58a   :  { %v1222_v56 = vsel %vm294_vm5, %v1213_v47, %v1215_v53 }
 0x58b   :  { %v1224_v48 = vmul.f32 %v1222_v56, %v6168_v26  ;;  %v1446_v56 = vld [vmem:[#allocation4 + $0x180] sm:$0xff] }
 0x58c   :  { %v1217_v7 = vpop.permute.xlu1 %1216 }
 0x58d   :  { %v1221_v21 = vsel %vm294_vm5, %v1215_v53, %v1217_v7  ;;  %v1219_v2 = vpop.permute.xlu0 %1218  ;;  %v5024_v54 = vpack.c.bf16 %v1224_v48, %v1208_v50  ;;  %v5657_v50 = vld [vmem:[%s8417_s2 + $0x28] ss:$0 sm:$0xff] }
 0x58e   :  { %v1225_v17 = vmul.f32 %v1221_v21, %v6178_v38  ;;  %v1220_v61 = vsel %vm294_vm5, %v1217_v7, %v1219_v2  ;;  %v1223_v8 = vsel %vm294_vm5, %v1219_v2, %v1213_v47  ;;  %v1399_v47 = vld [vmem:[#allocation4 + $0x8] sm:$0xff]  ;;  %v1416_v2 = vld [vmem:[#allocation4 + $0x90] sm:$0xff] }
 0x58f   :  { %v1226_v58 = vmul.f32 %v1220_v61, %v6182_v41  ;;  %v1227_v16 = vmul.f32 %v1223_v8, %v6174_v37  ;;  %v1431_v21 = vld [vmem:[#allocation4 + $0x108] sm:$0xff] }
 0x590   :  { %v1229_v51 = vpop.permute.xlu1 %1228  ;;  %v5022_v52 = vpack.c.bf16 %v1225_v17, %v1209_v25  ;;  %v1417_v25 = vld [vmem:[#allocation4 + $0x98] sm:$0xff]  ;;  %v5659_v8 = vld [vmem:[%s8417_s2 + $0x30] ss:$0 sm:$0xff] }
 0x591   :  { %v5040_v6 = vpack.c.bf16 %v1226_v58, %v1210_v9  ;;  %v1231_v43 = vpop.permute.xlu0 %1230  ;;  %v5038_v10 = vpack.c.bf16 %v1227_v16, %v1211_v0  ;;  %v5658_v17 = vld [vmem:[%s8417_s2 + $0x20] ss:$0 sm:$0xff]  ;;  %v5660_v0 = vld [vmem:[%s8417_s2 + $0x38] ss:$0 sm:$0xff]  ;;  %v5042_v16 = vpack.c.bf16 %v1415_v60, %v1414_v44  ;;  %v1419_v44 = vld [vmem:[#allocation4 + $0xa8] sm:$0xff] }
 0x592   :  { %5023 = vmatprep.subr.bf16.mxu0 %v5022_v52  ;;  %v1238_v22 = vsel %vm327_vm7, %v1229_v51, %v1231_v43  ;;  %v1449_v52 = vld [vmem:[#allocation4 + $0x198] sm:$0xff]  ;;  %v1450_v60 = vld [vmem:[#allocation4 + $0x1a0] sm:$0xff] }
 0x593   :  { %5025 = vmatpush1.bf16.msra.mxu0 %v5024_v54  ;;  %5039 = vmatprep.subr.bf16.mxu1 %v5038_v10  ;;  %v1240_v61 = vmul.f32 %v5658_v17, %v1238_v22  ;;  %v5044_v54 = vpack.c.bf16 %v1399_v47, %v1398_v18  ;;  %v5046_v10 = vpack.c.bf16 %v1417_v25, %v1416_v2  ;;  %v1400_v22 = vld [vmem:[#allocation4 + $0x10] sm:$0xff]  ;;  %v1451_v18 = vld [vmem:[#allocation4 + $0x1a8] sm:$0xff]  ;;  %v1421_v17 = vld [vmem:[#allocation4 + $0xb8] sm:$0xff] }
 0x594   :  { %5041 = vmatpush1.bf16.msra.mxu1 %v5040_v6  ;;  %v1233_v45 = vpop.permute.xlu1 %1232  ;;  %v5074_v6 = vpack.c.bf16 %v1447_v1, %v1446_v56  ;;  %v1435_v2 = vld [vmem:[#allocation4 + $0x128] sm:$0xff]  ;;  %v1420_v25 = vld [vmem:[#allocation4 + $0xb0] sm:$0xff] }
 0x595   :  { %v1237_v53 = vsel %vm327_vm7, %v1231_v43, %v1233_v45  ;;  %v1235_v5 = vpop.permute.xlu0 %1234  ;;  %v5076_v43 = vpack.c.bf16 %v1431_v21, %v1430_v36  ;;  %v1402_v36 = vld [vmem:[#allocation4 + $0x20] sm:$0xff]  ;;  %v5082_v21 = vpack.c.bf16 %v1451_v18, %v1450_v60  ;;  %v1439_v18 = vld [vmem:[#allocation4 + $0x148] sm:$0xff] }
 0x596   :  { %v1236_v57 = vsel %vm327_vm7, %v1233_v45, %v1235_v5  ;;  %v1239_v7 = vsel %vm327_vm7, %v1235_v5, %v1229_v51  ;;  %v1241_v48 = vmul.f32 %v5657_v50, %v1237_v53  ;;  %v1448_v51 = vld [vmem:[#allocation4 + $0x190] sm:$0xff]  ;;  %v1401_v45 = vld [vmem:[#allocation4 + $0x18] sm:$0xff]  ;;  %v1403_v50 = vld [vmem:[#allocation4 + $0x28] sm:$0xff] }
 0x597   :  { %v1242_v9 = vmul.f32 %v5659_v8, %v1236_v57  ;;  %v1243_v58 = vmul.f32 %v5660_v0, %v1239_v7  ;;  %v1432_v53 = vld [vmem:[#allocation4 + $0x110] sm:$0xff]  ;;  %v5078_v5 = vpack.c.bf16 %v1449_v52, %v1448_v51  ;;  %v1433_v57 = vld [vmem:[#allocation4 + $0x118] sm:$0xff]  ;;  %v1418_v7 = vld [vmem:[#allocation4 + $0xa0] sm:$0xff]  ;;  %v5048_v47 = vpack.c.bf16 %v1401_v45, %v1400_v22 }
 0x598   :  { %1268 = vmatprep.subr.mxu0 %v1241_v48  ;;  %v5080_v56 = vpack.c.bf16 %v1433_v57, %v1432_v53  ;;  %v5050_v1 = vpack.c.bf16 %v1419_v44, %v1418_v7  ;;  %v1434_v48 = vld [vmem:[#allocation4 + $0x120] sm:$0xff]  ;;  %v5052_v8 = vpack.c.bf16 %v1403_v50, %v1402_v36  ;;  %v5054_v0 = vpack.c.bf16 %v1421_v17, %v1420_v25  ;;  %v1436_v51 = vld [vmem:[#allocation4 + $0x130] sm:$0xff]  ;;  %v1455_v22 = vld [vmem:[#allocation4 + $0x1c8] sm:$0xff] }
 0x599   :  { %1269 = vmatpush1.msra.mxu0 %v1240_v61  ;;  %1339 = vmatprep.subr.mxu1 %v1243_v58  ;;  %v1452_v61 = vld [vmem:[#allocation4 + $0x1b0] sm:$0xff]  ;;  %v1406_v57 = vld [vmem:[#allocation4 + $0x40] sm:$0xff]  ;;  %v1407_v7 = vld [vmem:[#allocation4 + $0x48] sm:$0xff] }
 0x59a   :  { %4456 = vmatmul.mubr.msk.f32.vlgmr.msra.gmra.mrb[6].mxu0 %vm661_vm9, %v6710_v59  ;;  %1340 = vmatpush1.msra.mxu1 %v1242_v9  ;;  %v5084_v9 = vpack.c.bf16 %v1435_v2, %v1434_v48  ;;  %v1404_v58 = vld [vmem:[#allocation4 + $0x30] sm:$0xff]  ;;  %v1438_v44 = vld [vmem:[#allocation4 + $0x140] sm:$0xff]  ;;  %v1457_v36 = vld [vmem:[#allocation4 + $0x1d8] sm:$0xff]  ;;  %v5060_v50 = vpack.c.bf16 %v1407_v7, %v1406_v57 }
 0x59b   :  { %4457 = vmatmul.mubr.msk.f32.vlgmr.msra.gmra.mrb[6].mxu1 %vm661_vm9, %v6710_v59  ;;  %5043 = vmatprep.subr.bf16.mxu0 %v5042_v16  ;;  %v1453_v59 = vld [vmem:[#allocation4 + $0x1b8] sm:$0xff]  ;;  %v5092_v48 = vpack.c.bf16 %v1439_v18, %v1438_v44  ;;  %v1408_v2 = vld [vmem:[#allocation4 + $0x50] sm:$0xff] }
 0x59c   :  { %5045 = vmatpush3.bf16.msra.mxu0 %v5044_v54  ;;  %5075 = vmatprep.subr.bf16.mxu1 %v5074_v6  ;;  %v1405_v16 = vld [vmem:[#allocation4 + $0x38] sm:$0xff]  ;;  %v5086_v52 = vpack.c.bf16 %v1453_v59, %v1452_v61  ;;  %v1422_v6 = vld [vmem:[#allocation4 + $0xc0] sm:$0xff]  ;;  %v1440_v17 = vld [vmem:[#allocation4 + $0x150] sm:$0xff] }
 0x59d   :  { %5077 = vmatpush3.bf16.msra.mxu1 %v5076_v43  ;;  %5047 = vmatprep.subr.bf16.mxu0 %v5046_v10  ;;  %v1437_v54 = vld [vmem:[#allocation4 + $0x138] sm:$0xff]  ;;  %v1423_v43 = vld [vmem:[#allocation4 + $0xc8] sm:$0xff]  ;;  %v1454_v10 = vld [vmem:[#allocation4 + $0x1c0] sm:$0xff]  ;;  %v5056_v45 = vpack.c.bf16 %v1405_v16, %v1404_v58 }
 0x59e   :  { %5079 = vmatprep.subr.bf16.mxu1 %v5078_v5  ;;  %v5088_v53 = vpack.c.bf16 %v1437_v54, %v1436_v51  ;;  %v5058_v5 = vpack.c.bf16 %v1423_v43, %v1422_v6  ;;  %v5090_v60 = vpack.c.bf16 %v1455_v22, %v1454_v10  ;;  %v1409_v25 = vld [vmem:[#allocation4 + $0x58] sm:$0xff]  ;;  %v1459_v58 = vld [vmem:[#allocation4 + $0x1e8] sm:$0xff]  ;;  %v1410_v54 = vld [vmem:[#allocation4 + $0x60] sm:$0xff] }
 0x59f   :  { %v1441_v59 = vld [vmem:[#allocation4 + $0x158] sm:$0xff]  ;;  %v5064_v16 = vpack.c.bf16 %v1409_v25, %v1408_v2  ;;  %v1411_v6 = vld [vmem:[#allocation4 + $0x68] sm:$0xff]  ;;  %v1442_v10 = vld [vmem:[#allocation4 + $0x160] sm:$0xff] }
 0x5a0   :  { %5049 = vmatpush3.bf16.msra.mxu0 %v5048_v47  ;;  %v1424_v47 = vld [vmem:[#allocation4 + $0xd0] sm:$0xff]  ;;  %v5096_v51 = vpack.c.bf16 %v1441_v59, %v1440_v17  ;;  %v1443_v22 = vld [vmem:[#allocation4 + $0x168] sm:$0xff]  ;;  %v1429_v57 = vld [vmem:[#allocation4 + $0xf8] sm:$0xff] }
 0x5a1   :  { %5081 = vmatpush3.bf16.msra.mxu1 %v5080_v56  ;;  %5051 = vmatprep.subr.bf16.mxu0 %v5050_v1  ;;  %v1425_v56 = vld [vmem:[#allocation4 + $0xd8] sm:$0xff]  ;;  %v1456_v1 = vld [vmem:[#allocation4 + $0x1d0] sm:$0xff] }
 0x5a2   :  { %5083 = vmatprep.subr.bf16.mxu1 %v5082_v21  ;;  %v5062_v21 = vpack.c.bf16 %v1425_v56, %v1424_v47  ;;  %v5094_v61 = vpack.c.bf16 %v1457_v36, %v1456_v1  ;;  %v1412_v44 = vld [vmem:[#allocation4 + $0x70] sm:$0xff]  ;;  %v1461_v56 = vld [vmem:[#allocation4 + $0x1f8] sm:$0xff] }
 0x5a3   :  { %v1460_v18 = vld [vmem:[#allocation4 + $0x1f0] sm:$0xff]  ;;  %v1445_v36 = vld [vmem:[#allocation4 + $0x178] sm:$0xff] }
 0x5a4   :  { %5053 = vmatpush3.bf16.msra.mxu0 %v5052_v8  ;;  %v1426_v8 = vld [vmem:[#allocation4 + $0xe0] sm:$0xff]  ;;  %v1444_v1 = vld [vmem:[#allocation4 + $0x170] sm:$0xff] }
 0x5a5   :  { %5085 = vmatpush3.bf16.msra.mxu1 %v5084_v9  ;;  %5055 = vmatprep.subr.bf16.mxu0 %v5054_v0  ;;  %v1427_v9 = vld [vmem:[#allocation4 + $0xe8] sm:$0xff]  ;;  %v1458_v0 = vld [vmem:[#allocation4 + $0x1e0] sm:$0xff]  ;;  %v952_v2 = vpop.permute.xlu1 %951 }
 0x5a6   :  { %5087 = vmatprep.subr.bf16.mxu1 %v5086_v52  ;;  %v5066_v52 = vpack.c.bf16 %v1427_v9, %v1426_v8  ;;  %v5098_v43 = vpack.c.bf16 %v1459_v58, %v1458_v0 }
 0x5a8   :  { %5057 = vmatpush3.bf16.msra.mxu0 %v5056_v45  ;;  %v5068_v45 = vpack.c.bf16 %v1411_v6, %v1410_v54 }
 0x5a9   :  { %5089 = vmatpush3.bf16.msra.mxu1 %v5088_v53  ;;  %5059 = vmatprep.subr.bf16.mxu0 %v5058_v5  ;;  %v5100_v53 = vpack.c.bf16 %v1443_v22, %v1442_v10  ;;  %v1428_v5 = vld [vmem:[#allocation4 + $0xf0] sm:$0xff] }
 0x5aa   :  { %5091 = vmatprep.subr.bf16.mxu1 %v5090_v60  ;;  %v5070_v7 = vpack.c.bf16 %v1429_v57, %v1428_v5  ;;  %v1413_v60 = vld [vmem:[#allocation4 + $0x78] sm:$0xff] }
 0x5ab   :  { %v5072_v47 = vpack.c.bf16 %v1413_v60, %v1412_v44  ;;  %v1602_v5 = vld [vmem:[%s8418_s3] sm:$0xff]  ;;  %v8513_v44 = vld [vmem:[#allocation9_spill] sm:$0xff] }
 0x5ac   :  { %5061 = vmatpush3.bf16.msra.mxu0 %v5060_v50  ;;  %v5102_v50 = vpack.c.bf16 %v1461_v56, %v1460_v18  ;;  %v6852_v60 = vrot.slane %v1602_v5, %v8513_v44  ;;  %v8514_v18 = vld [vmem:[#allocation10_spill] sm:$0xff]  ;;  %v8515_v56 = vld [vmem:[#allocation12_spill] sm:$0xff] }
 0x5ad   :  { %5093 = vmatpush3.bf16.msra.mxu1 %v5092_v48  ;;  %5063 = vmatprep.subr.bf16.mxu0 %v5062_v21  ;;  %v5104_v48 = vpack.c.bf16 %v1445_v36, %v1444_v1  ;;  %v1248_v21 = vpop.permute.xlu0 %1247  ;;  %v6858_v1 = vrot.slane %v1602_v5, %v8515_v56 }
 0x5ae   :  { %5095 = vmatprep.subr.bf16.mxu1 %v5094_v61  ;;  %v5573_v25 = vadd.f32 %v1248_v21, %v952_v2  ;;  %v8517_v21 = vld [vmem:[#allocation14_spill] sm:$0xff] }
 0x5af   :  { %v6864_v2 = vrot.slane %v1602_v5, %v8517_v21 }
 0x5b0   :  { %5065 = vmatpush3.bf16.msra.mxu0 %v5064_v16 }
 0x5b1   :  { %5097 = vmatpush3.bf16.msra.mxu1 %v5096_v51  ;;  %5067 = vmatprep.subr.bf16.mxu0 %v5066_v52 }
 0x5b2   :  { %5099 = vmatprep.subr.bf16.mxu1 %v5098_v43 }
 0x5b4   :  { %5069 = vmatpush3.bf16.msra.mxu0 %v5068_v45 }
 0x5b5   :  { %5101 = vmatpush3.bf16.msra.mxu1 %v5100_v53  ;;  %5071 = vmatprep.subr.bf16.mxu0 %v5070_v7  ;;  %v1661_v53 = vld [vmem:[#allocation2 + $0x120] sm:$0xff] }
 0x5b6   :  { %5103 = vmatprep.subr.bf16.mxu1 %v5102_v50  ;;  %v8516_v50 = vld [vmem:[#allocation13_spill] sm:$0xff] }
 0x5b8   :  { %5073 = vmatpush3.bf16.msra.mxu0 %v5072_v47  ;;  %v6855_v47 = vrot.slane %v1602_v5, %v8514_v18 }
 0x5b9   :  { %5105 = vmatpush3.bf16.msra.mxu1 %v5104_v48  ;;  %v6861_v48 = vrot.slane %v1602_v5, %v8516_v50 }
 0x66d   :  { %v1318_v17 = vpop.f32.mrb[6].mxu0 }
 0x66e   :  { %v1320_v61 = vpop.f32.mrb[7].mxu0  ;;  %v1389_v59 = vpop.f32.mrb[6].mxu1  ;;  %v6829_v0 = vadd.f32 %v5573_v25, %v1318_v17 }
 0x66f   :  { %v6827_v8 = vadd.f32 %v5573_v25, %v1320_v61  ;;  %v1391_v9 = vpop.f32.mrb[7].mxu1  ;;  %v6833_v16 = vadd.f32 %v5573_v25, %v1389_v59 }
 0x670   :  { %8510 = vst [vmem:[#allocation29_spill] sm:$0xff] %v6829_v0  ;;  %v6831_v58 = vadd.f32 %v5573_v25, %v1391_v9 }
 0x671   :  { %8509 = vst [vmem:[#allocation28_spill] sm:$0xff] %v6827_v8  ;;  %8512 = vst [vmem:[#allocation31_spill] sm:$0xff] %v6833_v16  ;;  %1526 = vmatprep.mubr.f32.mxu0 %v6827_v8 }
 0x672   :  { %8511 = vst [vmem:[#allocation30_spill] sm:$0xff] %v6831_v58  ;;  %1527 = vmatmul.mubr.f32.vlgmr.msra.gmra.mrb[8].mxu0 %v6829_v0  ;;  %1596 = vmatprep.mubr.f32.mxu1 %v6831_v58 }
 0x673   :  { %1597 = vmatmul.mubr.f32.vlgmr.msra.gmra.mrb[8].mxu1 %v6833_v16  ;;  %4718 = vmatprep.mubr.msk.f32.mxu0 %vm364_vm8, %v1661_v53 }
 0x674   :  { %4739 = vmatprep.mubr.msk.f32.mxu1 %vm5766_vm10, %v8506_v46 }
 0x745   :  { %v4520_v51 = vpop.f32.mrb[8].mxu0 }
 0x746   :  { %v4521_v52 = vpop.f32.mrb[9].mxu0  ;;  %v4555_v54 = vpop.f32.mrb[8].mxu1 }
 0x747   :  { %v4522_v6 = vadd.f32 %v4521_v52, %v4520_v51  ;;  %v4556_v43 = vpop.f32.mrb[9].mxu1  ;;  %v8518_v51 = vld [vmem:[#allocation19_spill] sm:$0xff] }
 0x748   :  { %v4557_v10 = vadd.f32 %v4556_v43, %v4555_v54  ;;  %v6869_v52 = vrot.slane %v1602_v5, %v8518_v51 }
 0x74a   :  { %v1599_v22 = vadd.f32 %v4557_v10, %v4522_v6  ;;  %v8519_v10 = vld [vmem:[#allocation18_spill] sm:$0xff] }
 0x74c   :  { %v1604_v45 = vmax.f32 %v1599_v22, 0.0 }
 0x74e   :  { %1619 = vrot.lane.b32.xlu0 %v1604_v45, %s5760_s22  ;;  %1605 = vrot.lane.b32.xlu1 %v1604_v45, %s5761_s23 }
 0x752   :  { %1633 = vrot.lane.b32.xlu0 %v1604_v45, %s5753_s11  ;;  %1612 = vrot.lane.b32.xlu1 %v1604_v45, %s5742_s16 }
 0x756   :  { %1647 = vrot.lane.b32.xlu0 %v1604_v45, %s5762_s24  ;;  %1626 = vrot.lane.b32.xlu1 %v1604_v45, %s5752_s10 }
 0x75a   :  { %1640 = vrot.lane.b32.xlu1 %v1604_v45, %s5763_s25  ;;  %1665 = vperm.xlu0 %5647, %v1661_v53   ;;  %v6875_v53 = vrot.slane %v1602_v5, %v8519_v10 }
 0x75e   :  { %1654 = vrot.lane.b32.xlu1 %v1604_v45, %s5764_s26 }
 0x7c0   :  { %v1620_v57 = vpop.permute.xlu0 %1619  ;;  %v1606_v7 = vpop.permute.xlu1 %1605 }
 0x7c1   :  { %v1611_v25 = vmul.f32 %v6852_v60, %v1606_v7  ;;  %v1625_v54 = vmul.f32 %v6858_v1, %v1620_v57  ;;  %v6881_v57 = vld [vmem:[%s8418_s3 + $0x8] ss:$0 sm:$0xff] }
 0x7c4   :  { %v1613_v36 = vpop.permute.xlu1 %1612  ;;  %v1634_v61 = vpop.permute.xlu0 %1633 }
 0x7c5   :  { %v1618_v17 = vmul.f32 %v6855_v47, %v1613_v36  ;;  %v1639_v6 = vmul.f32 %v6864_v2, %v1634_v61 }
 0x7c7   :  { %v5106_v59 = vpack.c.bf16 %v1618_v17, %v1611_v25  ;;  %v5114_v56 = vpack.c.bf16 %v1639_v6, %v1604_v45  ;;  %v1662_v45 = vld [vmem:[#allocation2 + $0x138] sm:$0xff] }
 0x7c8   :  { %v1627_v9 = vpop.permute.xlu1 %1626  ;;  %v1648_v44 = vpop.permute.xlu0 %1647 }
 0x7c9   :  { %v1632_v43 = vmul.f32 %v6861_v48, %v1627_v9  ;;  %5107 = vmatprep.subr.bf16.mxu0 %v5106_v59  ;;  %v1653_v50 = vmul.f32 %v6875_v53, %v1648_v44  ;;  %v8437_v9 = vmov 0.0|0.0  }
 0x7ca   :  { %5109 = vmatpush3.bf16.msra.mxu0 %v5106_v59  ;;  %5126 = vmatprep.subr.bf16.mxu1 %v8437_v9 }
 0x7cb   :  { %v5110_v7 = vpack.c.bf16 %v1632_v43, %v1625_v54 }
 0x7cc   :  { %v1641_v18 = vpop.permute.xlu1 %1640 }
 0x7cd   :  { %v1646_v36 = vmul.f32 %v6869_v52, %v1641_v18  ;;  %5111 = vmatprep.subr.bf16.mxu0 %v5110_v7 }
 0x7ce   :  { %5113 = vmatpush3.bf16.msra.mxu0 %v5110_v7 }
 0x7cf   :  { %5115 = vmatprep.subr.bf16.mxu0 %v5114_v56  ;;  %v5118_v25 = vpack.c.bf16 %v1653_v50, %v1646_v36 }
 0x7d0   :  { %v1655_v21 = vpop.permute.xlu1 %1654 }
 0x7d1   :  { %v1660_v5 = vmul.f32 %v6881_v57, %v1655_v21 }
 0x7d2   :  { %5117 = vmatpush3.bf16.msra.mxu0 %v5114_v56 }
 0x7d3   :  { %5119 = vmatprep.subr.bf16.mxu0 %v5118_v25  ;;  %v5122_v17 = vpack.c.bf16 %v1599_v22, %v1660_v5  ;;  %v1777_v22 = vld [vmem:[#allocation2 + $0x150] sm:$0xff] }
 0x7d6   :  { %5121 = vmatpush3.bf16.msra.mxu0 %v5118_v25 }
 0x7d7   :  { %5123 = vmatprep.subr.bf16.mxu0 %v5122_v17 }
 0x7d9   :  { %v1666_v61 = vpop.permute.xlu0 %1665 }
 0x7da   :  { %5125 = vmatpush3.bf16.msra.mxu0 %v5122_v17 }
 0x7db   :  { %5158 = vmatprep.subr.bf16.mxu0 %v8437_v9 }
 0x7dd   :  { %4719 = vmatmul.mubr.msk.f32.vlgmr.msra.gmra.mrb[10].mxu0 %vm364_vm8, %v1662_v45 }
 0x8b0   :  { %v4720_v59 = vpop.f32.mrb[10].mxu0 }
 0x8b1   :  { %v1743_v51 = vpop.f32.mrb[11].mxu0 }
 0x8b2   :  { %v1744_v54 = vadd.f32 %v1743_v51, %v1666_v61 }
 0x8b4   :  { %v1752_v6 = vmax.f32 %v1744_v54, 0.0 }
 0x8b6   :  { %1759 = vrot.lane.b32.xlu0 %v1752_v6, %s5760_s22  ;;  %1753 = vrot.lane.b32.xlu1 %v1752_v6, %s5761_s23 }
 0x8ba   :  { %1765 = vrot.lane.b32.xlu0 %v1752_v6, %s5753_s11  ;;  %1756 = vrot.lane.b32.xlu1 %v1752_v6, %s5742_s16 }
 0x8be   :  { %1771 = vrot.lane.b32.xlu0 %v1752_v6, %s5762_s24  ;;  %1762 = vrot.lane.b32.xlu1 %v1752_v6, %s5752_s10 }
 0x8c2   :  { %1670 = vperm.xlu0 %5647, %v1662_v45   ;;  %1768 = vrot.lane.b32.xlu1 %v1752_v6, %s5763_s25 }
 0x8c6   :  { %1774 = vrot.lane.b32.xlu1 %v1752_v6, %s5764_s26 }
 0x8ca   :  { %1780 = vperm.xlu1 %5648, %v1777_v22  }
 0x8ce   :  { %5649 = vset.pattern.permute.xlu1 %v8508_v49 }
 0x928   :  { %v1754_v43 = vpop.permute.xlu1 %1753  ;;  %v1760_v10 = vpop.permute.xlu0 %1759 }
 0x929   :  { %v1755_v44 = vmul.f32 %v1754_v43, %v6852_v60  ;;  %v1761_v21 = vmul.f32 %v1760_v10, %v6858_v1 }
 0x92c   :  { %v1757_v7 = vpop.permute.xlu1 %1756  ;;  %v1766_v36 = vpop.permute.xlu0 %1765 }
 0x92d   :  { %v1758_v18 = vmul.f32 %v1757_v7, %v6855_v47  ;;  %v1767_v5 = vmul.f32 %v1766_v36, %v6864_v2 }
 0x92f   :  { %v5127_v56 = vpack.c.bf16 %v1758_v18, %v1755_v44  ;;  %v5133_v51 = vpack.c.bf16 %v1767_v5, %v1752_v6  ;;  %v1881_v18 = vld [vmem:[#allocation2 + $0x168] sm:$0xff] }
 0x930   :  { %v1763_v50 = vpop.permute.xlu1 %1762  ;;  %v1772_v61 = vpop.permute.xlu0 %1771 }
 0x931   :  { %v1764_v25 = vmul.f32 %v1763_v50, %v6861_v48  ;;  %5128 = vmatpush3.bf16.msra.mxu1 %v5127_v56  ;;  %v1773_v43 = vmul.f32 %v1772_v61, %v6875_v53 }
 0x932   :  { %5129 = vmatprep.subr.bf16.mxu1 %v8437_v9 }
 0x933   :  { %v5130_v17 = vpack.c.bf16 %v1764_v25, %v1761_v21 }
 0x934   :  { %v1769_v45 = vpop.permute.xlu1 %1768 }
 0x935   :  { %5131 = vmatpush3.bf16.msra.mxu1 %v5130_v17  ;;  %v1770_v54 = vmul.f32 %v1769_v45, %v6869_v52 }
 0x936   :  { %5132 = vmatprep.subr.bf16.mxu1 %v8437_v9 }
 0x937   :  { %v5136_v10 = vpack.c.bf16 %v1773_v43, %v1770_v54 }
 0x938   :  { %v1775_v7 = vpop.permute.xlu1 %1774 }
 0x939   :  { %5134 = vmatpush3.bf16.msra.mxu1 %v5133_v51  ;;  %v1776_v44 = vmul.f32 %v6881_v57, %v1775_v7 }
 0x93a   :  { %5135 = vmatprep.subr.bf16.mxu1 %v8437_v9 }
 0x93d   :  { %5137 = vmatpush3.bf16.msra.mxu1 %v5136_v10 }
 0x93e   :  { %4737 = vmatprep.subr.mxu1 %v8506_v46 }
 0x941   :  { %4738 = vmatpush3.msra.mxu1 %v1776_v44  ;;  %v1671_v6 = vpop.permute.xlu0 %1670 }
 0x942   :  { %4740 = vmatmul.mubr.msk.f32.vlgmr.msra.gmra.mrb[10].mxu1 %vm661_vm9, %v1777_v22  ;;  %v1749_v50 = vadd.f32 %v4720_v59, %v1671_v6  ;;  %v1882_v59 = vld [vmem:[#allocation2 + $0x180] sm:$0xff] }
 0x943   :  { %4762 = vmatprep.mubr.msk.f32.mxu1 %vm364_vm8, %v1881_v18 }
 0x949   :  { %v1781_v56 = vpop.permute.xlu1 %1780 }
 0xa15   :  { %v1851_v36 = vpop.f32.mrb[10].mxu1 }
 0xa16   :  { %v1852_v21 = vadd.f32 %v1851_v36, %v1781_v56  ;;  %v4741_v25 = vpop.f32.mrb[11].mxu1 }
 0xa18   :  { %v1855_v5 = vadd.f32 %v1852_v21, %v1749_v50 }
 0xa1a   :  { %v1856_v17 = vmax.f32 %v1855_v5, 0.0 }
 0xa1c   :  { %1860 = vrot.lane.b32.xlu1 %v1856_v17, %s5742_s16  ;;  %1857 = vrot.lane.b32.xlu0 %v1856_v17, %s5761_s23 }
 0xa20   :  { %1866 = vrot.lane.b32.xlu1 %v1856_v17, %s5752_s10  ;;  %1863 = vrot.lane.b32.xlu0 %v1856_v17, %s5760_s22 }
 0xa24   :  { %1872 = vrot.lane.b32.xlu1 %v1856_v17, %s5763_s25  ;;  %1869 = vrot.lane.b32.xlu0 %v1856_v17, %s5753_s11 }
 0xa28   :  { %1878 = vrot.lane.b32.xlu1 %v1856_v17, %s5764_s26  ;;  %1875 = vrot.lane.b32.xlu0 %v1856_v17, %s5762_s24 }
 0xa2c   :  { %1887 = vperm.xlu0 %5647, %v1881_v18   ;;  %1892 = vperm.xlu1 %5649, %v1882_v59  }
 0xa8e   :  { %v1861_v22 = vpop.permute.xlu1 %1860  ;;  %v1858_v45 = vpop.permute.xlu0 %1857 }
 0xa8f   :  { %v1862_v61 = vmul.f32 %v1861_v22, %v6855_v47  ;;  %v1859_v51 = vmul.f32 %v1858_v45, %v6852_v60 }
 0xa91   :  { %v5138_v54 = vpack.c.bf16 %v1862_v61, %v1859_v51 }
 0xa92   :  { %v1867_v43 = vpop.permute.xlu1 %1866  ;;  %v1864_v10 = vpop.permute.xlu0 %1863 }
 0xa93   :  { %v1868_v7 = vmul.f32 %v1867_v43, %v6861_v48  ;;  %v1865_v44 = vmul.f32 %v1864_v10, %v6858_v1  ;;  %5139 = vmatprep.subr.bf16.mxu1 %v5138_v54  ;;  %v1883_v43 = vld [vmem:[#allocation2 + $0x198] sm:$0xff] }
 0xa94   :  { %5141 = vmatpush3.bf16.msra.mxu1 %v5138_v54 }
 0xa95   :  { %v5142_v6 = vpack.c.bf16 %v1868_v7, %v1865_v44 }
 0xa96   :  { %v1873_v56 = vpop.permute.xlu1 %1872  ;;  %v1870_v36 = vpop.permute.xlu0 %1869 }
 0xa97   :  { %v1871_v18 = vmul.f32 %v1870_v36, %v6864_v2  ;;  %5143 = vmatprep.subr.bf16.mxu1 %v5142_v6  ;;  %v1874_v22 = vmul.f32 %v1873_v56, %v6869_v52 }
 0xa98   :  { %5145 = vmatpush3.bf16.msra.mxu1 %v5142_v6 }
 0xa99   :  { %v5146_v50 = vpack.c.bf16 %v1871_v18, %v1856_v17  ;;  %v1884_v17 = vld [vmem:[#allocation2 + $0x1b0] sm:$0xff] }
 0xa9a   :  { %v1879_v21 = vpop.permute.xlu1 %1878  ;;  %v1876_v25 = vpop.permute.xlu0 %1875 }
 0xa9b   :  { %v1880_v45 = vmul.f32 %v6881_v57, %v1879_v21  ;;  %v1877_v61 = vmul.f32 %v1876_v25, %v6875_v53  ;;  %5147 = vmatprep.subr.bf16.mxu1 %v5146_v50 }
 0xa9c   :  { %5149 = vmatpush3.bf16.msra.mxu1 %v5146_v50  ;;  %v2049_v50 = vld [vmem:[#allocation2 + $0x1d0] sm:$0xff] }
 0xa9d   :  { %v5150_v51 = vpack.c.bf16 %v1877_v61, %v1874_v22  ;;  %v5154_v54 = vpack.c.bf16 %v1855_v5, %v1880_v45  ;;  %4466 = vmatprep.mubr.msk.f32.mxu0 %vm2062_vm11, %v2049_v50  ;;  %v2144_v22 = vld [vmem:[%s8420_s5] sm:$0xff]  ;;  %v2145_v45 = vld [vmem:[%s8420_s5 + $0x8] sm:$0xff]  ;;  %v2146_v61 = vld [vmem:[%s8420_s5 + $0x10] sm:$0xff] }
 0xa9f   :  { %5151 = vmatprep.subr.bf16.mxu1 %v5150_v51 }
 0xaa0   :  { %5153 = vmatpush3.bf16.msra.mxu1 %v5150_v51  ;;  %v5767_v51 = vmov 16  }
 0xaa1   :  { %5155 = vmatprep.subr.bf16.mxu1 %v5154_v54  ;;  %5650 = vset.pattern.permute.xlu1 %v5767_v51  ;;  %v2154_v51 = vld [vmem:[%s8420_s5 + $0x50] sm:$0xff] }
 0xaa4   :  { %5157 = vmatpush3.bf16.msra.mxu1 %v5154_v54  ;;  %v5185_v54 = vpack.c.bf16 %v2145_v45, %v2144_v22  ;;  %v2152_v22 = vld [vmem:[%s8420_s5 + $0x40] sm:$0xff]  ;;  %v2153_v45 = vld [vmem:[%s8420_s5 + $0x48] sm:$0xff] }
 0xaa6   :  { %5186 = vmatprep.subr.bf16.mxu1 %v5185_v54 }
 0xaa7   :  { %4763 = vmatmul.mubr.msk.f32.vlgmr.msra.gmra.mrb[12].mxu1 %vm364_vm8, %v1882_v59 }
 0xaa8   :  { %4765 = vmatprep.mubr.msk.f32.mxu1 %vm364_vm8, %v1883_v43  ;;  %5188 = vmatpush3.bf16.msra.mxu1 %v5185_v54  ;;  %v2155_v54 = vld [vmem:[%s8420_s5 + $0x58] sm:$0xff] }
 0xaab   :  { %4766 = vmatmul.mubr.msk.f32.gmra.mrb[14].mxu1 %vm364_vm8, %v1884_v17  ;;  %v1893_v10 = vpop.permute.xlu1 %1892  ;;  %v1888_v44 = vpop.permute.xlu0 %1887 }
 0xb7a   :  { %v4764_v7 = vpop.f32.mrb[12].mxu1 }
 0xb7b   :  { %v1985_v6 = vadd.f32 %v4764_v7, %v1893_v10  ;;  %v1979_v56 = vpop.f32.mrb[13].mxu1  ;;  %v2148_v10 = vld [vmem:[%s8420_s5 + $0x20] sm:$0xff]  ;;  %v2149_v7 = vld [vmem:[%s8420_s5 + $0x28] sm:$0xff] }
 0xb7c   :  { %v1980_v36 = vadd.f32 %v1979_v56, %v1888_v44  ;;  %v6993_v44 = vld [vmem:[#allocation2 + $0x1e8] sm:$0xff]  ;;  %v2150_v56 = vld [vmem:[%s8420_s5 + $0x30] sm:$0xff] }
 0xb7d   :  { %v6932_v18 = vmax.f32 %v1985_v6, 0.0  ;;  %v5193_v6 = vpack.c.bf16 %v2149_v7, %v2148_v10 }
 0xb7e   :  { %v6934_v5 = vmax.f32 %v1980_v36, 0.0  ;;  %v6969_v21 = vpop.f32.mrb[14].mxu1  ;;  %v2151_v36 = vld [vmem:[%s8420_s5 + $0x38] sm:$0xff] }
 0xb7f   :  { %2002 = vrot.lane.b32.xlu1 %v6932_v18, %s5761_s23  ;;  %v6973_v25 = vpop.f32.mrb[15].mxu1 }
 0xb80   :  { %2000 = vrot.lane.b32.xlu0 %v6934_v5, %s5761_s23 }
 0xb83   :  { %2008 = vrot.lane.b32.xlu1 %v6932_v18, %s5742_s16 }
 0xb84   :  { %2006 = vrot.lane.b32.xlu0 %v6934_v5, %s5742_s16 }
 0xb87   :  { %2014 = vrot.lane.b32.xlu1 %v6932_v18, %s5760_s22 }
 0xb88   :  { %2012 = vrot.lane.b32.xlu0 %v6934_v5, %s5760_s22 }
 0xb8b   :  { %2020 = vrot.lane.b32.xlu1 %v6932_v18, %s5752_s10 }
 0xb8c   :  { %2018 = vrot.lane.b32.xlu0 %v6934_v5, %s5752_s10 }
 0xb8f   :  { %2026 = vrot.lane.b32.xlu1 %v6932_v18, %s5753_s11 }
 0xb90   :  { %2024 = vrot.lane.b32.xlu0 %v6934_v5, %s5753_s11 }
 0xb93   :  { %2032 = vrot.lane.b32.xlu1 %v6932_v18, %s5763_s25 }
 0xb94   :  { %2030 = vrot.lane.b32.xlu0 %v6934_v5, %s5763_s25 }
 0xb97   :  { %2038 = vrot.lane.b32.xlu1 %v6932_v18, %s5762_s24 }
 0xb98   :  { %2036 = vrot.lane.b32.xlu0 %v6934_v5, %s5762_s24 }
 0xb9b   :  { %2044 = vrot.lane.b32.xlu1 %v6932_v18, %s5764_s26 }
 0xb9c   :  { %2042 = vrot.lane.b32.xlu0 %v6934_v5, %s5764_s26 }
 0xb9f   :  { %2054 = vperm.xlu1 %5650, %v2049_v50   ;;  %v5197_v50 = vpack.c.bf16 %v2151_v36, %v2150_v56 }
 0xba0   :  { %1897 = vperm.xlu0 %5647, %v1883_v43   ;;  %v2147_v43 = vld [vmem:[%s8420_s5 + $0x18] sm:$0xff] }
 0xba3   :  { %2059 = vperm.xlu1 %5650, %v6993_v44  }
 0xba4   :  { %1902 = vperm.xlu0 %5647, %v1884_v17   ;;  %v5189_v17 = vpack.c.bf16 %v2147_v43, %v2146_v61  ;;  %v5201_v61 = vpack.c.bf16 %v2153_v45, %v2152_v22  ;;  %v5205_v43 = vpack.c.bf16 %v2155_v54, %v2154_v51 }
 0xba6   :  { %5190 = vmatprep.subr.bf16.mxu1 %v5189_v17 }
 0xba7   :  { %5192 = vmatpush3.bf16.msra.mxu1 %v5189_v17  ;;  %5652 = vset.pattern.permute.xlu1 %v8507_v55 }
 0xba8   :  { %5194 = vmatprep.subr.bf16.mxu1 %v5193_v6 }
 0xbab   :  { %5196 = vmatpush3.bf16.msra.mxu1 %v5193_v6 }
 0xbac   :  { %5198 = vmatprep.subr.bf16.mxu1 %v5197_v50 }
 0xbaf   :  { %5200 = vmatpush3.bf16.msra.mxu1 %v5197_v50 }
 0xbb0   :  { %5202 = vmatprep.subr.bf16.mxu1 %v5201_v61 }
 0xbb3   :  { %5204 = vmatpush3.bf16.msra.mxu1 %v5201_v61 }
 0xbb4   :  { %5206 = vmatprep.subr.bf16.mxu1 %v5205_v43 }
 0xbb7   :  { %5208 = vmatpush3.bf16.msra.mxu1 %v5205_v43 }
 0xbf1   :  { %v2003_v17 = vpop.permute.xlu1 %2002 }
 0xbf2   :  { %v2005_v10 = vmul.f32 %v2003_v17, %v6852_v60  ;;  %v2001_v7 = vpop.permute.xlu0 %2000 }
 0xbf3   :  { %v2004_v6 = vmul.f32 %v2001_v7, %v6852_v60 }
 0xbf5   :  { %v5159_v56 = vpack.c.bf16 %v2005_v10, %v2004_v6  ;;  %v2009_v36 = vpop.permute.xlu1 %2008 }
 0xbf6   :  { %v2011_v22 = vmul.f32 %v2009_v36, %v6855_v47  ;;  %v2007_v45 = vpop.permute.xlu0 %2006 }
 0xbf7   :  { %v2010_v59 = vmul.f32 %v2007_v45, %v6855_v47  ;;  %5160 = vmatpush1.bf16.msra.mxu0 %v5159_v56 }
 0xbf8   :  { %5161 = vmatprep.subr.bf16.mxu0 %v8437_v9 }
 0xbf9   :  { %v5162_v50 = vpack.c.bf16 %v2011_v22, %v2010_v59  ;;  %v2015_v61 = vpop.permute.xlu1 %2014 }
 0xbfa   :  { %v2017_v51 = vmul.f32 %v2015_v61, %v6858_v1  ;;  %v2013_v54 = vpop.permute.xlu0 %2012 }
 0xbfb   :  { %v2016_v43 = vmul.f32 %v2013_v54, %v6858_v1  ;;  %5163 = vmatpush1.bf16.msra.mxu0 %v5162_v50  ;;  %v8520_v54 = vpack.c.bf16 %v6932_v18, %v6934_v5 }
 0xbfc   :  { %5164 = vmatprep.subr.bf16.mxu0 %v8437_v9 }
 0xbfd   :  { %v5165_v17 = vpack.c.bf16 %v2017_v51, %v2016_v43  ;;  %v2021_v10 = vpop.permute.xlu1 %2020 }
 0xbfe   :  { %v2023_v7 = vmul.f32 %v2021_v10, %v6861_v48  ;;  %v2019_v6 = vpop.permute.xlu0 %2018 }
 0xbff   :  { %v2022_v36 = vmul.f32 %v2019_v6, %v6861_v48  ;;  %5166 = vmatpush1.bf16.msra.mxu0 %v5165_v17 }
 0xc00   :  { %5167 = vmatprep.subr.bf16.mxu0 %v8437_v9 }
 0xc01   :  { %v5168_v59 = vpack.c.bf16 %v2023_v7, %v2022_v36  ;;  %v2027_v56 = vpop.permute.xlu1 %2026 }
 0xc02   :  { %v2025_v22 = vpop.permute.xlu0 %2024  ;;  %v2029_v45 = vmul.f32 %v2027_v56, %v6864_v2 }
 0xc03   :  { %5169 = vmatpush1.bf16.msra.mxu0 %v5168_v59  ;;  %v2028_v50 = vmul.f32 %v2025_v22, %v6864_v2 }
 0xc04   :  { %5170 = vmatprep.subr.bf16.mxu0 %v8437_v9 }
 0xc05   :  { %v2033_v61 = vpop.permute.xlu1 %2032  ;;  %v5174_v43 = vpack.c.bf16 %v2029_v45, %v2028_v50 }
 0xc06   :  { %v2031_v51 = vpop.permute.xlu0 %2030  ;;  %v2035_v17 = vmul.f32 %v2033_v61, %v6869_v52 }
 0xc07   :  { %5172 = vmatpush1.bf16.msra.mxu0 %v8520_v54  ;;  %v2034_v10 = vmul.f32 %v2031_v51, %v6869_v52  ;;  %v2048_v51 = vld [vmem:[#allocation2 + $0x1c8] sm:$0xff]  ;;  %v2050_v54 = vld [vmem:[#allocation2 + $0x1e0] sm:$0xff] }
 0xc08   :  { %5173 = vmatprep.subr.bf16.mxu0 %v8437_v9 }
 0xc09   :  { %v2039_v7 = vpop.permute.xlu1 %2038  ;;  %v5177_v36 = vpack.c.bf16 %v2035_v17, %v2034_v10  ;;  %v2157_v17 = vld [vmem:[%s8420_s5 + $0x68] sm:$0xff] }
 0xc0a   :  { %v2037_v6 = vpop.permute.xlu0 %2036  ;;  %v2041_v59 = vmul.f32 %v2039_v7, %v6875_v53  ;;  %v2158_v7 = vld [vmem:[%s8420_s5 + $0x70] sm:$0xff] }
 0xc0b   :  { %5175 = vmatpush1.bf16.msra.mxu0 %v5174_v43  ;;  %v2040_v56 = vmul.f32 %v2037_v6, %v6875_v53  ;;  %v2156_v43 = vld [vmem:[%s8420_s5 + $0x60] sm:$0xff] }
 0xc0c   :  { %5176 = vmatprep.subr.bf16.mxu0 %v8437_v9  ;;  %v5209_v10 = vpack.c.bf16 %v2157_v17, %v2156_v43 }
 0xc0d   :  { %v2045_v22 = vpop.permute.xlu1 %2044  ;;  %v5180_v5 = vpack.c.bf16 %v2041_v59, %v2040_v56 }
 0xc0e   :  { %v2043_v18 = vpop.permute.xlu0 %2042  ;;  %v2047_v45 = vmul.f32 %v6881_v57, %v2045_v22  ;;  %5210 = vmatprep.subr.bf16.mxu1 %v5209_v10 }
 0xc0f   :  { %5178 = vmatpush1.bf16.msra.mxu0 %v5177_v36  ;;  %v2046_v50 = vmul.f32 %v6881_v57, %v2043_v18  ;;  %5212 = vmatpush3.bf16.msra.mxu1 %v5209_v10 }
 0xc10   :  { %5179 = vmatprep.subr.bf16.mxu0 %v8437_v9 }
 0xc11   :  { %v5183_v61 = vpack.c.bf16 %v2047_v45, %v2046_v50 }
 0xc13   :  { %5181 = vmatpush1.bf16.msra.mxu0 %v5180_v5 }
 0xc14   :  { %5182 = vmatprep.subr.bf16.mxu0 %v8437_v9 }
 0xc17   :  { %5184 = vmatpush1.bf16.msra.mxu0 %v5183_v61 }
 0xc1a   :  { %2132 = vmatmul.mubr.f32.vlgmr.msra.gmra.mrb[12].mxu0 %v2048_v51 }
 0xc1b   :  { %4467 = vmatprep.mubr.msk.f32.mxu0 %vm2062_vm11, %v6993_v44  ;;  %v2159_v44 = vld [vmem:[%s8420_s5 + $0x78] sm:$0xff] }
 0xc1c   :  { %v5213_v6 = vpack.c.bf16 %v2159_v44, %v2158_v7 }
 0xc1e   :  { %2137 = vmatmul.mubr.f32.gmra.mrb[14].mxu0 %v2050_v54  ;;  %5214 = vmatprep.subr.bf16.mxu1 %v5213_v6  ;;  %v2055_v59 = vpop.permute.xlu1 %2054 }
 0xc1f   :  { %5216 = vmatpush3.bf16.msra.mxu1 %v5213_v6  ;;  %v1898_v36 = vpop.permute.xlu0 %1897  ;;  %v2236_v6 = vld [vmem:[%s8422_s7 + $0x8] sm:$0xff] }
 0xc20   :  { %v1990_v22 = vadd.f32 %v6973_v25, %v1898_v36  ;;  %v2237_v36 = vld [vmem:[%s8422_s7 + $0x10] sm:$0xff] }
 0xc22   :  { %v2060_v61 = vpop.permute.xlu1 %2059 }
 0xc23   :  { %v1903_v45 = vpop.permute.xlu0 %1902 }
 0xc24   :  { %v1995_v54 = vadd.f32 %v6969_v21, %v1903_v45  ;;  %v2235_v21 = vld [vmem:[%s8422_s7] sm:$0xff] }
 0xced   :  { %v2133_v56 = vpop.f32.mrb[12].mxu0 }
 0xcee   :  { %v2134_v18 = vadd.f32 %v2133_v56, %v2055_v59  ;;  %v2135_v5 = vpop.f32.mrb[13].mxu0  ;;  %v5217_v59 = vpack.c.bf16 %v2236_v6, %v2235_v21  ;;  %v2238_v56 = vld [vmem:[%s8422_s7 + $0x18] sm:$0xff]  ;;  %v5768_v21 = vmov 64  }
 0xcef   :  { %5651 = vset.pattern.permute.xlu0 %v5768_v21 }
 0xcf0   :  { %v2142_v50 = vadd.f32 %v2134_v18, %v1990_v22  ;;  %v5221_v22 = vpack.c.bf16 %v2238_v56, %v2237_v36  ;;  %5218 = vmatprep.subr.bf16.mxu0 %v5217_v59 }
 0xcf1   :  { %v2138_v51 = vpop.f32.mrb[14].mxu0  ;;  %5220 = vmatpush3.bf16.msra.mxu0 %v5217_v59 }
 0xcf2   :  { %v7058_v43 = vmax.f32 %v2142_v50, 0.0  ;;  %v2139_v17 = vadd.f32 %v2138_v51, %v2060_v61  ;;  %v2140_v10 = vpop.f32.mrb[15].mxu0  ;;  %4800 = vmatprep.mubr.f32.mxu1 %v2142_v50  ;;  %5222 = vmatprep.subr.bf16.mxu0 %v5221_v22 }
 0xcf3   :  { %v2422_v10 = vld [vmem:[#allocation2 + $0x200] sm:$0xff] }
 0xcf4   :  { %v2143_v7 = vadd.f32 %v2139_v17, %v1995_v54  ;;  %2329 = vrot.lane.b32.xlu0 %v7058_v43, %s5761_s23 }
 0xcf5   :  { %5224 = vmatpush3.bf16.msra.mxu0 %v5221_v22 }
 0xcf6   :  { %v7062_v44 = vmax.f32 %v2143_v7, 0.0  ;;  %4801 = vmatmul.mubr.f32.vlgmr.msra.gmra.mrb[16].mxu1 %v2143_v7  ;;  %v7064_v25 = vpack.c.bf16 %v2143_v7, %v2142_v50  ;;  %v2423_v7 = vld [vmem:[#allocation2 + $0x208] sm:$0xff] }
 0xcf7   :  { %4830 = vmatprep.mubr.msk.f32.mxu1 %vm2437_vm13, %v2423_v7 }
 0xcf8   :  { %2331 = vrot.lane.b32.xlu1 %v7062_v44, %s5761_s23  ;;  %2377 = vrot.lane.b32.xlu0 %v7058_v43, %s5753_s11  ;;  %v5229_v4 = vpack.c.bf16 %v7062_v44, %v7058_v43 }
 0xcfc   :  { %2379 = vrot.lane.b32.xlu1 %v7062_v44, %s5753_s11  ;;  %2341 = vrot.lane.b32.xlu0 %v7058_v43, %s5742_s16 }
 0xd00   :  { %2343 = vrot.lane.b32.xlu1 %v7062_v44, %s5742_s16  ;;  %2389 = vrot.lane.b32.xlu0 %v7058_v43, %s5763_s25 }
 0xd04   :  { %2391 = vrot.lane.b32.xlu1 %v7062_v44, %s5763_s25  ;;  %2353 = vrot.lane.b32.xlu0 %v7058_v43, %s5760_s22 }
 0xd08   :  { %2355 = vrot.lane.b32.xlu1 %v7062_v44, %s5760_s22  ;;  %2413 = vrot.lane.b32.xlu0 %v7058_v43, %s5764_s26 }
 0xd0c   :  { %2415 = vrot.lane.b32.xlu1 %v7062_v44, %s5764_s26  ;;  %2401 = vrot.lane.b32.xlu0 %v7058_v43, %s5762_s24 }
 0xd10   :  { %2403 = vrot.lane.b32.xlu1 %v7062_v44, %s5762_s24 }
 0xd66   :  { %v2330_v36 = vpop.permute.xlu0 %2329 }
 0xd67   :  { %v2335_v42 = vmul.f32 %v2330_v36, %v6852_v60 }
 0xd6a   :  { %v2332_v6 = vpop.permute.xlu1 %2331  ;;  %v2378_v56 = vpop.permute.xlu0 %2377 }
 0xd6b   :  { %v2336_v41 = vmul.f32 %v2332_v6, %v6852_v60  ;;  %v2383_v6 = vmul.f32 %v2378_v56, %v6864_v2 }
 0xd6e   :  { %v2380_v59 = vpop.permute.xlu1 %2379 }
 0xd72   :  { %v2344_v22 = vpop.permute.xlu1 %2343 }
 0xdc9   :  { %v4802_v18 = vpop.f32.mrb[16].mxu1 }
 0xdca   :  { %v2226_v5 = vpop.f32.mrb[17].mxu1 }
 0xdcb   :  { %4811 = vmatprep.mubr.msk.f32.mxu0 %vm2239_vm12, %v2226_v5  ;;  %v2392_v5 = vpop.permute.xlu1 %2391 }
 0xdcc   :  { %4812 = vmatmul.mubr.msk.f32.vlgmr.msra.gmra.mrb[16].mxu0 %vm2239_vm12, %v4802_v18  ;;  %v2342_v18 = vpop.permute.xlu0 %2341 }
 0xdcd   :  { %2506 = vmatprep.mubr.f32.mxu0 %v2422_v10 }
 0xe9f   :  { %v4813_v45 = vpop.f32.mrb[16].mxu0 }
 0xea0   :  { %v2322_v50 = vmax.f32 %v4813_v45, 0.0  ;;  %v2312_v61 = vpop.f32.mrb[17].mxu0 }
 0xea1   :  { %v2321_v51 = vmax.f32 %v2312_v61, 0.0  ;;  %v7106_v54 = vpack.c.bf16 %v4813_v45, %v2312_v61  ;;  %v2390_v45 = vpop.permute.xlu0 %2389 }
 0xea2   :  { %2327 = vrot.lane.b32.xlu1 %v2322_v50, %s5761_s23 }
 0xea3   :  { %2325 = vrot.lane.b32.xlu0 %v2321_v51, %s5761_s23  ;;  %v5225_v17 = vpack.c.bf16 %v2322_v50, %v2321_v51 }
 0xea5   :  { %5226 = vmatprep.subr.bf16.mxu0 %v5225_v17  ;;  %v2354_v61 = vpop.permute.xlu0 %2353 }
 0xea6   :  { %2375 = vrot.lane.b32.xlu1 %v2322_v50, %s5753_s11 }
 0xea7   :  { %2373 = vrot.lane.b32.xlu0 %v2321_v51, %s5753_s11 }
 0xea9   :  { %v2414_v17 = vpop.permute.xlu0 %2413 }
 0xeaa   :  { %2339 = vrot.lane.b32.xlu1 %v2322_v50, %s5742_s16 }
 0xeab   :  { %2337 = vrot.lane.b32.xlu0 %v2321_v51, %s5742_s16 }
 0xead   :  { %v7131_v21 = vpop.permute.xlu0 %2401 }
 0xeae   :  { %2387 = vrot.lane.b32.xlu1 %v2322_v50, %s5763_s25 }
 0xeaf   :  { %2385 = vrot.lane.b32.xlu0 %v2321_v51, %s5763_s25 }
 0xeb2   :  { %2351 = vrot.lane.b32.xlu1 %v2322_v50, %s5760_s22 }
 0xeb3   :  { %2349 = vrot.lane.b32.xlu0 %v2321_v51, %s5760_s22 }
 0xeb6   :  { %2411 = vrot.lane.b32.xlu1 %v2322_v50, %s5764_s26 }
 0xeb7   :  { %2409 = vrot.lane.b32.xlu0 %v2321_v51, %s5764_s26 }
 0xeba   :  { %2399 = vrot.lane.b32.xlu1 %v2322_v50, %s5762_s24 }
 0xebb   :  { %2397 = vrot.lane.b32.xlu0 %v2321_v51, %s5762_s24 }
 0xebe   :  { %2363 = vrot.lane.b32.xlu1 %v2322_v50, %s5752_s10  ;;  %v2356_v50 = vpop.permute.xlu1 %2355 }
 0xebf   :  { %2361 = vrot.lane.b32.xlu0 %v2321_v51, %s5752_s10 }
 0xec2   :  { %2367 = vrot.lane.b32.xlu1 %v7062_v44, %s5752_s10  ;;  %v2416_v51 = vpop.permute.xlu1 %2415 }
 0xec3   :  { %2365 = vrot.lane.b32.xlu0 %v7058_v43, %s5752_s10  ;;  %v2348_v43 = vmul.f32 %v2344_v22, %v6855_v47 }
 0xec6   :  { %v7129_v10 = vpop.permute.xlu1 %2403 }
 0xec7   :  { %2429 = vperm.xlu0 %5651, %v2423_v7  }
 0xf14   :  { %v2328_v9 = vpop.permute.xlu1 %2327 }
 0xf15   :  { %v2334_v55 = vmul.f32 %v2328_v9, %v6852_v60  ;;  %v2326_v7 = vpop.permute.xlu0 %2325  ;;  %v5231_v9 = vpack.c.bf16 %v2336_v41, %v2335_v42 }
 0xf16   :  { %v2333_v37 = vmul.f32 %v2326_v7, %v6852_v60  ;;  %v2384_v7 = vmul.f32 %v2380_v59, %v6864_v2  ;;  %v2396_v59 = vmul.f32 %v2392_v5, %v6869_v52  ;;  %v2420_v5 = vmul.f32 %v6881_v57, %v2416_v51 }
 0xf18   :  { %v5227_v38 = vpack.c.bf16 %v2334_v55, %v2333_v37  ;;  %v2376_v26 = vpop.permute.xlu1 %2375 }
 0xf19   :  { %v2382_v3 = vmul.f32 %v2376_v26, %v6864_v2  ;;  %v2374_v12 = vpop.permute.xlu0 %2373 }
 0xf1a   :  { %v2381_v20 = vmul.f32 %v2374_v12, %v6864_v2  ;;  %5228 = vmatpush3.bf16.msra.mxu0 %v5227_v38  ;;  %v5237_v38 = vpack.c.bf16 %v2384_v7, %v2383_v6 }
 0xf1b   :  { %5230 = vmatprep.subr.bf16.mxu0 %v5229_v4 }
 0xf1c   :  { %v5233_v28 = vpack.c.bf16 %v2382_v3, %v2381_v20  ;;  %v2340_v11 = vpop.permute.xlu1 %2339  ;;  %v2347_v3 = vmul.f32 %v2342_v18, %v6855_v47  ;;  %v2360_v18 = vmul.f32 %v2356_v50, %v6858_v1 }
 0xf1d   :  { %v2346_v37 = vmul.f32 %v2340_v11, %v6855_v47  ;;  %v2338_v55 = vpop.permute.xlu0 %2337 }
 0xf1e   :  { %v2345_v26 = vmul.f32 %v2338_v55, %v6855_v47  ;;  %5232 = vmatpush3.bf16.msra.mxu0 %v5231_v9  ;;  %v5239_v11 = vpack.c.bf16 %v2348_v43, %v2347_v3  ;;  %v2395_v9 = vmul.f32 %v2390_v45, %v6869_v52  ;;  %v2359_v43 = vmul.f32 %v2354_v61, %v6858_v1 }
 0xf1f   :  { %5234 = vmatprep.subr.bf16.mxu0 %v5233_v28  ;;  %v2419_v45 = vmul.f32 %v6881_v57, %v2414_v17 }
 0xf20   :  { %v5235_v44 = vpack.c.bf16 %v2346_v37, %v2345_v26  ;;  %v2388_v12 = vpop.permute.xlu1 %2387  ;;  %v5245_v55 = vpack.c.bf16 %v2396_v59, %v2395_v9  ;;  %v2407_v59 = vmul.f32 %v7131_v21, %v6875_v53  ;;  %v2421_v21 = vld [vmem:[#allocation2 + $0x1f8] sm:$0xff] }
 0xf21   :  { %v2394_v4 = vmul.f32 %v2388_v12, %v6869_v52  ;;  %v2386_v20 = vpop.permute.xlu0 %2385  ;;  %v5247_v12 = vpack.c.bf16 %v2360_v18, %v2359_v43  ;;  %v5261_v3 = vpack.c.bf16 %v2420_v5, %v2419_v45 }
 0xf22   :  { %v2393_v41 = vmul.f32 %v2386_v20, %v6869_v52  ;;  %5236 = vmatpush3.bf16.msra.mxu0 %v5235_v44 }
 0xf23   :  { %5238 = vmatprep.subr.bf16.mxu0 %v5237_v38 }
 0xf24   :  { %v5241_v42 = vpack.c.bf16 %v2394_v4, %v2393_v41  ;;  %v2352_v36 = vpop.permute.xlu1 %2351 }
 0xf25   :  { %v2358_v28 = vmul.f32 %v2352_v36, %v6858_v1  ;;  %v2350_v56 = vpop.permute.xlu0 %2349 }
 0xf26   :  { %v2357_v22 = vmul.f32 %v2350_v56, %v6858_v1  ;;  %5240 = vmatpush3.bf16.msra.mxu0 %v5239_v11  ;;  %v2408_v11 = vmul.f32 %v7129_v10, %v6875_v53 }
 0xf27   :  { %5242 = vmatprep.subr.bf16.mxu0 %v5241_v42 }
 0xf28   :  { %v5243_v7 = vpack.c.bf16 %v2358_v28, %v2357_v22  ;;  %v2412_v37 = vpop.permute.xlu1 %2411  ;;  %v5253_v22 = vpack.c.bf16 %v2408_v11, %v2407_v59 }
 0xf29   :  { %v2418_v26 = vmul.f32 %v6881_v57, %v2412_v37  ;;  %v2410_v6 = vpop.permute.xlu0 %2409  ;;  %v2426_v37 = vld [vmem:[#allocation2 + $0x220] sm:$0xff] }
 0xf2a   :  { %v2417_v44 = vmul.f32 %v6881_v57, %v2410_v6  ;;  %5244 = vmatpush3.bf16.msra.mxu0 %v5243_v7  ;;  %v2424_v6 = vld [vmem:[#allocation2 + $0x210] sm:$0xff] }
 0xf2b   :  { %5246 = vmatprep.subr.bf16.mxu0 %v5245_v55  ;;  %v2425_v55 = vld [vmem:[#allocation2 + $0x218] sm:$0xff] }
 0xf2c   :  { %v5257_v38 = vpack.c.bf16 %v2418_v26, %v2417_v44  ;;  %v2400_v4 = vpop.permute.xlu1 %2399  ;;  %v8521_v26 = vmov 0.0|0.0  }
 0xf2d   :  { %v2406_v50 = vmul.f32 %v2400_v4, %v6875_v53  ;;  %v2398_v20 = vpop.permute.xlu0 %2397 }
 0xf2e   :  { %v2405_v41 = vmul.f32 %v2398_v20, %v6875_v53  ;;  %5248 = vmatpush3.bf16.msra.mxu0 %v5247_v12  ;;  %5258 = vmatprep.subr.bf16.mxu1 %v5257_v38 }
 0xf2f   :  { %5260 = vmatpush3.bf16.msra.mxu1 %v5257_v38 }
 0xf30   :  { %v5249_v61 = vpack.c.bf16 %v2406_v50, %v2405_v41  ;;  %v2364_v51 = vpop.permute.xlu1 %2363  ;;  %5262 = vmatprep.subr.bf16.mxu1 %v5261_v3  ;;  %v2617_v41 = vld [vmem:[#allocation2 + $0x228] sm:$0xff] }
 0xf31   :  { %v2370_v42 = vmul.f32 %v2364_v51, %v6861_v48  ;;  %v2362_v17 = vpop.permute.xlu0 %2361 }
 0xf32   :  { %v2369_v36 = vmul.f32 %v2362_v17, %v6861_v48  ;;  %5250 = vmatprep.subr.bf16.mxu0 %v5249_v61 }
 0xf33   :  { %5264 = vmatpush3.bf16.msra.mxu1 %v5261_v3 }
 0xf34   :  { %v5251_v28 = vpack.c.bf16 %v2370_v42, %v2369_v36  ;;  %v2368_v56 = vpop.permute.xlu1 %2367  ;;  %5266 = vmatprep.subr.bf16.mxu1 %v7106_v54 }
 0xf35   :  { %v2372_v9 = vmul.f32 %v2368_v56, %v6861_v48  ;;  %v2366_v18 = vpop.permute.xlu0 %2365 }
 0xf36   :  { %v2371_v10 = vmul.f32 %v2366_v18, %v6861_v48  ;;  %5252 = vmatpush3.bf16.msra.mxu0 %v5251_v28 }
 0xf37   :  { %5254 = vmatprep.subr.bf16.mxu0 %v5253_v22  ;;  %5268 = vmatpush3.bf16.msra.mxu1 %v7106_v54 }
 0xf38   :  { %v5255_v7 = vpack.c.bf16 %v2372_v9, %v2371_v10  ;;  %5270 = vmatprep.subr.bf16.mxu1 %v7064_v25 }
 0xf3a   :  { %5256 = vmatpush3.bf16.msra.mxu0 %v5255_v7 }
 0xf3b   :  { %5272 = vmatpush3.bf16.msra.mxu1 %v7064_v25 }
 0xf3c   :  { %5273 = vmatprep.subr.bf16.mxu1 %v8521_v26 }
 0xf3d   :  { %2507 = vmatmul.mubr.f32.vlgmr.msra.gmra.mrb[18].mxu0 %v2421_v21 }
 0xf3e   :  { %4831 = vmatmul.mubr.msk.f32.vlgmr.msra.gmra.mrb[18].mxu1 %vm2437_vm13, %v2426_v37  ;;  %2511 = vmatprep.mubr.f32.mxu0 %v2425_v55 }
 0xf3f   :  { %4851 = vmatprep.mubr.msk.f32.mxu1 %vm5766_vm10, %v8506_v46 }
 0xf41   :  { %2512 = vmatmul.mubr.f32.gmra.mrb[20].mxu0 %v2424_v6 }
 0xf46   :  { %v2430_v43 = vpop.permute.xlu0 %2429 }
0x1010   :  { %v4650_v54 = vpop.f32.mrb[18].mxu0 }
0x1011   :  { %v4651_v5 = vpop.f32.mrb[19].mxu0  ;;  %v4832_v44 = vpop.f32.mrb[18].mxu1 }
0x1012   :  { %v4652_v12 = vadd.f32 %v4651_v5, %v4650_v54  ;;  %v2583_v45 = vpop.f32.mrb[19].mxu1 }
0x1014   :  { %v2509_v25 = vadd.f32 %v4652_v12, %v2430_v43  ;;  %v4653_v50 = vpop.f32.mrb[20].mxu0 }
0x1015   :  { %v4654_v20 = vpop.f32.mrb[21].mxu0 }
0x1016   :  { %v2584_v38 = vadd.f32 %v2583_v45, %v2509_v25  ;;  %v4655_v3 = vadd.f32 %v4654_v20, %v4653_v50 }
0x1018   :  { %v2592_v4 = vmax.f32 %v2584_v38, 0.0 }
0x101a   :  { %2599 = vrot.lane.b32.xlu0 %v2592_v4, %s5760_s22  ;;  %2593 = vrot.lane.b32.xlu1 %v2592_v4, %s5761_s23 }
0x101e   :  { %2605 = vrot.lane.b32.xlu0 %v2592_v4, %s5753_s11  ;;  %2596 = vrot.lane.b32.xlu1 %v2592_v4, %s5742_s16 }
0x1022   :  { %2611 = vrot.lane.b32.xlu0 %v2592_v4, %s5762_s24  ;;  %2602 = vrot.lane.b32.xlu1 %v2592_v4, %s5752_s10 }
0x1026   :  { %2434 = vperm.xlu0 %5651, %v2426_v37   ;;  %2608 = vrot.lane.b32.xlu1 %v2592_v4, %s5763_s25 }
0x102a   :  { %2614 = vrot.lane.b32.xlu1 %v2592_v4, %s5764_s26  ;;  %5653 = vset.pattern.permute.xlu0 %v8508_v49 }
0x102e   :  { %2620 = vperm.xlu1 %5652, %v2617_v41  }
0x108c   :  { %v2594_v61 = vpop.permute.xlu1 %2593  ;;  %v2600_v51 = vpop.permute.xlu0 %2599 }
0x108d   :  { %v2595_v42 = vmul.f32 %v2594_v61, %v6852_v60  ;;  %v2601_v56 = vmul.f32 %v2600_v51, %v6858_v1 }
0x1090   :  { %v2597_v11 = vpop.permute.xlu1 %2596  ;;  %v2606_v59 = vpop.permute.xlu0 %2605 }
0x1091   :  { %v2598_v17 = vmul.f32 %v2597_v11, %v6855_v47  ;;  %v2607_v9 = vmul.f32 %v2606_v59, %v6864_v2 }
0x1093   :  { %v5274_v36 = vpack.c.bf16 %v2598_v17, %v2595_v42  ;;  %v5280_v21 = vpack.c.bf16 %v2607_v9, %v2592_v4 }
0x1094   :  { %v2603_v28 = vpop.permute.xlu1 %2602  ;;  %v2612_v7 = vpop.permute.xlu0 %2611 }
0x1095   :  { %v2604_v22 = vmul.f32 %v2603_v28, %v6861_v48  ;;  %5275 = vmatpush3.bf16.msra.mxu1 %v5274_v36  ;;  %v2613_v55 = vmul.f32 %v2612_v7, %v6875_v53 }
0x1096   :  { %5276 = vmatprep.subr.bf16.mxu1 %v8521_v26 }
0x1097   :  { %v5277_v18 = vpack.c.bf16 %v2604_v22, %v2601_v56 }
0x1098   :  { %v2609_v10 = vpop.permute.xlu1 %2608 }
0x1099   :  { %5278 = vmatpush3.bf16.msra.mxu1 %v5277_v18  ;;  %v2610_v37 = vmul.f32 %v2609_v10, %v6869_v52 }
0x109a   :  { %5279 = vmatprep.subr.bf16.mxu1 %v8521_v26 }
0x109b   :  { %v5283_v6 = vpack.c.bf16 %v2613_v55, %v2610_v37  ;;  %v7220_v37 = vld [vmem:[%s8418_s3 + $0x8] ss:$0 sm:$0xff] }
0x109c   :  { %v2615_v54 = vpop.permute.xlu1 %2614 }
0x109d   :  { %5281 = vmatpush3.bf16.msra.mxu1 %v5280_v21  ;;  %v2616_v43 = vmul.f32 %v6881_v57, %v2615_v54  ;;  %v2721_v57 = vld [vmem:[#allocation2 + $0x240] sm:$0xff] }
0x109e   :  { %5282 = vmatprep.subr.bf16.mxu1 %v8521_v26  ;;  %4874 = vmatprep.mubr.msk.f32.mxu0 %vm364_vm8, %v2721_v57 }
0x10a1   :  { %5284 = vmatpush3.bf16.msra.mxu1 %v5283_v6 }
0x10a2   :  { %4849 = vmatprep.subr.mxu1 %v8506_v46 }
0x10a5   :  { %v2435_v5 = vpop.permute.xlu0 %2434  ;;  %4850 = vmatpush3.msra.mxu1 %v2616_v43 }
0x10a6   :  { %v2514_v12 = vadd.f32 %v4655_v3, %v2435_v5  ;;  %4852 = vmatmul.mubr.msk.f32.vlgmr.msra.gmra.mrb[20].mxu1 %vm661_vm9, %v2617_v41  ;;  %5305 = vmatprep.subr.bf16.mxu1 %v8521_v26  ;;  %v2722_v5 = vld [vmem:[#allocation2 + $0x258] sm:$0xff] }
0x10a7   :  { %4895 = vmatprep.mubr.msk.f32.mxu1 %vm5766_vm10, %v8506_v46 }
0x10a8   :  { %v2589_v45 = vadd.f32 %v4832_v44, %v2514_v12 }
0x10ad   :  { %v2621_v25 = vpop.permute.xlu1 %2620 }
0x1179   :  { %v2691_v38 = vpop.f32.mrb[20].mxu1 }
0x117a   :  { %v2692_v4 = vadd.f32 %v2691_v38, %v2621_v25  ;;  %v4853_v50 = vpop.f32.mrb[21].mxu1 }
0x117b   :  { %v7246_v50 = vld [vmem:[#allocation2 + $0x270] sm:$0xff] }
0x117c   :  { %v2695_v20 = vadd.f32 %v2692_v4, %v2589_v45 }
0x117e   :  { %v2696_v61 = vmax.f32 %v2695_v20, 0.0 }
0x1180   :  { %2700 = vrot.lane.b32.xlu1 %v2696_v61, %s5742_s16  ;;  %2697 = vrot.lane.b32.xlu0 %v2696_v61, %s5761_s23 }
0x1184   :  { %2706 = vrot.lane.b32.xlu1 %v2696_v61, %s5752_s10  ;;  %2703 = vrot.lane.b32.xlu0 %v2696_v61, %s5760_s22 }
0x1188   :  { %2712 = vrot.lane.b32.xlu1 %v2696_v61, %s5763_s25  ;;  %2709 = vrot.lane.b32.xlu0 %v2696_v61, %s5753_s11 }
0x118c   :  { %2718 = vrot.lane.b32.xlu1 %v2696_v61, %s5764_s26  ;;  %2715 = vrot.lane.b32.xlu0 %v2696_v61, %s5762_s24 }
0x1190   :  { %2725 = vperm.xlu0 %5653, %v2721_v57   ;;  %v7260_v57 = vmax.f32 %v6833_v16, 0.0 }
0x1192   :  { %8523 = vst [vmem:[#allocation10_spill] sm:$0xff] %v7260_v57 }
0x11f2   :  { %v2701_v44 = vpop.permute.xlu1 %2700  ;;  %v2698_v3 = vpop.permute.xlu0 %2697 }
0x11f3   :  { %v2702_v41 = vmul.f32 %v2701_v44, %v6855_v47  ;;  %v2699_v51 = vmul.f32 %v2698_v3, %v6852_v60  ;;  %v7265_v44 = vmax.f32 %v6831_v58, 0.0 }
0x11f5   :  { %v5285_v11 = vpack.c.bf16 %v2702_v41, %v2699_v51 }
0x11f6   :  { %v2707_v42 = vpop.permute.xlu1 %2706  ;;  %v2704_v17 = vpop.permute.xlu0 %2703 }
0x11f7   :  { %v2708_v36 = vmul.f32 %v2707_v42, %v6861_v48  ;;  %v2705_v59 = vmul.f32 %v2704_v17, %v6858_v1  ;;  %5286 = vmatprep.subr.bf16.mxu0 %v5285_v11 }
0x11f8   :  { %5288 = vmatpush3.bf16.msra.mxu0 %v5285_v11 }
0x11f9   :  { %v5289_v28 = vpack.c.bf16 %v2708_v36, %v2705_v59 }
0x11fa   :  { %v2713_v56 = vpop.permute.xlu1 %2712  ;;  %v2710_v22 = vpop.permute.xlu0 %2709 }
0x11fb   :  { %v2711_v9 = vmul.f32 %v2710_v22, %v6864_v2  ;;  %5290 = vmatprep.subr.bf16.mxu0 %v5289_v28  ;;  %v2714_v21 = vmul.f32 %v2713_v56, %v6869_v52 }
0x11fc   :  { %5292 = vmatpush3.bf16.msra.mxu0 %v5289_v28 }
0x11fd   :  { %v5293_v18 = vpack.c.bf16 %v2711_v9, %v2696_v61  ;;  %v7255_v61 = vmax.f32 %v6827_v8, 0.0 }
0x11fe   :  { %v2719_v10 = vpop.permute.xlu1 %2718  ;;  %v2716_v7 = vpop.permute.xlu0 %2715 }
0x11ff   :  { %v2720_v55 = vmul.f32 %v7220_v37, %v2719_v10  ;;  %v2717_v6 = vmul.f32 %v2716_v7, %v6875_v53  ;;  %5294 = vmatprep.subr.bf16.mxu0 %v5293_v18 }
0x1200   :  { %5296 = vmatpush3.bf16.msra.mxu0 %v5293_v18 }
0x1201   :  { %v5297_v54 = vpack.c.bf16 %v2717_v6, %v2714_v21  ;;  %v5301_v43 = vpack.c.bf16 %v2695_v20, %v2720_v55  ;;  %v7250_v20 = vmax.f32 %v6829_v0, 0.0  ;;  %v2916_v55 = vld [vmem:[#allocation6] sm:$0xff] }
0x1202   :  { %v2920_v6 = vld [vmem:[#allocation6 + $0x20] sm:$0xff] }
0x1203   :  { %5298 = vmatprep.subr.bf16.mxu0 %v5297_v54  ;;  %8522 = vst [vmem:[#allocation9_spill] sm:$0xff] %v7250_v20 }
0x1204   :  { %5300 = vmatpush3.bf16.msra.mxu0 %v5297_v54 }
0x1205   :  { %5302 = vmatprep.subr.bf16.mxu0 %v5301_v43 }
0x1208   :  { %5304 = vmatpush3.bf16.msra.mxu0 %v5301_v43  ;;  %v5319_v43 = vpack.c.bf16 %v2920_v6, %v2916_v55  ;;  %v2947_v55 = vld [vmem:[#allocation6 + $0xf8] sm:$0xff]  ;;  %v2940_v6 = vld [vmem:[#allocation6 + $0xc0] sm:$0xff] }
0x120b   :  { %4875 = vmatmul.mubr.msk.f32.vlgmr.msra.gmra.mrb[22].mxu0 %vm364_vm8, %v2722_v5 }
0x120c   :  { %3044 = vmatprep.mubr.f32.mxu0 %v8506_v46 }
0x120f   :  { %v2726_v12 = vpop.permute.xlu0 %2725 }
0x12de   :  { %v7226_v45 = vpop.f32.mrb[22].mxu0 }
0x12df   :  { %v2803_v25 = vpop.f32.mrb[23].mxu0 }
0x12e0   :  { %v2804_v38 = vadd.f32 %v2803_v25, %v2726_v12  ;;  %v2922_v12 = vld [vmem:[#allocation6 + $0x30] sm:$0xff]  ;;  %v2925_v25 = vld [vmem:[#allocation6 + $0x48] sm:$0xff] }
0x12e2   :  { %v7228_v4 = vmax.f32 %v2804_v38, 0.0 }
0x12e4   :  { %2819 = vrot.lane.b32.xlu0 %v7228_v4, %s5760_s22  ;;  %2813 = vrot.lane.b32.xlu1 %v7228_v4, %s5761_s23 }
0x12e8   :  { %2825 = vrot.lane.b32.xlu0 %v7228_v4, %s5753_s11  ;;  %2816 = vrot.lane.b32.xlu1 %v7228_v4, %s5742_s16 }
0x12ec   :  { %2831 = vrot.lane.b32.xlu0 %v7228_v4, %s5762_s24  ;;  %2822 = vrot.lane.b32.xlu1 %v7228_v4, %s5752_s10 }
0x12f0   :  { %2730 = vperm.xlu0 %5653, %v2722_v5   ;;  %2828 = vrot.lane.b32.xlu1 %v7228_v4, %s5763_s25  ;;  %v2918_v5 = vld [vmem:[#allocation6 + $0x10] sm:$0xff] }
0x12f1   :  { %v5351_v38 = vpack.c.bf16 %v2922_v12, %v2918_v5  ;;  %v2942_v5 = vld [vmem:[#allocation6 + $0xd0] sm:$0xff] }
0x12f2   :  { %v2946_v12 = vld [vmem:[#allocation6 + $0xf0] sm:$0xff] }
0x12f4   :  { %2834 = vrot.lane.b32.xlu1 %v7228_v4, %s5764_s26 }
0x12f8   :  { %2840 = vperm.xlu1 %5652, %v7246_v50  }
0x12fc   :  { %3132 = vrot.lane.b32.xlu1 %v7250_v20, %s5749_s30 }
0x1300   :  { %3136 = vrot.lane.b32.xlu1 %v7255_v61, %s5749_s30 }
0x1304   :  { %3140 = vrot.lane.b32.xlu1 %v7260_v57, %s5749_s30 }
0x1308   :  { %3144 = vrot.lane.b32.xlu1 %v7265_v44, %s5749_s30 }
0x130c   :  { %3164 = vrot.lane.b32.xlu1 %v7250_v20, %s5750_s0 }
0x1310   :  { %3168 = vrot.lane.b32.xlu1 %v7255_v61, %s5750_s0 }
0x1314   :  { %3172 = vrot.lane.b32.xlu1 %v7260_v57, %s5750_s0 }
0x1318   :  { %3176 = vrot.lane.b32.xlu1 %v7265_v44, %s5750_s0 }
0x131c   :  { %3196 = vrot.lane.b32.xlu1 %v7250_v20, %s5751_s9 }
0x1320   :  { %3200 = vrot.lane.b32.xlu1 %v7255_v61, %s5751_s9 }
0x1324   :  { %3204 = vrot.lane.b32.xlu1 %v7260_v57, %s5751_s9 }
0x1328   :  { %3208 = vrot.lane.b32.xlu1 %v7265_v44, %s5751_s9 }
0x132c   :  { %3228 = vrot.lane.b32.xlu1 %v7250_v20, %s5752_s10 }
0x1330   :  { %3232 = vrot.lane.b32.xlu1 %v7255_v61, %s5752_s10 }
0x1334   :  { %3236 = vrot.lane.b32.xlu1 %v7260_v57, %s5752_s10 }
0x1338   :  { %3240 = vrot.lane.b32.xlu1 %v7265_v44, %s5752_s10 }
0x133c   :  { %3260 = vrot.lane.b32.xlu1 %v7250_v20, %s5753_s11 }
0x1340   :  { %3264 = vrot.lane.b32.xlu1 %v7255_v61, %s5753_s11 }
0x1344   :  { %3268 = vrot.lane.b32.xlu1 %v7260_v57, %s5753_s11 }
0x1348   :  { %3272 = vrot.lane.b32.xlu1 %v7265_v44, %s5753_s11 }
0x134c   :  { %3292 = vrot.lane.b32.xlu1 %v7250_v20, %s5754_s12 }
0x1350   :  { %3296 = vrot.lane.b32.xlu1 %v7255_v61, %s5754_s12 }
0x1354   :  { %3300 = vrot.lane.b32.xlu1 %v7260_v57, %s5754_s12 }
0x1356   :  { %v2814_v3 = vpop.permute.xlu1 %2813  ;;  %v2820_v41 = vpop.permute.xlu0 %2819 }
0x1357   :  { %v2815_v11 = vmul.f32 %v2814_v3, %v6852_v60  ;;  %v2821_v28 = vmul.f32 %v2820_v41, %v6858_v1  ;;  %v2931_v3 = vld [vmem:[#allocation6 + $0x78] sm:$0xff] }
0x1358   :  { %3304 = vrot.lane.b32.xlu1 %v7265_v44, %s5754_s12 }
0x135a   :  { %v2817_v51 = vpop.permute.xlu1 %2816  ;;  %v2826_v36 = vpop.permute.xlu0 %2825 }
0x135b   :  { %v2818_v42 = vmul.f32 %v2817_v51, %v6855_v47  ;;  %v2827_v60 = vmul.f32 %v2826_v36, %v6864_v2 }
0x135c   :  { %3324 = vrot.lane.b32.xlu1 %v7250_v20, %s5755_s13 }
0x135d   :  { %v5306_v17 = vpack.c.bf16 %v2818_v42, %v2815_v11  ;;  %v5312_v1 = vpack.c.bf16 %v2827_v60, %v7228_v4  ;;  %v2929_v4 = vld [vmem:[#allocation6 + $0x68] sm:$0xff]  ;;  %v2924_v11 = vld [vmem:[#allocation6 + $0x40] sm:$0xff] }
0x135e   :  { %v2823_v59 = vpop.permute.xlu1 %2822  ;;  %v2832_v9 = vpop.permute.xlu0 %2831  ;;  %v5321_v41 = vpack.c.bf16 %v2929_v4, %v2925_v25  ;;  %v2928_v42 = vld [vmem:[#allocation6 + $0x60] sm:$0xff]  ;;  %v2949_v25 = vld [vmem:[#allocation6 + $0x108] sm:$0xff]  ;;  %v2951_v4 = vld [vmem:[#allocation6 + $0x118] sm:$0xff] }
0x135f   :  { %v2824_v56 = vmul.f32 %v2823_v59, %v6861_v48  ;;  %5307 = vmatpush3.bf16.msra.mxu1 %v5306_v17  ;;  %v2833_v18 = vmul.f32 %v2832_v9, %v6875_v53  ;;  %v2921_v53 = vld [vmem:[#allocation6 + $0x28] sm:$0xff]  ;;  %v2926_v17 = vld [vmem:[#allocation6 + $0x50] sm:$0xff]  ;;  %v5323_v36 = vpack.c.bf16 %v2928_v42, %v2924_v11  ;;  %v2939_v9 = vld [vmem:[#allocation6 + $0xb8] sm:$0xff] }
0x1360   :  { %3328 = vrot.lane.b32.xlu1 %v7255_v61, %s5755_s13  ;;  %5308 = vmatprep.subr.bf16.mxu1 %v8521_v26  ;;  %v2930_v59 = vld [vmem:[#allocation6 + $0x70] sm:$0xff]  ;;  %v2948_v11 = vld [vmem:[#allocation6 + $0x100] sm:$0xff] }
0x1361   :  { %v5309_v22 = vpack.c.bf16 %v2824_v56, %v2821_v28  ;;  %v2933_v28 = vld [vmem:[#allocation6 + $0x88] sm:$0xff]  ;;  %v5355_v60 = vpack.c.bf16 %v2930_v59, %v2926_v17  ;;  %v2952_v42 = vld [vmem:[#allocation6 + $0x120] sm:$0xff]  ;;  %v2950_v17 = vld [vmem:[#allocation6 + $0x110] sm:$0xff] }
0x1362   :  { %v2829_v47 = vpop.permute.xlu1 %2828  ;;  %v2937_v56 = vld [vmem:[#allocation6 + $0xa8] sm:$0xff]  ;;  %v2954_v59 = vld [vmem:[#allocation6 + $0x130] sm:$0xff] }
0x1363   :  { %5310 = vmatpush3.bf16.msra.mxu1 %v5309_v22  ;;  %v2830_v48 = vmul.f32 %v2829_v47, %v6869_v52  ;;  %v2917_v52 = vld [vmem:[#allocation6 + $0x8] sm:$0xff]  ;;  %v5325_v22 = vpack.c.bf16 %v2937_v56, %v2933_v28  ;;  %v2935_v47 = vld [vmem:[#allocation6 + $0x98] sm:$0xff] }
0x1364   :  { %3332 = vrot.lane.b32.xlu1 %v7260_v57, %s5755_s13  ;;  %5311 = vmatprep.subr.bf16.mxu1 %v8521_v26  ;;  %v5317_v21 = vpack.c.bf16 %v2921_v53, %v2917_v52  ;;  %v2941_v52 = vld [vmem:[#allocation6 + $0xc8] sm:$0xff] }
0x1365   :  { %v5315_v2 = vpack.c.bf16 %v2833_v18, %v2830_v48  ;;  %v5357_v48 = vpack.c.bf16 %v2939_v9, %v2935_v47  ;;  %v2936_v18 = vld [vmem:[#allocation6 + $0xa0] sm:$0xff]  ;;  %v2945_v53 = vld [vmem:[#allocation6 + $0xe8] sm:$0xff]  ;;  %v5335_v47 = vpack.c.bf16 %v2952_v42, %v2948_v11  ;;  %v5367_v9 = vpack.c.bf16 %v2954_v59, %v2950_v17  ;;  %v2979_v11 = vld [vmem:[#allocation6 + $0x1f8] sm:$0xff] }
0x1366   :  { %v2835_v10 = vpop.permute.xlu1 %2834  ;;  %5318 = vmatprep.subr.bf16.mxu0 %v5317_v21  ;;  %v2957_v28 = vld [vmem:[#allocation6 + $0x148] sm:$0xff]  ;;  %v2972_v42 = vld [vmem:[#allocation6 + $0x1c0] sm:$0xff] }
0x1367   :  { %5313 = vmatpush3.bf16.msra.mxu1 %v5312_v1  ;;  %v2836_v7 = vmul.f32 %v7220_v37, %v2835_v10  ;;  %v2923_v37 = vld [vmem:[#allocation6 + $0x38] sm:$0xff]  ;;  %5320 = vmatpush1.bf16.msra.mxu0 %v5319_v43  ;;  %v2932_v1 = vld [vmem:[#allocation6 + $0x80] sm:$0xff]  ;;  %v2938_v10 = vld [vmem:[#allocation6 + $0xb0] sm:$0xff] }
0x1368   :  { %3336 = vrot.lane.b32.xlu1 %v7265_v44, %s5755_s13  ;;  %5314 = vmatprep.subr.bf16.mxu1 %v8521_v26  ;;  %v2919_v26 = vld [vmem:[#allocation6 + $0x18] sm:$0xff]  ;;  %v2961_v56 = vld [vmem:[#allocation6 + $0x168] sm:$0xff]  ;;  %v2976_v17 = vld [vmem:[#allocation6 + $0x1e0] sm:$0xff] }
0x1369   :  { %v5349_v54 = vpack.c.bf16 %v2923_v37, %v2919_v26  ;;  %5322 = vmatprep.subr.bf16.mxu0 %v5321_v41  ;;  %v2943_v26 = vld [vmem:[#allocation6 + $0xd8] sm:$0xff]  ;;  %v5329_v37 = vpack.c.bf16 %v2945_v53, %v2941_v52  ;;  %v5363_v41 = vpack.c.bf16 %v2946_v12, %v2942_v5  ;;  %v2965_v52 = vld [vmem:[#allocation6 + $0x188] sm:$0xff]  ;;  %v2966_v12 = vld [vmem:[#allocation6 + $0x190] sm:$0xff]  ;;  %v5347_v59 = vpack.c.bf16 %v2976_v17, %v2972_v42 }
0x136a   :  { %v5361_v43 = vpack.c.bf16 %v2947_v55, %v2943_v26  ;;  %v2969_v53 = vld [vmem:[#allocation6 + $0x1a8] sm:$0xff]  ;;  %v2967_v26 = vld [vmem:[#allocation6 + $0x198] sm:$0xff]  ;;  %v3387_v42 = vld [vmem:[#allocation2 + $0x98] sm:$0xff] }
0x136b   :  { %5316 = vmatpush3.bf16.msra.mxu1 %v5315_v2  ;;  %v2934_v2 = vld [vmem:[#allocation6 + $0x90] sm:$0xff]  ;;  %5324 = vmatpush1.bf16.msra.mxu0 %v5323_v36 }
0x136c   :  { %3356 = vrot.lane.b32.xlu1 %v7250_v20, %s5757_s14  ;;  %4893 = vmatprep.subr.mxu1 %v8506_v46  ;;  %v5359_v21 = vpack.c.bf16 %v2938_v10, %v2934_v2  ;;  %v2958_v2 = vld [vmem:[#allocation6 + $0x150] sm:$0xff] }
0x136d   :  { %5326 = vmatprep.subr.bf16.mxu0 %v5325_v22  ;;  %v2963_v22 = vld [vmem:[#allocation6 + $0x178] sm:$0xff] }
0x136f   :  { %4894 = vmatpush3.msra.mxu1 %v2836_v7  ;;  %v5327_v7 = vpack.c.bf16 %v2936_v18, %v2932_v1  ;;  %v5337_v1 = vpack.c.bf16 %v2961_v56, %v2957_v28  ;;  %v2960_v18 = vld [vmem:[#allocation6 + $0x160] sm:$0xff]  ;;  %v2974_v28 = vld [vmem:[#allocation6 + $0x1d0] sm:$0xff] }
0x1370   :  { %3360 = vrot.lane.b32.xlu1 %v7255_v61, %s5757_s14  ;;  %4896 = vmatmul.mubr.msk.f32.vlgmr.msra.gmra.mrb[22].mxu1 %vm661_vm9, %v7246_v50  ;;  %v2927_v50 = vld [vmem:[#allocation6 + $0x58] sm:$0xff]  ;;  %v2978_v56 = vld [vmem:[#allocation6 + $0x1f0] sm:$0xff] }
0x1371   :  { %3115 = vmatprep.mubr.f32.mxu1 %v8506_v46  ;;  %5350 = vmatprep.subr.bf16.mxu1 %v5349_v54  ;;  %v5353_v51 = vpack.c.bf16 %v2931_v3, %v2927_v50  ;;  %v2944_v54 = vld [vmem:[#allocation6 + $0xe0] sm:$0xff]  ;;  %v2955_v50 = vld [vmem:[#allocation6 + $0x138] sm:$0xff] }
0x1372   :  { %5352 = vmatpush1.bf16.msra.mxu1 %v5351_v38  ;;  %v2953_v38 = vld [vmem:[#allocation6 + $0x128] sm:$0xff]  ;;  %5328 = vmatpush1.bf16.msra.mxu0 %v5327_v7  ;;  %v5331_v3 = vpack.c.bf16 %v2944_v54, %v2940_v6  ;;  %v5365_v36 = vpack.c.bf16 %v2955_v50, %v2951_v4  ;;  %v2962_v7 = vld [vmem:[#allocation6 + $0x170] sm:$0xff]  ;;  %v5341_v6 = vpack.c.bf16 %v2969_v53, %v2965_v52  ;;  %v2964_v54 = vld [vmem:[#allocation6 + $0x180] sm:$0xff] }
0x1373   :  { %5354 = vmatprep.subr.bf16.mxu1 %v5353_v51  ;;  %5330 = vmatprep.subr.bf16.mxu0 %v5329_v37  ;;  %v5333_v51 = vpack.c.bf16 %v2953_v38, %v2949_v25  ;;  %v5371_v55 = vpack.c.bf16 %v2962_v7, %v2958_v2  ;;  %v2970_v25 = vld [vmem:[#allocation6 + $0x1b0] sm:$0xff]  ;;  %v2973_v50 = vld [vmem:[#allocation6 + $0x1c8] sm:$0xff] }
0x1374   :  { %3364 = vrot.lane.b32.xlu1 %v7260_v57, %s5757_s14  ;;  %v5375_v4 = vpack.c.bf16 %v2970_v25, %v2966_v12 }
0x1376   :  { %5356 = vmatpush1.bf16.msra.mxu1 %v5355_v60  ;;  %v2959_v60 = vld [vmem:[#allocation6 + $0x158] sm:$0xff]  ;;  %5332 = vmatpush1.bf16.msra.mxu0 %v5331_v3  ;;  %v2977_v3 = vld [vmem:[#allocation6 + $0x1e8] sm:$0xff] }
0x1377   :  { %5358 = vmatprep.subr.bf16.mxu1 %v5357_v48  ;;  %5334 = vmatprep.subr.bf16.mxu0 %v5333_v51  ;;  %v2956_v48 = vld [vmem:[#allocation6 + $0x140] sm:$0xff]  ;;  %v5369_v10 = vpack.c.bf16 %v2963_v22, %v2959_v60  ;;  %v5345_v51 = vpack.c.bf16 %v2977_v3, %v2973_v50  ;;  %v5379_v60 = vpack.c.bf16 %v2978_v56, %v2974_v28  ;;  %v2731_v22 = vpop.permute.xlu0 %2730  ;;  %v5769_v28 = vmov 32  }
0x1378   :  { %3368 = vrot.lane.b32.xlu1 %v7265_v44, %s5757_s14  ;;  %v5339_v37 = vpack.c.bf16 %v2960_v18, %v2956_v48  ;;  %5654 = vset.pattern.permute.xlu0 %v5769_v28 }
0x137a   :  { %5360 = vmatpush1.bf16.msra.mxu1 %v5359_v21  ;;  %v2971_v21 = vld [vmem:[#allocation6 + $0x1b8] sm:$0xff]  ;;  %5336 = vmatpush1.bf16.msra.mxu0 %v5335_v47  ;;  %v2841_v47 = vpop.permute.xlu1 %2840 }
0x137b   :  { %5362 = vmatprep.subr.bf16.mxu1 %v5361_v43  ;;  %5338 = vmatprep.subr.bf16.mxu0 %v5337_v1  ;;  %v2968_v43 = vld [vmem:[#allocation6 + $0x1a0] sm:$0xff]  ;;  %v5373_v5 = vpack.c.bf16 %v2971_v21, %v2967_v26  ;;  %v2809_v1 = vadd.f32 %v7226_v45, %v2731_v22 }
0x137c   :  { %v5343_v38 = vpack.c.bf16 %v2968_v43, %v2964_v54 }
0x137e   :  { %5364 = vmatpush1.bf16.msra.mxu1 %v5363_v41  ;;  %5340 = vmatpush1.bf16.msra.mxu0 %v5339_v37  ;;  %v2975_v41 = vld [vmem:[#allocation6 + $0x1d8] sm:$0xff]  ;;  %v7380_v21 = vpop.permute.xlu1 %3132 }
0x137f   :  { %5366 = vmatprep.subr.bf16.mxu1 %v5365_v36  ;;  %5342 = vmatprep.subr.bf16.mxu0 %v5341_v6  ;;  %v5377_v36 = vpack.c.bf16 %v2979_v11, %v2975_v41 }
0x1382   :  { %5368 = vmatpush1.bf16.msra.mxu1 %v5367_v9  ;;  %5344 = vmatpush1.bf16.msra.mxu0 %v5343_v38  ;;  %v7386_v37 = vpop.permute.xlu1 %3136 }
0x1383   :  { %5370 = vmatprep.subr.bf16.mxu1 %v5369_v10  ;;  %5346 = vmatprep.subr.bf16.mxu0 %v5345_v51 }
0x1386   :  { %5372 = vmatpush1.bf16.msra.mxu1 %v5371_v55  ;;  %5348 = vmatpush1.bf16.msra.mxu0 %v5347_v59  ;;  %v7390_v55 = vpop.permute.xlu1 %3140 }
0x1387   :  { %5374 = vmatprep.subr.bf16.mxu1 %v5373_v5 }
0x138a   :  { %5376 = vmatpush1.bf16.msra.mxu1 %v5375_v4  ;;  %v7399_v54 = vpop.permute.xlu1 %3144 }
0x138b   :  { %5378 = vmatprep.subr.bf16.mxu1 %v5377_v36 }
0x138e   :  { %5380 = vmatpush1.bf16.msra.mxu1 %v5379_v60  ;;  %v7406_v5 = vpop.permute.xlu1 %3164 }
0x1392   :  { %v7412_v12 = vpop.permute.xlu1 %3168 }
0x1396   :  { %v7416_v25 = vpop.permute.xlu1 %3172 }
0x139a   :  { %v7422_v38 = vpop.permute.xlu1 %3176 }
0x139e   :  { %v7426_v4 = vpop.permute.xlu1 %3196 }
0x13a2   :  { %v7432_v50 = vpop.permute.xlu1 %3200 }
0x13a6   :  { %v7436_v3 = vpop.permute.xlu1 %3204 }
0x13aa   :  { %v7442_v41 = vpop.permute.xlu1 %3208 }
0x13ae   :  { %v7446_v17 = vpop.permute.xlu1 %3228 }
0x13b2   :  { %v7456_v59 = vpop.permute.xlu1 %3232 }
0x13b6   :  { %v7462_v22 = vpop.permute.xlu1 %3236 }
0x1443   :  { %v2911_v9 = vpop.f32.mrb[22].mxu1 }
0x1444   :  { %v2912_v48 = vadd.f32 %v2911_v9, %v2841_v47  ;;  %v4897_v18 = vpop.f32.mrb[23].mxu1  ;;  %v7466_v9 = vpop.permute.xlu1 %3240 }
0x1446   :  { %v2915_v2 = vadd.f32 %v2912_v48, %v2809_v1 }
0x1448   :  { %3045 = vmatmul.mubr.f32.vlgmr.msra.gmra.mrb[24].mxu0 %v2915_v2  ;;  %3116 = vmatmul.mubr.f32.vlgmr.msra.gmra.mrb[24].mxu1 %v2915_v2  ;;  %v7472_v18 = vpop.permute.xlu1 %3260 }
0x1449   :  { %4476 = vmatprep.mubr.msk.f32.mxu0 %vm2239_vm12, %v3387_v42  ;;  %4478 = vmatprep.mubr.msk.f32.mxu1 %vm2239_vm12, %v3387_v42 }
0x144c   :  { %v7476_v28 = vpop.permute.xlu1 %3264 }
0x1450   :  { %v7482_v46 = vpop.permute.xlu1 %3268 }
0x151b   :  { %v7342_v10 = vpop.f32.mrb[24].mxu0  ;;  %v7344_v7 = vpop.f32.mrb[24].mxu1 }
0x151c   :  { %8524 = vst [vmem:[#allocation12_spill] sm:$0xff] %v7342_v10  ;;  %8525 = vst [vmem:[#allocation13_spill] sm:$0xff] %v7344_v7  ;;  %v7347_v52 = vmax.f32 %v7342_v10, 0.0  ;;  %v7349_v53 = vpop.f32.mrb[25].mxu0  ;;  %v7351_v26 = vpop.f32.mrb[25].mxu1  ;;  %v7356_v45 = vmax.f32 %v7344_v7, 0.0 }
0x151d   :  { %8527 = vst [vmem:[#allocation19_spill] sm:$0xff] %v7349_v53  ;;  %8528 = vst [vmem:[#allocation18_spill] sm:$0xff] %v7351_v26  ;;  %v7395_v6 = vmax.f32 %v7349_v53, 0.0  ;;  %v7402_v43 = vmax.f32 %v7351_v26, 0.0  ;;  %v7486_v7 = vpop.permute.xlu1 %3272 }
0x151e   :  { %8526 = vst [vmem:[#allocation14_spill] sm:$0xff] %v7347_v52  ;;  %3130 = vrot.lane.b32.xlu0 %v7347_v52, %s5749_s30  ;;  %8529 = vst [vmem:[#allocation32_spill] sm:$0xff] %v7356_v45 }
0x1521   :  { %v7492_v0 = vpop.permute.xlu1 %3292 }
0x1522   :  { %3138 = vrot.lane.b32.xlu0 %v7356_v45, %s5749_s30  ;;  %8534 = vst [vmem:[#allocation37_spill] sm:$0xff] %v7492_v0 }
0x1525   :  { %v7496_v8 = vpop.permute.xlu1 %3296 }
0x1526   :  { %3162 = vrot.lane.b32.xlu0 %v7347_v52, %s5750_s0  ;;  %8536 = vst [vmem:[#allocation39_spill] sm:$0xff] %v7496_v8 }
0x1529   :  { %v7504_v57 = vpop.permute.xlu1 %3300 }
0x152a   :  { %3170 = vrot.lane.b32.xlu0 %v7356_v45, %s5750_s0  ;;  %8538 = vst [vmem:[#allocation41_spill] sm:$0xff] %v7504_v57  ;;  %v3153_v57 = vsel %vm96_vm0, %v7399_v54, %v7380_v21 }
0x152b   :  { %v3158_v20 = vmul.f32 %v3153_v57, %v5998_v29 }
0x152e   :  { %3194 = vrot.lane.b32.xlu0 %v7347_v52, %s5751_s9 }
0x1532   :  { %3202 = vrot.lane.b32.xlu0 %v7356_v45, %s5751_s9 }
0x1536   :  { %3226 = vrot.lane.b32.xlu0 %v7347_v52, %s5752_s10 }
0x153a   :  { %3234 = vrot.lane.b32.xlu0 %v7356_v45, %s5752_s10 }
0x153e   :  { %3258 = vrot.lane.b32.xlu0 %v7347_v52, %s5753_s11 }
0x1542   :  { %3266 = vrot.lane.b32.xlu0 %v7356_v45, %s5753_s11 }
0x1546   :  { %3290 = vrot.lane.b32.xlu0 %v7347_v52, %s5754_s12 }
0x154a   :  { %3298 = vrot.lane.b32.xlu0 %v7356_v45, %s5754_s12 }
0x154e   :  { %3322 = vrot.lane.b32.xlu0 %v7347_v52, %s5755_s13 }
0x1552   :  { %3330 = vrot.lane.b32.xlu0 %v7356_v45, %s5755_s13 }
0x1556   :  { %3354 = vrot.lane.b32.xlu0 %v7347_v52, %s5757_s14 }
0x155a   :  { %3362 = vrot.lane.b32.xlu0 %v7356_v45, %s5757_s14 }
0x155e   :  { %3134 = vrot.lane.b32.xlu0 %v7395_v6, %s5749_s30 }
0x1562   :  { %3142 = vrot.lane.b32.xlu0 %v7402_v43, %s5749_s30 }
0x1566   :  { %3166 = vrot.lane.b32.xlu0 %v7395_v6, %s5750_s0 }
0x156a   :  { %3174 = vrot.lane.b32.xlu0 %v7402_v43, %s5750_s0 }
0x156e   :  { %3198 = vrot.lane.b32.xlu0 %v7395_v6, %s5751_s9 }
0x1572   :  { %3206 = vrot.lane.b32.xlu0 %v7402_v43, %s5751_s9 }
0x1576   :  { %3230 = vrot.lane.b32.xlu0 %v7395_v6, %s5752_s10 }
0x157a   :  { %3238 = vrot.lane.b32.xlu0 %v7402_v43, %s5752_s10 }
0x157e   :  { %3262 = vrot.lane.b32.xlu0 %v7395_v6, %s5753_s11 }
0x1582   :  { %3270 = vrot.lane.b32.xlu0 %v7402_v43, %s5753_s11 }
0x1586   :  { %3294 = vrot.lane.b32.xlu0 %v7395_v6, %s5754_s12 }
0x158a   :  { %3302 = vrot.lane.b32.xlu0 %v7402_v43, %s5754_s12 }
0x158e   :  { %3326 = vrot.lane.b32.xlu0 %v7395_v6, %s5755_s13 }
0x1590   :  { %v3131_v51 = vpop.permute.xlu0 %3130 }
0x1592   :  { %3334 = vrot.lane.b32.xlu0 %v7402_v43, %s5755_s13 }
0x1594   :  { %v3139_v11 = vpop.permute.xlu0 %3138 }
0x1596   :  { %3358 = vrot.lane.b32.xlu0 %v7395_v6, %s5757_s14 }
0x1598   :  { %v7452_v36 = vpop.permute.xlu0 %3162 }
0x159a   :  { %3366 = vrot.lane.b32.xlu0 %v7402_v43, %s5757_s14 }
0x159c   :  { %v7458_v56 = vpop.permute.xlu0 %3170 }
0x159e   :  { %3392 = vperm.xlu0 %5654, %v3387_v42  }
0x15a0   :  { %v7460_v60 = vpop.permute.xlu0 %3194 }
0x15a4   :  { %v7464_v47 = vpop.permute.xlu0 %3202 }
0x15a8   :  { %v7468_v1 = vpop.permute.xlu0 %3226 }
0x15ac   :  { %v7470_v48 = vpop.permute.xlu0 %3234 }
0x15b0   :  { %v7474_v2 = vpop.permute.xlu0 %3258 }
0x15b4   :  { %v7478_v49 = vpop.permute.xlu0 %3266 }
0x15b8   :  { %v7480_v42 = vpop.permute.xlu0 %3290 }
0x15b9   :  { %8530 = vst [vmem:[#allocation33_spill] sm:$0xff] %v7480_v42  ;;  %v3151_v42 = vsel %vm96_vm0, %v7380_v21, %v7386_v37 }
0x15bc   :  { %v7484_v16 = vpop.permute.xlu0 %3298 }
0x15bd   :  { %8531 = vst [vmem:[#allocation34_spill] sm:$0xff] %v7484_v16 }
0x15c0   :  { %v7488_v58 = vpop.permute.xlu0 %3322 }
0x15c1   :  { %8532 = vst [vmem:[#allocation35_spill] sm:$0xff] %v7488_v58 }
0x15c4   :  { %v7490_v26 = vpop.permute.xlu0 %3330 }
0x15c5   :  { %8533 = vst [vmem:[#allocation36_spill] sm:$0xff] %v7490_v26  ;;  %v3159_v26 = vmul.f32 %v3151_v42, %v5983_v23  ;;  %v3149_v42 = vsel %vm96_vm0, %v7386_v37, %v7390_v55 }
0x15c6   :  { %v3160_v37 = vmul.f32 %v3149_v42, %v6018_v35 }
0x15c8   :  { %v7494_v10 = vpop.permute.xlu0 %3354 }
0x15c9   :  { %8535 = vst [vmem:[#allocation38_spill] sm:$0xff] %v7494_v10 }
0x15cc   :  { %v7498_v53 = vpop.permute.xlu0 %3362 }
0x15cd   :  { %8537 = vst [vmem:[#allocation40_spill] sm:$0xff] %v7498_v53  ;;  %v3147_v53 = vsel %vm96_vm0, %v7390_v55, %v7399_v54 }
0x15ce   :  { %v3161_v52 = vmul.f32 %v3147_v53, %v6006_v31 }
0x15d0   :  { %v3135_v16 = vpop.permute.xlu0 %3134 }
0x15d1   :  { %v3150_v58 = vsel %vm96_vm0, %v3131_v51, %v3135_v16  ;;  %v3148_v10 = vsel %vm96_vm0, %v3135_v16, %v3139_v11 }
0x15d2   :  { %v3155_v0 = vmul.f32 %v3150_v58, %v5983_v23  ;;  %v3156_v16 = vmul.f32 %v3148_v10, %v6018_v35  ;;  %v7538_v10 = vpop.permute.xlu1 %3304 }
0x15d4   :  { %v3143_v8 = vpop.permute.xlu0 %3142  ;;  %v5381_v45 = vpack.c.bf16 %v3159_v26, %v3155_v0  ;;  %v3183_v0 = vsel %vm129_vm1, %v7406_v5, %v7412_v12  ;;  %v5423_v57 = vpack.c.bf16 %v3160_v37, %v3156_v16 }
0x15d5   :  { %v3146_v58 = vsel %vm96_vm0, %v3139_v11, %v3143_v8  ;;  %v3152_v23 = vsel %vm96_vm0, %v3143_v8, %v3131_v51  ;;  %v3191_v53 = vmul.f32 %v3183_v0, %v5987_v24  ;;  %v3181_v11 = vsel %vm129_vm1, %v7412_v12, %v7416_v25 }
0x15d6   :  { %v3154_v21 = vmul.f32 %v3152_v23, %v5998_v29  ;;  %v3157_v54 = vmul.f32 %v3146_v58, %v6006_v31  ;;  %5382 = vmatprep.subr.bf16.mxu0 %v5381_v45  ;;  %v7560_v58 = vpop.permute.xlu1 %3324  ;;  %v3192_v0 = vmul.f32 %v3181_v11, %v6026_v39  ;;  %v3213_v11 = vsel %vm162_vm2, %v7432_v50, %v7436_v3 }
0x15d8   :  { %v5383_v26 = vpack.c.bf16 %v3158_v20, %v3154_v21  ;;  %v3167_v8 = vpop.permute.xlu0 %3166  ;;  %v5421_v55 = vpack.c.bf16 %v3161_v52, %v3157_v54  ;;  %v3179_v20 = vsel %vm129_vm1, %v7416_v25, %v7422_v38  ;;  %v3185_v52 = vsel %vm129_vm1, %v7422_v38, %v7406_v5 }
0x15d9   :  { %v3182_v23 = vsel %vm129_vm1, %v7452_v36, %v3167_v8  ;;  %v3180_v45 = vsel %vm129_vm1, %v3167_v8, %v7458_v56  ;;  %v3190_v38 = vmul.f32 %v3185_v52, %v6002_v30  ;;  %v3193_v37 = vmul.f32 %v3179_v20, %v6014_v34 }
0x15da   :  { %v3187_v51 = vmul.f32 %v3182_v23, %v5987_v24  ;;  %5384 = vmatpush1.bf16.msra.mxu0 %v5383_v26  ;;  %5422 = vmatprep.subr.bf16.mxu1 %v5421_v55  ;;  %v3188_v21 = vmul.f32 %v3180_v45, %v6026_v39  ;;  %v3217_v20 = vsel %vm162_vm2, %v7442_v41, %v7426_v4  ;;  %v7594_v52 = vpop.permute.xlu1 %3328 }
0x15db   :  { %5424 = vmatpush1.bf16.msra.mxu1 %v5423_v57 }
0x15dc   :  { %v3175_v42 = vpop.permute.xlu0 %3174  ;;  %v5385_v16 = vpack.c.bf16 %v3191_v53, %v3187_v51  ;;  %v3211_v51 = vsel %vm162_vm2, %v7436_v3, %v7442_v41  ;;  %v3222_v41 = vmul.f32 %v3217_v20, %v6062_v13  ;;  %v3224_v3 = vmul.f32 %v3213_v11, %v6066_v14 }
0x15dd   :  { %v3178_v54 = vsel %vm129_vm1, %v7458_v56, %v3175_v42  ;;  %v3184_v5 = vsel %vm129_vm1, %v3175_v42, %v7452_v36  ;;  %v3215_v56 = vsel %vm162_vm2, %v7426_v4, %v7432_v50  ;;  %v5427_v36 = vpack.c.bf16 %v3192_v0, %v3188_v21 }
0x15de   :  { %v3186_v12 = vmul.f32 %v3184_v5, %v6002_v30  ;;  %v3189_v25 = vmul.f32 %v3178_v54, %v6014_v34  ;;  %5386 = vmatprep.subr.bf16.mxu0 %v5385_v16  ;;  %v3223_v23 = vmul.f32 %v3215_v56, %v6052_v62  ;;  %v3225_v5 = vmul.f32 %v3211_v51, %v6070_v19 }
0x15df   :  { %v3277_v51 = vsel %vm228_vm4, %v7476_v28, %v7482_v46 }
0x15e0   :  { %v5387_v26 = vpack.c.bf16 %v3190_v38, %v3186_v12  ;;  %v3199_v8 = vpop.permute.xlu0 %3198  ;;  %v5425_v55 = vpack.c.bf16 %v3193_v37, %v3189_v25 }
0x15e1   :  { %v3214_v57 = vsel %vm162_vm2, %v7460_v60, %v3199_v8  ;;  %v3212_v53 = vsel %vm162_vm2, %v3199_v8, %v7464_v47 }
0x15e2   :  { %v3219_v45 = vmul.f32 %v3214_v57, %v6052_v62  ;;  %5388 = vmatpush1.bf16.msra.mxu0 %v5387_v26  ;;  %5426 = vmatprep.subr.bf16.mxu1 %v5425_v55  ;;  %v3220_v21 = vmul.f32 %v3212_v53, %v6066_v14  ;;  %v3249_v57 = vsel %vm195_vm3, %v7466_v9, %v7446_v17 }
0x15e3   :  { %5428 = vmatpush1.bf16.msra.mxu1 %v5427_v36  ;;  %v3243_v36 = vsel %vm195_vm3, %v7462_v22, %v7466_v9  ;;  %v3254_v9 = vmul.f32 %v3249_v57, %v6078_v32 }
0x15e4   :  { %v3207_v42 = vpop.permute.xlu0 %3206  ;;  %v5389_v16 = vpack.c.bf16 %v3223_v23, %v3219_v45  ;;  %v5431_v0 = vpack.c.bf16 %v3224_v3, %v3220_v21  ;;  %v3245_v23 = vsel %vm195_vm3, %v7456_v59, %v7462_v22  ;;  %v5397_v3 = vpack.c.bf16 %v7255_v61, %v7395_v6 }
0x15e5   :  { %v3210_v54 = vsel %vm162_vm2, %v7464_v47, %v3207_v42  ;;  %v3216_v4 = vsel %vm162_vm2, %v3207_v42, %v7460_v60  ;;  %v3247_v47 = vsel %vm195_vm3, %v7446_v17, %v7456_v59  ;;  %v7616_v60 = vpop.permute.xlu1 %3332  ;;  %v3257_v59 = vmul.f32 %v3243_v36, %v6090_v40 }
0x15e6   :  { %v3218_v38 = vmul.f32 %v3216_v4, %v6062_v13  ;;  %v3221_v50 = vmul.f32 %v3210_v54, %v6070_v19  ;;  %5390 = vmatprep.subr.bf16.mxu0 %v5389_v16  ;;  %v3255_v26 = vmul.f32 %v3247_v47, %v6056_v63  ;;  %v3256_v16 = vmul.f32 %v3245_v23, %v6082_v33  ;;  %v8544_v23 = vld [vmem:[#allocation32_spill] sm:$0xff] }
0x15e7   :  { %v3275_v54 = vsel %vm228_vm4, %v7482_v46, %v7486_v7  ;;  %v3281_v46 = vsel %vm228_vm4, %v7486_v7, %v7472_v18 }
0x15e8   :  { %v5391_v37 = vpack.c.bf16 %v3222_v41, %v3218_v38  ;;  %v3231_v12 = vpop.permute.xlu0 %3230  ;;  %v5429_v25 = vpack.c.bf16 %v3225_v5, %v3221_v50 }
0x15e9   :  { %v3246_v56 = vsel %vm195_vm3, %v7468_v1, %v3231_v12  ;;  %v3244_v8 = vsel %vm195_vm3, %v3231_v12, %v7470_v48  ;;  %v7658_v21 = vpop.permute.xlu1 %3336  ;;  %v8539_v12 = vld [vmem:[#allocation15_spill] sm:$0xff] }
0x15ea   :  { %v3251_v55 = vmul.f32 %v3246_v56, %v6056_v63  ;;  %5392 = vmatpush1.bf16.msra.mxu0 %v5391_v37  ;;  %5430 = vmatprep.subr.bf16.mxu1 %v5429_v25  ;;  %v3252_v20 = vmul.f32 %v3244_v8, %v6082_v33  ;;  %v5437_v37 = vpack.c.bf16 %v7265_v44, %v7402_v43  ;;  %v8542_v8 = vld [vmem:[#allocation9_spill] sm:$0xff] }
0x15eb   :  { %5432 = vmatpush1.bf16.msra.mxu1 %v5431_v0  ;;  %v8540_v0 = vld [vmem:[#allocation17_spill] sm:$0xff] }
0x15ec   :  { %v3239_v53 = vpop.permute.xlu0 %3238  ;;  %v5393_v45 = vpack.c.bf16 %v3255_v26, %v3251_v55  ;;  %v5435_v38 = vpack.c.bf16 %v3256_v16, %v3252_v20  ;;  %v3288_v56 = vmul.f32 %v3275_v54, %v8540_v0  ;;  %v8541_v26 = vld [vmem:[#allocation14_spill] sm:$0xff]  ;;  %v8543_v55 = vld [vmem:[#allocation16_spill] sm:$0xff]  ;;  %v8547_v20 = vld [vmem:[#allocation37_spill] sm:$0xff] }
0x15ed   :  { %v3242_v11 = vsel %vm195_vm3, %v7470_v48, %v3239_v53  ;;  %v3248_v17 = vsel %vm195_vm3, %v3239_v53, %v7468_v1  ;;  %v3279_v48 = vsel %vm228_vm4, %v7472_v18, %v7476_v28  ;;  %v3287_v1 = vmul.f32 %v3277_v51, %v6122_v27  ;;  %v7686_v57 = vpop.permute.xlu1 %3356  ;;  %v8545_v53 = vld [vmem:[#allocation10_spill] sm:$0xff]  ;;  %v8546_v51 = vld [vmem:[#allocation39_spill] sm:$0xff]  ;;  %v8550_v54 = vld [vmem:[#allocation21_spill] sm:$0xff] }
0x15ee   :  { %v3250_v22 = vmul.f32 %v3248_v17, %v6078_v32  ;;  %v3253_v42 = vmul.f32 %v3242_v11, %v6090_v40  ;;  %5394 = vmatprep.subr.bf16.mxu0 %v5393_v45  ;;  %v3286_v25 = vmul.f32 %v3279_v48, %v8539_v12  ;;  %v5399_v7 = vpack.c.bf16 %v8542_v8, %v8541_v26  ;;  %v8548_v17 = vld [vmem:[#allocation41_spill] sm:$0xff]  ;;  %v8549_v48 = vld [vmem:[#allocation27_spill] sm:$0xff] }
0x15ef   :  { %v3289_v36 = vmul.f32 %v3281_v46, %v8543_v55  ;;  %v5439_v45 = vpack.c.bf16 %v8545_v53, %v8544_v23  ;;  %v3311_v11 = vsel %vm261_vm6, %v8547_v20, %v8546_v51  ;;  %v3341_v23 = vsel %vm294_vm5, %v7594_v52, %v7616_v60 }
0x15f0   :  { %v5395_v4 = vpack.c.bf16 %v3254_v9, %v3250_v22  ;;  %v3263_v41 = vpop.permute.xlu0 %3262  ;;  %v5433_v5 = vpack.c.bf16 %v3257_v59, %v3253_v42  ;;  %v3309_v9 = vsel %vm261_vm6, %v8546_v51, %v8548_v17 }
0x15f1   :  { %v3276_v50 = vsel %vm228_vm4, %v3263_v41, %v7478_v49  ;;  %v3278_v28 = vsel %vm228_vm4, %v7474_v2, %v3263_v41  ;;  %v8551_v41 = vld [vmem:[#allocation34_spill] sm:$0xff] }
0x15f2   :  { %v3283_v47 = vmul.f32 %v3276_v50, %v6122_v27  ;;  %5396 = vmatpush1.bf16.msra.mxu0 %v5395_v4  ;;  %5434 = vmatprep.subr.bf16.mxu1 %v5433_v5  ;;  %v3282_v61 = vmul.f32 %v3278_v28, %v8539_v12  ;;  %v3319_v4 = vmul.f32 %v3309_v9, %v8550_v54  ;;  %v8556_v9 = vld [vmem:[#allocation36_spill] sm:$0xff] }
0x15f3   :  { %5398 = vmatprep.subr.bf16.mxu0 %v5397_v3  ;;  %5436 = vmatpush1.bf16.msra.mxu1 %v5435_v38  ;;  %v8552_v38 = vld [vmem:[#allocation33_spill] sm:$0xff]  ;;  %v3307_v28 = vsel %vm261_vm6, %v8548_v17, %v7538_v10 }
0x15f4   :  { %v3271_v6 = vpop.permute.xlu0 %3270  ;;  %5438 = vmatprep.subr.bf16.mxu1 %v5437_v37  ;;  %v5401_v18 = vpack.c.bf16 %v3287_v1, %v3283_v47  ;;  %v3318_v1 = vmul.f32 %v3311_v11, %v8549_v48  ;;  %v3313_v47 = vsel %vm261_vm6, %v7538_v10, %v8547_v20  ;;  %v3361_v37 = vpop.permute.xlu1 %3360  ;;  %v3343_v10 = vsel %vm294_vm5, %v7560_v58, %v7594_v52  ;;  %v8555_v20 = vld [vmem:[#allocation23_spill] sm:$0xff] }
0x15f5   :  { %v3274_v44 = vsel %vm228_vm4, %v7478_v49, %v3271_v6  ;;  %v3280_v43 = vsel %vm228_vm4, %v3271_v6, %v7474_v2  ;;  %v5403_v2 = vpack.c.bf16 %v3286_v25, %v3282_v61  ;;  %v8553_v6 = vld [vmem:[#allocation22_spill] sm:$0xff]  ;;  %v3350_v11 = vmul.f32 %v3343_v10, %v8555_v20 }
0x15f6   :  { %v3284_v59 = vmul.f32 %v3274_v44, %v8540_v0  ;;  %v3285_v49 = vmul.f32 %v3280_v43, %v8543_v55  ;;  %5400 = vmatpush1.bf16.msra.mxu0 %v5399_v7  ;;  %v3320_v26 = vmul.f32 %v3307_v28, %v8553_v6  ;;  %v3339_v52 = vsel %vm294_vm5, %v7616_v60, %v7658_v21 }
0x15f7   :  { %5402 = vmatprep.subr.bf16.mxu0 %v5401_v18  ;;  %5440 = vmatpush1.bf16.msra.mxu1 %v5439_v45  ;;  %v8554_v18 = vld [vmem:[#allocation20_spill] sm:$0xff] }
0x15f8   :  { %v5443_v22 = vpack.c.bf16 %v3288_v56, %v3284_v59  ;;  %v3295_v42 = vpop.permute.xlu0 %3294  ;;  %v5441_v16 = vpack.c.bf16 %v3289_v36, %v3285_v49  ;;  %v3321_v36 = vmul.f32 %v3313_v47, %v8554_v18  ;;  %v3365_v17 = vpop.permute.xlu1 %3364  ;;  %v8557_v49 = vld [vmem:[#allocation35_spill] sm:$0xff] }
0x15f9   :  { %v3308_v5 = vsel %vm261_vm6, %v3295_v42, %v8551_v41  ;;  %v3310_v50 = vsel %vm261_vm6, %v8552_v38, %v3295_v42 }
0x15fa   :  { %v3314_v3 = vmul.f32 %v3310_v50, %v8549_v48  ;;  %v3315_v46 = vmul.f32 %v3308_v5, %v8550_v54  ;;  %5404 = vmatpush1.bf16.msra.mxu0 %v5403_v2  ;;  %5442 = vmatprep.subr.bf16.mxu1 %v5441_v16  ;;  %v8559_v50 = vld [vmem:[#allocation26_spill] sm:$0xff] }
0x15fb   :  { %5444 = vmatpush1.bf16.msra.mxu1 %v5443_v22  ;;  %v8558_v22 = vld [vmem:[#allocation25_spill] sm:$0xff]  ;;  %v3352_v28 = vmul.f32 %v3339_v52, %v8559_v50  ;;  %v7803_v52 = vld [vmem:[%s8417_s2 + $0x30] ss:$0 sm:$0xff] }
0x15fc   :  { %v5407_v25 = vpack.c.bf16 %v3318_v1, %v3314_v3  ;;  %v3303_v56 = vpop.permute.xlu0 %3302  ;;  %v5405_v61 = vpack.c.bf16 %v3319_v4, %v3315_v46  ;;  %v3351_v42 = vmul.f32 %v3341_v23, %v8558_v22  ;;  %v3345_v4 = vsel %vm294_vm5, %v7658_v21, %v7560_v58  ;;  %v8560_v46 = vld [vmem:[#allocation24_spill] sm:$0xff]  ;;  %v8562_v23 = vld [vmem:[#allocation38_spill] sm:$0xff] }
0x15fd   :  { %v3306_v8 = vsel %vm261_vm6, %v8551_v41, %v3303_v56  ;;  %v3312_v7 = vsel %vm261_vm6, %v3303_v56, %v8552_v38  ;;  %v3353_v47 = vmul.f32 %v3345_v4, %v8560_v46  ;;  %v3375_v58 = vsel %vm327_vm7, %v7686_v57, %v3361_v37 }
0x15fe   :  { %v3316_v44 = vmul.f32 %v3306_v8, %v8553_v6  ;;  %v3317_v43 = vmul.f32 %v3312_v7, %v8554_v18  ;;  %5406 = vmatprep.subr.bf16.mxu0 %v5405_v61  ;;  %v3373_v56 = vsel %vm327_vm7, %v3361_v37, %v3365_v17  ;;  %v3369_v61 = vpop.permute.xlu1 %3368 }
0x15ff   :  { %5408 = vmatpush1.bf16.msra.mxu0 %v5407_v25 }
0x1600   :  { %v5447_v53 = vpack.c.bf16 %v3320_v26, %v3316_v44  ;;  %v3327_v45 = vpop.permute.xlu0 %3326  ;;  %v5445_v51 = vpack.c.bf16 %v3321_v36, %v3317_v43  ;;  %v7778_v36 = vld [vmem:[%s8417_s2 + $0x20] ss:$0 sm:$0xff] }
0x1601   :  { %v3340_v59 = vsel %vm294_vm5, %v3327_v45, %v8556_v9  ;;  %v3342_v2 = vsel %vm294_vm5, %v8557_v49, %v3327_v45  ;;  %v3382_v10 = vmul.f32 %v7778_v36, %v3375_v58  ;;  %v8561_v44 = vld [vmem:[#allocation40_spill] sm:$0xff] }
0x1602   :  { %v3346_v16 = vmul.f32 %v3342_v2, %v8555_v20  ;;  %v3347_v1 = vmul.f32 %v3340_v59, %v8558_v22  ;;  %5446 = vmatprep.subr.bf16.mxu1 %v5445_v51  ;;  %v3371_v51 = vsel %vm327_vm7, %v3365_v17, %v3369_v61  ;;  %v3377_v59 = vsel %vm327_vm7, %v3369_v61, %v7686_v57  ;;  %v7815_v57 = vld [vmem:[%s8417_s2 + $0x38] ss:$0 sm:$0xff]  ;;  %v8565_v58 = vld [vmem:[#allocation12_spill] sm:$0xff]  ;;  %v8568_v61 = vld [vmem:[#allocation30_spill] sm:$0xff] }
0x1603   :  { %5448 = vmatpush1.bf16.msra.mxu1 %v5447_v53  ;;  %v7790_v53 = vld [vmem:[%s8417_s2 + $0x28] ss:$0 sm:$0xff]  ;;  %v3384_v17 = vmul.f32 %v7803_v52, %v3371_v51  ;;  %v3385_v4 = vmul.f32 %v7815_v57, %v3377_v59 }
0x1604   :  { %v5411_v41 = vpack.c.bf16 %v3350_v11, %v3346_v16  ;;  %v3335_v5 = vpop.permute.xlu0 %3334  ;;  %v5409_v38 = vpack.c.bf16 %v3351_v42, %v3347_v1  ;;  %v3383_v45 = vmul.f32 %v7790_v53, %v3373_v56  ;;  %v8567_v56 = vld [vmem:[#allocation18_spill] sm:$0xff] }
0x1605   :  { %v3338_v60 = vsel %vm294_vm5, %v8556_v9, %v3335_v5  ;;  %v3344_v3 = vsel %vm294_vm5, %v3335_v5, %v8557_v49  ;;  %v8564_v5 = vld [vmem:[#allocation28_spill] sm:$0xff] }
0x1606   :  { %v3348_v21 = vmul.f32 %v3338_v60, %v8559_v50  ;;  %v3349_v25 = vmul.f32 %v3344_v3, %v8560_v46  ;;  %5410 = vmatprep.subr.bf16.mxu0 %v5409_v38 }
0x1607   :  { %5412 = vmatpush1.bf16.msra.mxu0 %v5411_v41  ;;  %v8563_v41 = vld [vmem:[#allocation19_spill] sm:$0xff] }
0x1608   :  { %v5451_v26 = vpack.c.bf16 %v3352_v28, %v3348_v21  ;;  %v3359_v8 = vpop.permute.xlu0 %3358  ;;  %v5449_v7 = vpack.c.bf16 %v3353_v47, %v3349_v25  ;;  %v5417_v38 = vpack.c.bf16 %v8564_v5, %v8563_v41  ;;  %v8566_v21 = vld [vmem:[#allocation29_spill] sm:$0xff]  ;;  %v8571_v41 = vmov 0.0   ;;  %v7904_v5 = vld [vmem:[#allocation2 + $0xc0] sm:$0xff] }
0x1609   :  { %v3372_v43 = vsel %vm327_vm7, %v3359_v8, %v8561_v44  ;;  %v3374_v37 = vsel %vm327_vm7, %v8562_v23, %v3359_v8  ;;  %v5419_v25 = vpack.c.bf16 %v8566_v21, %v8565_v58  ;;  %v3386_v8 = vld [vmem:[#allocation2 + $0x90] sm:$0xff] }
0x160a   :  { %v3378_v11 = vmul.f32 %v7778_v36, %v3374_v37  ;;  %v3379_v9 = vmul.f32 %v7790_v53, %v3372_v43  ;;  %5450 = vmatprep.subr.bf16.mxu1 %v5449_v7  ;;  %v8569_v7 = vld [vmem:[#allocation13_spill] sm:$0xff]  ;;  %v3389_v43 = vld [vmem:[#allocation2 + $0xb0] sm:$0xff] }
0x160b   :  { %5452 = vmatpush1.bf16.msra.mxu1 %v5451_v26  ;;  %v5457_v26 = vpack.c.bf16 %v8568_v61, %v8567_v56 }
0x160c   :  { %v5415_v49 = vpack.c.bf16 %v3382_v10, %v3378_v11  ;;  %v3367_v2 = vpop.permute.xlu0 %3366  ;;  %v5413_v42 = vpack.c.bf16 %v3383_v45, %v3379_v9  ;;  %v8570_v10 = vld [vmem:[#allocation31_spill] sm:$0xff] }
0x160d   :  { %v3370_v16 = vsel %vm327_vm7, %v8561_v44, %v3367_v2  ;;  %v3376_v1 = vsel %vm327_vm7, %v3367_v2, %v8562_v23  ;;  %v5459_v44 = vpack.c.bf16 %v8570_v10, %v8569_v7 }
0x160e   :  { %v3380_v28 = vmul.f32 %v7803_v52, %v3370_v16  ;;  %v3381_v60 = vmul.f32 %v7815_v57, %v3376_v1  ;;  %5414 = vmatprep.subr.bf16.mxu0 %v5413_v42 }
0x160f   :  { %5416 = vmatpush1.bf16.msra.mxu0 %v5415_v49 }
0x1610   :  { %v5455_v3 = vpack.c.bf16 %v3384_v17, %v3380_v28  ;;  %5418 = vmatprep.subr.bf16.mxu0 %v5417_v38  ;;  %v5453_v47 = vpack.c.bf16 %v3385_v4, %v3381_v60  ;;  %v3388_v4 = vld [vmem:[#allocation2 + $0xa8] sm:$0xff]  ;;  %v8572_v38 = vmov 80  }
0x1612   :  { %5454 = vmatprep.subr.bf16.mxu1 %v5453_v47 }
0x1613   :  { %5420 = vmatpush1.bf16.msra.mxu0 %v5419_v25  ;;  %5456 = vmatpush1.bf16.msra.mxu1 %v5455_v3 }
0x1614   :  { %5458 = vmatprep.subr.bf16.mxu1 %v5457_v26  ;;  %v8573_v26 = vld [vmem:[#allocation11_spill] sm:$0xff] }
0x1616   :  { %3469 = vmatmul.mubr.f32.vlgmr.msra.gmra.mrb[26].mxu0 %v3386_v8 }
0x1617   :  { %5460 = vmatpush1.bf16.msra.mxu1 %v5459_v44  ;;  %4477 = vmatprep.mubr.msk.f32.mxu0 %vm2239_vm12, %v3389_v43 }
0x161a   :  { %3546 = vmatmul.mubr.f32.vlgmr.msra.gmra.mrb[26].mxu1 %v3386_v8  ;;  %3475 = vmatmul.mubr.f32.gmra.mrb[28].mxu0 %v3388_v4 }
0x161b   :  { %4479 = vmatprep.mubr.msk.f32.mxu1 %vm2239_vm12, %v3389_v43  ;;  %3762 = vmatprep.mubr.f32.mxu0 %v8571_v41 }
0x161d   :  { %v3393_v23 = vpop.permute.xlu0 %3392 }
0x161e   :  { %3552 = vmatmul.mubr.f32.gmra.mrb[28].mxu1 %v3388_v4 }
0x161f   :  { %3833 = vmatprep.mubr.f32.mxu1 %v8571_v41 }
0x16e9   :  { %v3470_v37 = vpop.f32.mrb[26].mxu0 }
0x16ea   :  { %v3471_v45 = vadd.f32 %v3470_v37, %v3393_v23  ;;  %v3472_v51 = vpop.f32.mrb[27].mxu0 }
0x16eb   :  { %v3473_v9 = vadd.f32 %v3472_v51, %v3393_v23 }
0x16ec   :  { %v7830_v11 = vmax.f32 %v3471_v45, 0.0 }
0x16ed   :  { %v3547_v59 = vpop.f32.mrb[26].mxu1  ;;  %v7834_v42 = vmax.f32 %v3473_v9, 0.0 }
0x16ee   :  { %v3548_v49 = vadd.f32 %v3547_v59, %v3393_v23  ;;  %3562 = vrot.lane.b32.xlu1 %v7830_v11, %s5749_s30  ;;  %v3549_v2 = vpop.f32.mrb[27].mxu1 }
0x16ef   :  { %v3550_v16 = vadd.f32 %v3549_v2, %v3393_v23 }
0x16f0   :  { %v7836_v17 = vmax.f32 %v3548_v49, 0.0 }
0x16f1   :  { %v7842_v1 = vmax.f32 %v3550_v16, 0.0 }
0x16f2   :  { %3564 = vrot.lane.b32.xlu1 %v7834_v42, %s5749_s30  ;;  %3566 = vrot.lane.b32.xlu0 %v7836_v17, %s5749_s30 }
0x16f6   :  { %3568 = vrot.lane.b32.xlu1 %v7842_v1, %s5749_s30  ;;  %3578 = vrot.lane.b32.xlu0 %v7830_v11, %s5750_s0 }
0x16fa   :  { %3580 = vrot.lane.b32.xlu1 %v7834_v42, %s5750_s0  ;;  %3582 = vrot.lane.b32.xlu0 %v7836_v17, %s5750_s0 }
0x16fe   :  { %3584 = vrot.lane.b32.xlu1 %v7842_v1, %s5750_s0  ;;  %3594 = vrot.lane.b32.xlu0 %v7830_v11, %s5751_s9 }
0x1702   :  { %3596 = vrot.lane.b32.xlu1 %v7834_v42, %s5751_s9  ;;  %3598 = vrot.lane.b32.xlu0 %v7836_v17, %s5751_s9 }
0x1706   :  { %3600 = vrot.lane.b32.xlu1 %v7842_v1, %s5751_s9  ;;  %3610 = vrot.lane.b32.xlu0 %v7830_v11, %s5752_s10 }
0x170a   :  { %3612 = vrot.lane.b32.xlu1 %v7834_v42, %s5752_s10  ;;  %3614 = vrot.lane.b32.xlu0 %v7836_v17, %s5752_s10 }
0x170e   :  { %3616 = vrot.lane.b32.xlu1 %v7842_v1, %s5752_s10  ;;  %3626 = vrot.lane.b32.xlu0 %v7830_v11, %s5753_s11 }
0x1712   :  { %3628 = vrot.lane.b32.xlu1 %v7834_v42, %s5753_s11  ;;  %3630 = vrot.lane.b32.xlu0 %v7836_v17, %s5753_s11 }
0x1716   :  { %3632 = vrot.lane.b32.xlu1 %v7842_v1, %s5753_s11  ;;  %3642 = vrot.lane.b32.xlu0 %v7830_v11, %s5754_s12 }
0x171a   :  { %3644 = vrot.lane.b32.xlu1 %v7834_v42, %s5754_s12  ;;  %3646 = vrot.lane.b32.xlu0 %v7836_v17, %s5754_s12 }
0x171e   :  { %3648 = vrot.lane.b32.xlu1 %v7842_v1, %s5754_s12  ;;  %3658 = vrot.lane.b32.xlu0 %v7830_v11, %s5755_s13 }
0x1722   :  { %3660 = vrot.lane.b32.xlu1 %v7834_v42, %s5755_s13  ;;  %3662 = vrot.lane.b32.xlu0 %v7836_v17, %s5755_s13 }
0x1726   :  { %3664 = vrot.lane.b32.xlu1 %v7842_v1, %s5755_s13  ;;  %3674 = vrot.lane.b32.xlu0 %v7830_v11, %s5757_s14 }
0x172a   :  { %3676 = vrot.lane.b32.xlu1 %v7834_v42, %s5757_s14  ;;  %3678 = vrot.lane.b32.xlu0 %v7836_v17, %s5757_s14 }
0x172e   :  { %3680 = vrot.lane.b32.xlu1 %v7842_v1, %s5757_s14  ;;  %3397 = vperm.xlu0 %5654, %v3389_v43  }
0x1732   :  { %3693 = vperm.xlu1 %5652, %v7904_v5   ;;  %5655 = vset.pattern.permute.xlu0 %v8572_v38 }
0x1760   :  { %v3563_v28 = vpop.permute.xlu1 %3562 }
0x1764   :  { %v3567_v60 = vpop.permute.xlu0 %3566  ;;  %v3565_v3 = vpop.permute.xlu1 %3564 }
0x1765   :  { %v3572_v21 = vsel %vm96_vm0, %v3563_v28, %v3565_v3  ;;  %v3571_v23 = vsel %vm96_vm0, %v3565_v3, %v3567_v60 }
0x1766   :  { %v3575_v8 = vmul.f32 %v3572_v21, %v8573_v26 }
0x1768   :  { %v3579_v47 = vpop.permute.xlu0 %3578  ;;  %v3569_v58 = vpop.permute.xlu1 %3568 }
0x1769   :  { %v3570_v44 = vsel %vm96_vm0, %v3567_v60, %v3569_v58  ;;  %v3573_v43 = vsel %vm96_vm0, %v3569_v58, %v3563_v28  ;;  %v3576_v28 = vmul.f32 %v3571_v23, %v6018_v35 }
0x176a   :  { %v3574_v2 = vmul.f32 %v3573_v43, %v5998_v29  ;;  %v3577_v16 = vmul.f32 %v3570_v44, %v6006_v31 }
0x176c   :  { %v3583_v25 = vpop.permute.xlu0 %3582  ;;  %v3581_v56 = vpop.permute.xlu1 %3580 }
0x176d   :  { %v3588_v61 = vsel %vm129_vm1, %v3579_v47, %v3581_v56  ;;  %v3587_v7 = vsel %vm129_vm1, %v3581_v56, %v3583_v25 }
0x176e   :  { %v3591_v10 = vmul.f32 %v3588_v61, %v5987_v24  ;;  %v3592_v9 = vmul.f32 %v3587_v7, %v6026_v39 }
0x1770   :  { %v3595_v37 = vpop.permute.xlu0 %3594  ;;  %v3585_v45 = vpop.permute.xlu1 %3584  ;;  %v5461_v51 = vpack.c.bf16 %v3591_v10, %v3575_v8  ;;  %v5479_v56 = vpack.c.bf16 %v3592_v9, %v3576_v28 }
0x1771   :  { %v3586_v59 = vsel %vm129_vm1, %v3583_v25, %v3585_v45  ;;  %v3589_v49 = vsel %vm129_vm1, %v3585_v45, %v3579_v47 }
0x1772   :  { %v3590_v4 = vmul.f32 %v3589_v49, %v6002_v30  ;;  %v3593_v38 = vmul.f32 %v3586_v59, %v6014_v34  ;;  %5462 = vmatprep.subr.bf16.mxu0 %v5461_v51 }
0x1774   :  { %v5463_v60 = vpack.c.bf16 %v3590_v4, %v3574_v2  ;;  %v3599_v3 = vpop.permute.xlu0 %3598  ;;  %v3597_v58 = vpop.permute.xlu1 %3596  ;;  %v5477_v21 = vpack.c.bf16 %v3593_v38, %v3577_v16 }
0x1775   :  { %v3604_v61 = vsel %vm162_vm2, %v3595_v37, %v3597_v58  ;;  %v3603_v9 = vsel %vm162_vm2, %v3597_v58, %v3599_v3 }
0x1776   :  { %5464 = vmatpush1.bf16.msra.mxu0 %v5463_v60  ;;  %5478 = vmatprep.subr.bf16.mxu1 %v5477_v21  ;;  %v3607_v44 = vmul.f32 %v3604_v61, %v6052_v62 }
0x1777   :  { %5480 = vmatpush1.bf16.msra.mxu1 %v5479_v56 }
0x1778   :  { %v3611_v47 = vpop.permute.xlu0 %3610  ;;  %v3601_v25 = vpop.permute.xlu1 %3600 }
0x1779   :  { %v3602_v45 = vsel %vm162_vm2, %v3599_v3, %v3601_v25  ;;  %v3605_v51 = vsel %vm162_vm2, %v3601_v25, %v3595_v37  ;;  %v3608_v3 = vmul.f32 %v3603_v9, %v6066_v14 }
0x177a   :  { %v3606_v28 = vmul.f32 %v3605_v51, %v6062_v13  ;;  %v3609_v60 = vmul.f32 %v3602_v45, %v6070_v19 }
0x177c   :  { %v3615_v8 = vpop.permute.xlu0 %3614  ;;  %v3613_v7 = vpop.permute.xlu1 %3612 }
0x177d   :  { %v3620_v10 = vsel %vm195_vm3, %v3611_v47, %v3613_v7  ;;  %v3619_v43 = vsel %vm195_vm3, %v3613_v7, %v3615_v8 }
0x177e   :  { %v3623_v23 = vmul.f32 %v3620_v10, %v6056_v63  ;;  %v3624_v16 = vmul.f32 %v3619_v43, %v6082_v33 }
0x1780   :  { %v3627_v59 = vpop.permute.xlu0 %3626  ;;  %v3617_v49 = vpop.permute.xlu1 %3616  ;;  %v5465_v2 = vpack.c.bf16 %v3623_v23, %v3607_v44  ;;  %v5483_v7 = vpack.c.bf16 %v3624_v16, %v3608_v3 }
0x1781   :  { %v3618_v4 = vsel %vm195_vm3, %v3615_v8, %v3617_v49  ;;  %v3621_v38 = vsel %vm195_vm3, %v3617_v49, %v3611_v47 }
0x1782   :  { %v3622_v37 = vmul.f32 %v3621_v38, %v6078_v32  ;;  %v3625_v21 = vmul.f32 %v3618_v4, %v6090_v40  ;;  %5466 = vmatprep.subr.bf16.mxu0 %v5465_v2 }
0x1784   :  { %v5467_v58 = vpack.c.bf16 %v3622_v37, %v3606_v28  ;;  %v3631_v56 = vpop.permute.xlu0 %3630  ;;  %v3629_v25 = vpop.permute.xlu1 %3628  ;;  %v5481_v61 = vpack.c.bf16 %v3625_v21, %v3609_v60 }
0x1785   :  { %v3635_v8 = vsel %vm228_vm4, %v3629_v25, %v3631_v56  ;;  %v3636_v47 = vsel %vm228_vm4, %v3627_v59, %v3629_v25 }
0x1786   :  { %v3638_v10 = vmul.f32 %v3636_v47, %v8539_v12  ;;  %v3639_v44 = vmul.f32 %v3635_v8, %v6122_v27  ;;  %5468 = vmatpush1.bf16.msra.mxu0 %v5467_v58  ;;  %5482 = vmatprep.subr.bf16.mxu1 %v5481_v61 }
0x1787   :  { %5484 = vmatpush1.bf16.msra.mxu1 %v5483_v7 }
0x1788   :  { %v5471_v43 = vpack.c.bf16 %v3638_v10, %v7830_v11  ;;  %v3643_v23 = vpop.permute.xlu0 %3642  ;;  %v3633_v45 = vpop.permute.xlu1 %3632  ;;  %v5469_v51 = vpack.c.bf16 %v3639_v44, %v7834_v42 }
0x1789   :  { %v3634_v9 = vsel %vm228_vm4, %v3631_v56, %v3633_v45  ;;  %v3637_v49 = vsel %vm228_vm4, %v3633_v45, %v3627_v59 }
0x178a   :  { %v3640_v2 = vmul.f32 %v3634_v9, %v8540_v0  ;;  %v3641_v16 = vmul.f32 %v3637_v49, %v8543_v55  ;;  %5470 = vmatprep.subr.bf16.mxu0 %v5469_v51 }
0x178b   :  { %5472 = vmatpush1.bf16.msra.mxu0 %v5471_v43 }
0x178c   :  { %v5487_v4 = vpack.c.bf16 %v3640_v2, %v7836_v17  ;;  %v3647_v38 = vpop.permute.xlu0 %3646  ;;  %v3645_v11 = vpop.permute.xlu1 %3644  ;;  %v5485_v28 = vpack.c.bf16 %v3641_v16, %v7842_v1 }
0x178d   :  { %v3651_v37 = vsel %vm261_vm6, %v3645_v11, %v3647_v38  ;;  %v3652_v59 = vsel %vm261_vm6, %v3643_v23, %v3645_v11 }
0x178e   :  { %5486 = vmatprep.subr.bf16.mxu1 %v5485_v28  ;;  %v3654_v1 = vmul.f32 %v3652_v59, %v8549_v48  ;;  %v3655_v56 = vmul.f32 %v3651_v37, %v8550_v54 }
0x178f   :  { %5488 = vmatpush1.bf16.msra.mxu1 %v5487_v4 }
0x1790   :  { %v3659_v42 = vpop.permute.xlu0 %3658  ;;  %v3649_v60 = vpop.permute.xlu1 %3648 }
0x1791   :  { %v3650_v7 = vsel %vm261_vm6, %v3647_v38, %v3649_v60  ;;  %v3653_v8 = vsel %vm261_vm6, %v3649_v60, %v3643_v23 }
0x1792   :  { %v3656_v9 = vmul.f32 %v3650_v7, %v8553_v6  ;;  %v3657_v49 = vmul.f32 %v3653_v8, %v8554_v18 }
0x1794   :  { %v3663_v21 = vpop.permute.xlu0 %3662  ;;  %v3661_v3 = vpop.permute.xlu1 %3660 }
0x1795   :  { %v3667_v58 = vsel %vm294_vm5, %v3661_v3, %v3663_v21  ;;  %v3668_v17 = vsel %vm294_vm5, %v3659_v42, %v3661_v3 }
0x1796   :  { %v3670_v25 = vmul.f32 %v3668_v17, %v8555_v20  ;;  %v3671_v61 = vmul.f32 %v3667_v58, %v8558_v22 }
0x1798   :  { %v5475_v47 = vpack.c.bf16 %v3670_v25, %v3654_v1  ;;  %v3675_v10 = vpop.permute.xlu0 %3674  ;;  %v3665_v44 = vpop.permute.xlu1 %3664  ;;  %v5473_v43 = vpack.c.bf16 %v3671_v61, %v3655_v56 }
0x1799   :  { %v3666_v45 = vsel %vm294_vm5, %v3663_v21, %v3665_v44  ;;  %v3669_v51 = vsel %vm294_vm5, %v3665_v44, %v3659_v42 }
0x179a   :  { %v3672_v2 = vmul.f32 %v3666_v45, %v8559_v50  ;;  %v3673_v16 = vmul.f32 %v3669_v51, %v8560_v46  ;;  %5474 = vmatprep.subr.bf16.mxu0 %v5473_v43 }
0x179b   :  { %5476 = vmatpush1.bf16.msra.mxu0 %v5475_v47 }
0x179c   :  { %v5491_v23 = vpack.c.bf16 %v3672_v2, %v3656_v9  ;;  %v3679_v4 = vpop.permute.xlu0 %3678  ;;  %v3677_v38 = vpop.permute.xlu1 %3676  ;;  %v5489_v11 = vpack.c.bf16 %v3673_v16, %v3657_v49  ;;  %v8098_v2 = vld [vmem:[#allocation2 + $0xd8] sm:$0xff] }
0x179d   :  { %v3683_v28 = vsel %vm327_vm7, %v3677_v38, %v3679_v4  ;;  %v3684_v42 = vsel %vm327_vm7, %v3675_v10, %v3677_v38 }
0x179e   :  { %v3686_v60 = vmul.f32 %v7778_v36, %v3684_v42  ;;  %v3687_v37 = vmul.f32 %v7790_v53, %v3683_v28  ;;  %5490 = vmatprep.subr.bf16.mxu1 %v5489_v11 }
0x179f   :  { %5492 = vmatpush1.bf16.msra.mxu1 %v5491_v23 }
0x17a0   :  { %3714 = vmatprep.subr.mxu0 %v3687_v37  ;;  %v3681_v59 = vpop.permute.xlu1 %3680 }
0x17a1   :  { %v3682_v21 = vsel %vm327_vm7, %v3679_v4, %v3681_v59  ;;  %v3685_v3 = vsel %vm327_vm7, %v3681_v59, %v3675_v10  ;;  %3715 = vmatpush1.msra.mxu0 %v3686_v60 }
0x17a2   :  { %v3688_v58 = vmul.f32 %v7803_v52, %v3682_v21  ;;  %v3689_v17 = vmul.f32 %v7815_v57, %v3685_v3  ;;  %4480 = vmatmul.mubr.msk.f32.vlgmr.msra.gmra.mrb[28].mxu0 %vm661_vm9, %v7904_v5 }
0x17a3   :  { %4056 = vmatprep.mubr.f32.mxu0 %v8571_v41 }
0x17a4   :  { %3785 = vmatprep.subr.mxu1 %v3689_v17 }
0x17a5   :  { %3786 = vmatpush1.msra.mxu1 %v3688_v58 }
0x17a6   :  { %4481 = vmatmul.mubr.msk.f32.vlgmr.msra.gmra.mrb[28].mxu1 %vm661_vm9, %v7904_v5 }
0x17a7   :  { %4133 = vmatprep.mubr.f32.mxu1 %v8571_v41 }
0x17ad   :  { %v3398_v56 = vpop.permute.xlu0 %3397 }
0x17b1   :  { %v3694_v1 = vpop.permute.xlu1 %3693 }
0x17b2   :  { %v5581_v25 = vadd.f32 %v3694_v1, %v3398_v56 }
0x1875   :  { %v3764_v61 = vpop.f32.mrb[28].mxu0 }
0x1876   :  { %v8014_v7 = vadd.f32 %v5581_v25, %v3764_v61  ;;  %v3766_v8 = vpop.f32.mrb[29].mxu0 }
0x1877   :  { %v8016_v47 = vadd.f32 %v5581_v25, %v3766_v8 }
0x1878   :  { %v8019_v10 = vmax.f32 %v8014_v7, 0.0 }
0x1879   :  { %v8022_v44 = vmax.f32 %v8016_v47, 0.0  ;;  %v3835_v43 = vpop.f32.mrb[28].mxu1 }
0x187a   :  { %v8024_v45 = vadd.f32 %v5581_v25, %v3835_v43  ;;  %v3837_v5 = vpop.f32.mrb[29].mxu1  ;;  %3848 = vrot.lane.b32.xlu0 %v8019_v10, %s5749_s30 }
0x187b   :  { %v8028_v51 = vadd.f32 %v5581_v25, %v3837_v5  ;;  %3850 = vrot.lane.b32.xlu1 %v8022_v44, %s5749_s30 }
0x187c   :  { %v8033_v9 = vmax.f32 %v8024_v45, 0.0 }
0x187d   :  { %v8036_v49 = vmax.f32 %v8028_v51, 0.0 }
0x187e   :  { %3852 = vrot.lane.b32.xlu0 %v8033_v9, %s5749_s30 }
0x187f   :  { %3854 = vrot.lane.b32.xlu1 %v8036_v49, %s5749_s30 }
0x1882   :  { %3864 = vrot.lane.b32.xlu0 %v8019_v10, %s5750_s0 }
0x1883   :  { %3866 = vrot.lane.b32.xlu1 %v8022_v44, %s5750_s0 }
0x1886   :  { %3868 = vrot.lane.b32.xlu0 %v8033_v9, %s5750_s0 }
0x1887   :  { %3870 = vrot.lane.b32.xlu1 %v8036_v49, %s5750_s0 }
0x188a   :  { %3880 = vrot.lane.b32.xlu0 %v8019_v10, %s5751_s9 }
0x188b   :  { %3882 = vrot.lane.b32.xlu1 %v8022_v44, %s5751_s9 }
0x188e   :  { %3884 = vrot.lane.b32.xlu0 %v8033_v9, %s5751_s9 }
0x188f   :  { %3886 = vrot.lane.b32.xlu1 %v8036_v49, %s5751_s9 }
0x1892   :  { %3896 = vrot.lane.b32.xlu0 %v8019_v10, %s5752_s10 }
0x1893   :  { %3898 = vrot.lane.b32.xlu1 %v8022_v44, %s5752_s10 }
0x1896   :  { %3900 = vrot.lane.b32.xlu0 %v8033_v9, %s5752_s10 }
0x1897   :  { %3902 = vrot.lane.b32.xlu1 %v8036_v49, %s5752_s10 }
0x189a   :  { %3912 = vrot.lane.b32.xlu0 %v8019_v10, %s5753_s11 }
0x189b   :  { %3914 = vrot.lane.b32.xlu1 %v8022_v44, %s5753_s11 }
0x189e   :  { %3916 = vrot.lane.b32.xlu0 %v8033_v9, %s5753_s11 }
0x189f   :  { %3918 = vrot.lane.b32.xlu1 %v8036_v49, %s5753_s11 }
0x18a2   :  { %3928 = vrot.lane.b32.xlu0 %v8019_v10, %s5754_s12 }
0x18a3   :  { %3930 = vrot.lane.b32.xlu1 %v8022_v44, %s5754_s12 }
0x18a6   :  { %3932 = vrot.lane.b32.xlu0 %v8033_v9, %s5754_s12 }
0x18a7   :  { %3934 = vrot.lane.b32.xlu1 %v8036_v49, %s5754_s12 }
0x18aa   :  { %3944 = vrot.lane.b32.xlu0 %v8019_v10, %s5755_s13 }
0x18ab   :  { %3946 = vrot.lane.b32.xlu1 %v8022_v44, %s5755_s13 }
0x18ae   :  { %3948 = vrot.lane.b32.xlu0 %v8033_v9, %s5755_s13 }
0x18af   :  { %3950 = vrot.lane.b32.xlu1 %v8036_v49, %s5755_s13 }
0x18b2   :  { %3960 = vrot.lane.b32.xlu0 %v8019_v10, %s5757_s14 }
0x18b3   :  { %3962 = vrot.lane.b32.xlu1 %v8022_v44, %s5757_s14 }
0x18b6   :  { %3964 = vrot.lane.b32.xlu0 %v8033_v9, %s5757_s14 }
0x18b7   :  { %3966 = vrot.lane.b32.xlu1 %v8036_v49, %s5757_s14 }
0x18ba   :  { %3980 = vperm.xlu0 %5655, %v8098_v2  }
0x18ec   :  { %v3849_v16 = vpop.permute.xlu0 %3848 }
0x18ed   :  { %v3851_v23 = vpop.permute.xlu1 %3850 }
0x18ee   :  { %v3858_v11 = vsel %vm96_vm0, %v3849_v16, %v3851_v23 }
0x18ef   :  { %v3861_v37 = vmul.f32 %v3858_v11, %v8573_v26 }
0x18f0   :  { %v3853_v4 = vpop.permute.xlu0 %3852 }
0x18f1   :  { %v3855_v38 = vpop.permute.xlu1 %3854  ;;  %v3857_v17 = vsel %vm96_vm0, %v3851_v23, %v3853_v4 }
0x18f2   :  { %v3856_v21 = vsel %vm96_vm0, %v3853_v4, %v3855_v38  ;;  %v3859_v3 = vsel %vm96_vm0, %v3855_v38, %v3849_v16  ;;  %v3862_v4 = vmul.f32 %v3857_v17, %v6018_v35 }
0x18f3   :  { %v3860_v5 = vmul.f32 %v3859_v3, %v5998_v29  ;;  %v3863_v16 = vmul.f32 %v3856_v21, %v6006_v31 }
0x18f4   :  { %v3865_v28 = vpop.permute.xlu0 %3864 }
0x18f5   :  { %v3867_v42 = vpop.permute.xlu1 %3866 }
0x18f6   :  { %v3874_v60 = vsel %vm129_vm1, %v3865_v28, %v3867_v42 }
0x18f7   :  { %v3877_v59 = vmul.f32 %v3874_v60, %v5987_v24 }
0x18f8   :  { %v3869_v58 = vpop.permute.xlu0 %3868 }
0x18f9   :  { %v3873_v1 = vsel %vm129_vm1, %v3867_v42, %v3869_v58  ;;  %v3871_v56 = vpop.permute.xlu1 %3870  ;;  %v5493_v25 = vpack.c.bf16 %v3877_v59, %v3861_v37 }
0x18fa   :  { %v3878_v61 = vmul.f32 %v3873_v1, %v6026_v39  ;;  %v3872_v8 = vsel %vm129_vm1, %v3869_v58, %v3871_v56  ;;  %v3875_v43 = vsel %vm129_vm1, %v3871_v56, %v3865_v28 }
0x18fb   :  { %v3876_v38 = vmul.f32 %v3875_v43, %v6002_v30  ;;  %v3879_v23 = vmul.f32 %v3872_v8, %v6014_v34  ;;  %5494 = vmatprep.subr.bf16.mxu0 %v5493_v25 }
0x18fc   :  { %v3881_v11 = vpop.permute.xlu0 %3880  ;;  %v5515_v59 = vpack.c.bf16 %v3878_v61, %v3862_v4 }
0x18fd   :  { %v5495_v42 = vpack.c.bf16 %v3876_v38, %v3860_v5  ;;  %v3883_v60 = vpop.permute.xlu1 %3882  ;;  %v5513_v37 = vpack.c.bf16 %v3879_v23, %v3863_v16 }
0x18fe   :  { %v3890_v21 = vsel %vm162_vm2, %v3881_v11, %v3883_v60 }
0x18ff   :  { %5496 = vmatpush1.bf16.msra.mxu0 %v5495_v42  ;;  %5514 = vmatprep.subr.bf16.mxu1 %v5513_v37  ;;  %v3893_v17 = vmul.f32 %v3890_v21, %v6052_v62 }
0x1900   :  { %5516 = vmatpush1.bf16.msra.mxu1 %v5515_v59  ;;  %v3885_v28 = vpop.permute.xlu0 %3884 }
0x1901   :  { %v3887_v58 = vpop.permute.xlu1 %3886  ;;  %v3889_v5 = vsel %vm162_vm2, %v3883_v60, %v3885_v28 }
0x1902   :  { %v3888_v61 = vsel %vm162_vm2, %v3885_v28, %v3887_v58  ;;  %v3891_v8 = vsel %vm162_vm2, %v3887_v58, %v3881_v11  ;;  %v3894_v28 = vmul.f32 %v3889_v5, %v6066_v14 }
0x1903   :  { %v3892_v59 = vmul.f32 %v3891_v8, %v6062_v13  ;;  %v3895_v11 = vmul.f32 %v3888_v61, %v6070_v19 }
0x1904   :  { %v3897_v3 = vpop.permute.xlu0 %3896 }
0x1905   :  { %v3899_v1 = vpop.permute.xlu1 %3898 }
0x1906   :  { %v3906_v56 = vsel %vm195_vm3, %v3897_v3, %v3899_v1 }
0x1907   :  { %v3909_v25 = vmul.f32 %v3906_v56, %v6056_v63 }
0x1908   :  { %v3901_v43 = vpop.permute.xlu0 %3900 }
0x1909   :  { %v3905_v16 = vsel %vm195_vm3, %v3899_v1, %v3901_v43  ;;  %v3903_v38 = vpop.permute.xlu1 %3902  ;;  %v5497_v23 = vpack.c.bf16 %v3909_v25, %v3893_v17 }
0x190a   :  { %v3910_v4 = vmul.f32 %v3905_v16, %v6082_v33  ;;  %v3904_v42 = vsel %vm195_vm3, %v3901_v43, %v3903_v38  ;;  %v3907_v37 = vsel %vm195_vm3, %v3903_v38, %v3897_v3 }
0x190b   :  { %v3908_v58 = vmul.f32 %v3907_v37, %v6078_v32  ;;  %v3911_v60 = vmul.f32 %v3904_v42, %v6090_v40  ;;  %5498 = vmatprep.subr.bf16.mxu0 %v5497_v23 }
0x190c   :  { %v3913_v21 = vpop.permute.xlu0 %3912  ;;  %v5519_v25 = vpack.c.bf16 %v3910_v4, %v3894_v28 }
0x190d   :  { %v5499_v1 = vpack.c.bf16 %v3908_v58, %v3892_v59  ;;  %v3915_v56 = vpop.permute.xlu1 %3914  ;;  %v5517_v17 = vpack.c.bf16 %v3911_v60, %v3895_v11 }
0x190e   :  { %v3922_v43 = vsel %vm228_vm4, %v3913_v21, %v3915_v56 }
0x190f   :  { %5500 = vmatpush1.bf16.msra.mxu0 %v5499_v1  ;;  %5518 = vmatprep.subr.bf16.mxu1 %v5517_v17  ;;  %v3924_v61 = vmul.f32 %v3922_v43, %v8539_v12 }
0x1910   :  { %5520 = vmatpush1.bf16.msra.mxu1 %v5519_v25  ;;  %v3917_v3 = vpop.permute.xlu0 %3916 }
0x1911   :  { %v3921_v8 = vsel %vm228_vm4, %v3915_v56, %v3917_v3  ;;  %v3919_v16 = vpop.permute.xlu1 %3918  ;;  %v5503_v11 = vpack.c.bf16 %v3924_v61, %v8019_v10 }
0x1912   :  { %v3925_v5 = vmul.f32 %v3921_v8, %v6122_v27  ;;  %v3920_v38 = vsel %vm228_vm4, %v3917_v3, %v3919_v16  ;;  %v3923_v23 = vsel %vm228_vm4, %v3919_v16, %v3913_v21 }
0x1913   :  { %v3926_v4 = vmul.f32 %v3920_v38, %v8540_v0  ;;  %v3927_v42 = vmul.f32 %v3923_v23, %v8543_v55 }
0x1914   :  { %v3929_v37 = vpop.permute.xlu0 %3928  ;;  %v5501_v59 = vpack.c.bf16 %v3925_v5, %v8022_v44 }
0x1915   :  { %v5523_v58 = vpack.c.bf16 %v3926_v4, %v8033_v9  ;;  %v3931_v60 = vpop.permute.xlu1 %3930  ;;  %v5521_v28 = vpack.c.bf16 %v3927_v42, %v8036_v49 }
0x1916   :  { %5502 = vmatprep.subr.bf16.mxu0 %v5501_v59  ;;  %v3938_v25 = vsel %vm261_vm6, %v3929_v37, %v3931_v60 }
0x1917   :  { %5504 = vmatpush1.bf16.msra.mxu0 %v5503_v11  ;;  %5522 = vmatprep.subr.bf16.mxu1 %v5521_v28  ;;  %v3940_v3 = vmul.f32 %v3938_v25, %v8549_v48 }
0x1918   :  { %5524 = vmatpush1.bf16.msra.mxu1 %v5523_v58  ;;  %v3933_v1 = vpop.permute.xlu0 %3932 }
0x1919   :  { %v3935_v21 = vpop.permute.xlu1 %3934  ;;  %v3937_v10 = vsel %vm261_vm6, %v3931_v60, %v3933_v1 }
0x191a   :  { %v3936_v9 = vsel %vm261_vm6, %v3933_v1, %v3935_v21  ;;  %v3939_v49 = vsel %vm261_vm6, %v3935_v21, %v3929_v37  ;;  %v3941_v5 = vmul.f32 %v3937_v10, %v8550_v54 }
0x191b   :  { %v3942_v42 = vmul.f32 %v3936_v9, %v8553_v6  ;;  %v3943_v37 = vmul.f32 %v3939_v49, %v8554_v18 }
0x191c   :  { %v3945_v56 = vpop.permute.xlu0 %3944 }
0x191d   :  { %v3947_v17 = vpop.permute.xlu1 %3946 }
0x191e   :  { %v3954_v44 = vsel %vm294_vm5, %v3945_v56, %v3947_v17 }
0x191f   :  { %v3956_v61 = vmul.f32 %v3954_v44, %v8555_v20 }
0x1920   :  { %v3949_v43 = vpop.permute.xlu0 %3948 }
0x1921   :  { %v3953_v8 = vsel %vm294_vm5, %v3947_v17, %v3949_v43  ;;  %v3951_v16 = vpop.permute.xlu1 %3950  ;;  %v5507_v28 = vpack.c.bf16 %v3956_v61, %v3940_v3 }
0x1922   :  { %v3957_v38 = vmul.f32 %v3953_v8, %v8558_v22  ;;  %v3952_v23 = vsel %vm294_vm5, %v3949_v43, %v3951_v16  ;;  %v3955_v4 = vsel %vm294_vm5, %v3951_v16, %v3945_v56 }
0x1923   :  { %v3958_v59 = vmul.f32 %v3952_v23, %v8559_v50  ;;  %v3959_v11 = vmul.f32 %v3955_v4, %v8560_v46 }
0x1924   :  { %v3961_v58 = vpop.permute.xlu0 %3960  ;;  %v5505_v60 = vpack.c.bf16 %v3957_v38, %v3941_v5 }
0x1925   :  { %v5527_v1 = vpack.c.bf16 %v3958_v59, %v3942_v42  ;;  %v3963_v21 = vpop.permute.xlu1 %3962  ;;  %v5525_v17 = vpack.c.bf16 %v3959_v11, %v3943_v37  ;;  %v8287_v11 = vld [vmem:[#allocation2 + $0x108] sm:$0xff] }
0x1926   :  { %v3970_v25 = vsel %vm327_vm7, %v3961_v58, %v3963_v21  ;;  %5506 = vmatprep.subr.bf16.mxu0 %v5505_v60 }
0x1927   :  { %5508 = vmatpush1.bf16.msra.mxu0 %v5507_v28  ;;  %5526 = vmatprep.subr.bf16.mxu1 %v5525_v17  ;;  %v3972_v44 = vmul.f32 %v7778_v36, %v3970_v25 }
0x1928   :  { %5528 = vmatpush1.bf16.msra.mxu1 %v5527_v1  ;;  %v3965_v56 = vpop.permute.xlu0 %3964 }
0x1929   :  { %v3969_v10 = vsel %vm327_vm7, %v3963_v21, %v3965_v56  ;;  %v3967_v9 = vpop.permute.xlu1 %3966  ;;  %v5511_v36 = vpack.c.bf16 %v8014_v7, %v3972_v44 }
0x192a   :  { %v3973_v49 = vmul.f32 %v7790_v53, %v3969_v10  ;;  %v3968_v43 = vsel %vm327_vm7, %v3965_v56, %v3967_v9  ;;  %v3971_v3 = vsel %vm327_vm7, %v3967_v9, %v3961_v58  ;;  %v3977_v53 = vld [vmem:[#allocation2 + $0xf0] sm:$0xff]  ;;  %v8574_v58 = vmov 72  }
0x192b   :  { %v3974_v61 = vmul.f32 %v7803_v52, %v3968_v43  ;;  %v3975_v8 = vmul.f32 %v7815_v57, %v3971_v3 }
0x192c   :  { %v5509_v16 = vpack.c.bf16 %v8016_v47, %v3973_v49 }
0x192d   :  { %v5531_v5 = vpack.c.bf16 %v8024_v45, %v3974_v61  ;;  %v5529_v38 = vpack.c.bf16 %v8028_v51, %v3975_v8 }
0x192e   :  { %5510 = vmatprep.subr.bf16.mxu0 %v5509_v16 }
0x192f   :  { %5512 = vmatpush1.bf16.msra.mxu0 %v5511_v36  ;;  %5530 = vmatprep.subr.bf16.mxu1 %v5529_v38 }
0x1930   :  { %5532 = vmatpush1.bf16.msra.mxu1 %v5531_v5 }
0x1932   :  { %4482 = vmatmul.mubr.msk.f32.vlgmr.msra.gmra.mrb[30].mxu0 %vm364_vm8, %v8098_v2 }
0x1933   :  { %4484 = vmatmul.mubr.msk.f32.vlgmr.msra.gmra.mrb[30].mxu1 %vm364_vm8, %v8098_v2  ;;  %4062 = vmatprep.mubr.f32.mxu0 %v8571_v41 }
0x1934   :  { %4139 = vmatprep.mubr.f32.mxu1 %v8571_v41 }
0x1936   :  { %4483 = vmatmul.mubr.msk.f32.gmra.mrb[32].mxu0 %vm364_vm8, %v3977_v53 }
0x1937   :  { %4485 = vmatmul.mubr.msk.f32.gmra.mrb[32].mxu1 %vm364_vm8, %v3977_v53  ;;  %4350 = vmatprep.mubr.f32.mxu0 %v8571_v41 }
0x1938   :  { %4421 = vmatprep.mubr.f32.mxu1 %v8571_v41 }
0x1939   :  { %v3981_v52 = vpop.permute.xlu0 %3980 }
0x1a05   :  { %v4058_v57 = vpop.f32.mrb[30].mxu0 }
0x1a06   :  { %v4059_v7 = vadd.f32 %v4058_v57, %v3981_v52  ;;  %v4060_v47 = vpop.f32.mrb[31].mxu0  ;;  %v4135_v45 = vpop.f32.mrb[30].mxu1 }
0x1a07   :  { %v4136_v51 = vadd.f32 %v4135_v45, %v3981_v52  ;;  %v4137_v2 = vpop.f32.mrb[31].mxu1  ;;  %v4061_v4 = vadd.f32 %v4060_v47, %v3981_v52 }
0x1a08   :  { %v8215_v23 = vmax.f32 %v4059_v7, 0.0  ;;  %v4138_v41 = vadd.f32 %v4137_v2, %v3981_v52 }
0x1a09   :  { %v8217_v42 = vmax.f32 %v4136_v51, 0.0  ;;  %v8223_v37 = vmax.f32 %v4061_v4, 0.0 }
0x1a0a   :  { %4150 = vrot.lane.b32.xlu1 %v8215_v23, %s5749_s30  ;;  %v8229_v59 = vmax.f32 %v4138_v41, 0.0 }
0x1a0b   :  { %4154 = vrot.lane.b32.xlu0 %v8217_v42, %s5749_s30 }
0x1a0e   :  { %4152 = vrot.lane.b32.xlu1 %v8223_v37, %s5749_s30 }
0x1a0f   :  { %4166 = vrot.lane.b32.xlu0 %v8215_v23, %s5750_s0 }
0x1a12   :  { %4156 = vrot.lane.b32.xlu1 %v8229_v59, %s5749_s30 }
0x1a13   :  { %4170 = vrot.lane.b32.xlu0 %v8217_v42, %s5750_s0 }
0x1a16   :  { %4168 = vrot.lane.b32.xlu1 %v8223_v37, %s5750_s0 }
0x1a17   :  { %4182 = vrot.lane.b32.xlu0 %v8215_v23, %s5751_s9 }
0x1a1a   :  { %4172 = vrot.lane.b32.xlu1 %v8229_v59, %s5750_s0 }
0x1a1b   :  { %4186 = vrot.lane.b32.xlu0 %v8217_v42, %s5751_s9 }
0x1a1e   :  { %4184 = vrot.lane.b32.xlu1 %v8223_v37, %s5751_s9 }
0x1a1f   :  { %4198 = vrot.lane.b32.xlu0 %v8215_v23, %s5752_s10 }
0x1a22   :  { %4188 = vrot.lane.b32.xlu1 %v8229_v59, %s5751_s9 }
0x1a23   :  { %4202 = vrot.lane.b32.xlu0 %v8217_v42, %s5752_s10 }
0x1a26   :  { %4200 = vrot.lane.b32.xlu1 %v8223_v37, %s5752_s10 }
0x1a27   :  { %4214 = vrot.lane.b32.xlu0 %v8215_v23, %s5753_s11 }
0x1a2a   :  { %4204 = vrot.lane.b32.xlu1 %v8229_v59, %s5752_s10 }
0x1a2b   :  { %4218 = vrot.lane.b32.xlu0 %v8217_v42, %s5753_s11 }
0x1a2e   :  { %4216 = vrot.lane.b32.xlu1 %v8223_v37, %s5753_s11 }
0x1a2f   :  { %4230 = vrot.lane.b32.xlu0 %v8215_v23, %s5754_s12 }
0x1a32   :  { %4220 = vrot.lane.b32.xlu1 %v8229_v59, %s5753_s11 }
0x1a33   :  { %4234 = vrot.lane.b32.xlu0 %v8217_v42, %s5754_s12 }
0x1a36   :  { %4232 = vrot.lane.b32.xlu1 %v8223_v37, %s5754_s12 }
0x1a37   :  { %4246 = vrot.lane.b32.xlu0 %v8215_v23, %s5755_s13 }
0x1a3a   :  { %4236 = vrot.lane.b32.xlu1 %v8229_v59, %s5754_s12 }
0x1a3b   :  { %4250 = vrot.lane.b32.xlu0 %v8217_v42, %s5755_s13 }
0x1a3e   :  { %4248 = vrot.lane.b32.xlu1 %v8223_v37, %s5755_s13 }
0x1a3f   :  { %4262 = vrot.lane.b32.xlu0 %v8215_v23, %s5757_s14 }
0x1a42   :  { %4252 = vrot.lane.b32.xlu1 %v8229_v59, %s5755_s13 }
0x1a43   :  { %4266 = vrot.lane.b32.xlu0 %v8217_v42, %s5757_s14 }
0x1a46   :  { %4264 = vrot.lane.b32.xlu1 %v8223_v37, %s5757_s14 }
0x1a47   :  { %3985 = vperm.xlu0 %5655, %v3977_v53  }
0x1a4a   :  { %4268 = vrot.lane.b32.xlu1 %v8229_v59, %s5757_s14 }
0x1a4b   :  { %5656 = vset.pattern.permute.xlu0 %v8574_v58 }
0x1a4e   :  { %4281 = vperm.xlu1 %5652, %v8287_v11  }
0x1a7c   :  { %v4151_v60 = vpop.permute.xlu1 %4150 }
0x1a7d   :  { %v4155_v28 = vpop.permute.xlu0 %4154 }
0x1a80   :  { %v4153_v1 = vpop.permute.xlu1 %4152 }
0x1a81   :  { %v4167_v21 = vpop.permute.xlu0 %4166  ;;  %v4160_v56 = vsel %vm96_vm0, %v4151_v60, %v4153_v1  ;;  %v4159_v16 = vsel %vm96_vm0, %v4153_v1, %v4155_v28 }
0x1a82   :  { %v4163_v49 = vmul.f32 %v4160_v56, %v8573_v26  ;;  %v4164_v45 = vmul.f32 %v4159_v16, %v6018_v35 }
0x1a84   :  { %v4157_v17 = vpop.permute.xlu1 %4156 }
0x1a85   :  { %v4171_v25 = vpop.permute.xlu0 %4170  ;;  %v4158_v61 = vsel %vm96_vm0, %v4155_v28, %v4157_v17  ;;  %v4161_v8 = vsel %vm96_vm0, %v4157_v17, %v4151_v60 }
0x1a86   :  { %v4162_v52 = vmul.f32 %v4161_v8, %v5998_v29  ;;  %v4165_v57 = vmul.f32 %v4158_v61, %v6006_v31 }
0x1a88   :  { %v4169_v44 = vpop.permute.xlu1 %4168 }
0x1a89   :  { %v4176_v10 = vsel %vm129_vm1, %v4167_v21, %v4169_v44  ;;  %v4183_v9 = vpop.permute.xlu0 %4182  ;;  %v4175_v43 = vsel %vm129_vm1, %v4169_v44, %v4171_v25 }
0x1a8a   :  { %v4179_v3 = vmul.f32 %v4176_v10, %v5987_v24  ;;  %v4180_v38 = vmul.f32 %v4175_v43, %v6026_v39 }
0x1a8c   :  { %v4173_v36 = vpop.permute.xlu1 %4172  ;;  %v5533_v5 = vpack.c.bf16 %v4179_v3, %v4163_v49  ;;  %v5551_v4 = vpack.c.bf16 %v4180_v38, %v4164_v45 }
0x1a8d   :  { %v4174_v26 = vsel %vm129_vm1, %v4171_v25, %v4173_v36  ;;  %v4177_v53 = vsel %vm129_vm1, %v4173_v36, %v4167_v21  ;;  %v4187_v24 = vpop.permute.xlu0 %4186 }
0x1a8e   :  { %v4178_v7 = vmul.f32 %v4177_v53, %v6002_v30  ;;  %v4181_v47 = vmul.f32 %v4174_v26, %v6014_v34  ;;  %5534 = vmatprep.subr.bf16.mxu0 %v5533_v5 }
0x1a90   :  { %v5535_v51 = vpack.c.bf16 %v4178_v7, %v4162_v52  ;;  %v4185_v39 = vpop.permute.xlu1 %4184  ;;  %v5549_v2 = vpack.c.bf16 %v4181_v47, %v4165_v57 }
0x1a91   :  { %v4199_v41 = vpop.permute.xlu0 %4198  ;;  %v4192_v29 = vsel %vm162_vm2, %v4183_v9, %v4185_v39  ;;  %v4191_v25 = vsel %vm162_vm2, %v4185_v39, %v4187_v24 }
0x1a92   :  { %5536 = vmatpush1.bf16.msra.mxu0 %v5535_v51  ;;  %5550 = vmatprep.subr.bf16.mxu1 %v5549_v2  ;;  %v4195_v35 = vmul.f32 %v4192_v29, %v6052_v62  ;;  %v4196_v8 = vmul.f32 %v4191_v25, %v6066_v14 }
0x1a93   :  { %5552 = vmatpush1.bf16.msra.mxu1 %v5551_v4 }
0x1a94   :  { %v4189_v58 = vpop.permute.xlu1 %4188 }
0x1a95   :  { %v4203_v60 = vpop.permute.xlu0 %4202  ;;  %v4190_v21 = vsel %vm162_vm2, %v4187_v24, %v4189_v58  ;;  %v4193_v17 = vsel %vm162_vm2, %v4189_v58, %v4183_v9 }
0x1a96   :  { %v4194_v43 = vmul.f32 %v4193_v17, %v6062_v13  ;;  %v4197_v3 = vmul.f32 %v4190_v21, %v6070_v19 }
0x1a98   :  { %v4201_v31 = vpop.permute.xlu1 %4200 }
0x1a99   :  { %v4208_v30 = vsel %vm195_vm3, %v4199_v41, %v4201_v31  ;;  %v4215_v34 = vpop.permute.xlu0 %4214  ;;  %v4207_v28 = vsel %vm195_vm3, %v4201_v31, %v4203_v60 }
0x1a9a   :  { %v4211_v1 = vmul.f32 %v4208_v30, %v6056_v63  ;;  %v4212_v10 = vmul.f32 %v4207_v28, %v6082_v33 }
0x1a9c   :  { %v4205_v56 = vpop.permute.xlu1 %4204  ;;  %v5537_v44 = vpack.c.bf16 %v4211_v1, %v4195_v35  ;;  %v5555_v5 = vpack.c.bf16 %v4212_v10, %v4196_v8 }
0x1a9d   :  { %v4206_v62 = vsel %vm195_vm3, %v4203_v60, %v4205_v56  ;;  %v4209_v49 = vsel %vm195_vm3, %v4205_v56, %v4199_v41  ;;  %v4219_v63 = vpop.permute.xlu0 %4218 }
0x1a9e   :  { %v4210_v9 = vmul.f32 %v4209_v49, %v6078_v32  ;;  %v4213_v61 = vmul.f32 %v4206_v62, %v6090_v40  ;;  %5538 = vmatprep.subr.bf16.mxu0 %v5537_v44 }
0x1aa0   :  { %v5539_v16 = vpack.c.bf16 %v4210_v9, %v4194_v43  ;;  %v4217_v33 = vpop.permute.xlu1 %4216  ;;  %v5553_v36 = vpack.c.bf16 %v4213_v61, %v4197_v3  ;;  %v5668_v43 = vld [vmem:[%s8417_s2 + $0x30] ss:$0 sm:$0xff]  ;;  %v5669_v9 = vld [vmem:[%s8417_s2 + $0x38] ss:$0 sm:$0xff] }
0x1aa1   :  { %v4223_v38 = vsel %vm228_vm4, %v4217_v33, %v4219_v63  ;;  %v4224_v26 = vsel %vm228_vm4, %v4215_v34, %v4217_v33  ;;  %v4231_v13 = vpop.permute.xlu0 %4230 }
0x1aa2   :  { %v4226_v19 = vmul.f32 %v4224_v26, %v8539_v12  ;;  %v4227_v32 = vmul.f32 %v4223_v38, %v6122_v27  ;;  %5540 = vmatpush1.bf16.msra.mxu0 %v5539_v16  ;;  %5554 = vmatprep.subr.bf16.mxu1 %v5553_v36 }
0x1aa3   :  { %5556 = vmatpush1.bf16.msra.mxu1 %v5555_v5 }
0x1aa4   :  { %v5543_v14 = vpack.c.bf16 %v4226_v19, %v8215_v23  ;;  %v4221_v40 = vpop.permute.xlu1 %4220  ;;  %v5541_v53 = vpack.c.bf16 %v4227_v32, %v8223_v37 }
0x1aa5   :  { %v4222_v24 = vsel %vm228_vm4, %v4219_v63, %v4221_v40  ;;  %v4225_v52 = vsel %vm228_vm4, %v4221_v40, %v4215_v34  ;;  %v4235_v57 = vpop.permute.xlu0 %4234 }
0x1aa6   :  { %v4228_v7 = vmul.f32 %v4222_v24, %v8540_v0  ;;  %v4229_v12 = vmul.f32 %v4225_v52, %v8543_v55  ;;  %5542 = vmatprep.subr.bf16.mxu0 %v5541_v53 }
0x1aa7   :  { %5544 = vmatpush1.bf16.msra.mxu0 %v5543_v14 }
0x1aa8   :  { %v5559_v27 = vpack.c.bf16 %v4228_v7, %v8217_v42  ;;  %v4233_v47 = vpop.permute.xlu1 %4232  ;;  %v5557_v23 = vpack.c.bf16 %v4229_v12, %v8229_v59 }
0x1aa9   :  { %v4247_v45 = vpop.permute.xlu0 %4246  ;;  %v4239_v39 = vsel %vm261_vm6, %v4233_v47, %v4235_v57  ;;  %v4240_v0 = vsel %vm261_vm6, %v4231_v13, %v4233_v47 }
0x1aaa   :  { %5558 = vmatprep.subr.bf16.mxu1 %v5557_v23  ;;  %v4242_v59 = vmul.f32 %v4240_v0, %v8549_v48  ;;  %v4243_v4 = vmul.f32 %v4239_v39, %v8550_v54 }
0x1aab   :  { %5560 = vmatpush1.bf16.msra.mxu1 %v5559_v27 }
0x1aac   :  { %v4237_v37 = vpop.permute.xlu1 %4236 }
0x1aad   :  { %v4251_v51 = vpop.permute.xlu0 %4250  ;;  %v4238_v29 = vsel %vm261_vm6, %v4235_v57, %v4237_v37  ;;  %v4241_v31 = vsel %vm261_vm6, %v4237_v37, %v4231_v13 }
0x1aae   :  { %v4244_v54 = vmul.f32 %v4238_v29, %v8553_v6  ;;  %v5666_v6 = vld [vmem:[%s8417_s2 + $0x20] ss:$0 sm:$0xff] }
0x1ab0   :  { %v4249_v2 = vpop.permute.xlu1 %4248 }
0x1ab1   :  { %v4255_v55 = vsel %vm294_vm5, %v4249_v2, %v4251_v51  ;;  %v4256_v42 = vsel %vm294_vm5, %v4247_v45, %v4249_v2  ;;  %v4263_v60 = vpop.permute.xlu0 %4262 }
0x1ab2   :  { %v4258_v41 = vmul.f32 %v4256_v42, %v8555_v20  ;;  %v4259_v58 = vmul.f32 %v4255_v55, %v8558_v22  ;;  %v4245_v20 = vmul.f32 %v4241_v31, %v8554_v18 }
0x1ab4   :  { %v5547_v30 = vpack.c.bf16 %v4258_v41, %v4242_v59  ;;  %v4253_v34 = vpop.permute.xlu1 %4252  ;;  %v5545_v35 = vpack.c.bf16 %v4259_v58, %v4243_v4 }
0x1ab5   :  { %v4254_v28 = vsel %vm294_vm5, %v4251_v51, %v4253_v34  ;;  %v4257_v48 = vsel %vm294_vm5, %v4253_v34, %v4247_v45  ;;  %v4267_v17 = vpop.permute.xlu0 %4266 }
0x1ab6   :  { %v4260_v22 = vmul.f32 %v4254_v28, %v8559_v50  ;;  %v4261_v1 = vmul.f32 %v4257_v48, %v8560_v46  ;;  %5546 = vmatprep.subr.bf16.mxu0 %v5545_v35  ;;  %v5667_v50 = vld [vmem:[%s8417_s2 + $0x28] ss:$0 sm:$0xff] }
0x1ab7   :  { %5548 = vmatpush1.bf16.msra.mxu0 %v5547_v30 }
0x1ab8   :  { %v5563_v21 = vpack.c.bf16 %v4260_v22, %v4244_v54  ;;  %v4265_v25 = vpop.permute.xlu1 %4264  ;;  %v5561_v56 = vpack.c.bf16 %v4261_v1, %v4245_v20 }
0x1ab9   :  { %v4271_v44 = vsel %vm327_vm7, %v4265_v25, %v4267_v17  ;;  %v4272_v10 = vsel %vm327_vm7, %v4263_v60, %v4265_v25 }
0x1aba   :  { %v4274_v18 = vmul.f32 %v5666_v6, %v4272_v10  ;;  %v4275_v46 = vmul.f32 %v5667_v50, %v4271_v44  ;;  %5562 = vmatprep.subr.bf16.mxu1 %v5561_v56 }
0x1abb   :  { %5564 = vmatpush1.bf16.msra.mxu1 %v5563_v21 }
0x1abc   :  { %4302 = vmatprep.subr.mxu0 %v4275_v46  ;;  %v4269_v62 = vpop.permute.xlu1 %4268 }
0x1abd   :  { %v4270_v49 = vsel %vm327_vm7, %v4267_v17, %v4269_v62  ;;  %v4273_v63 = vsel %vm327_vm7, %v4269_v62, %v4263_v60  ;;  %4303 = vmatpush1.msra.mxu0 %v4274_v18 }
0x1abe   :  { %v4276_v3 = vmul.f32 %v5668_v43, %v4270_v49  ;;  %v4277_v61 = vmul.f32 %v5669_v9, %v4273_v63  ;;  %4486 = vmatmul.mubr.msk.f32.vlgmr.msra.gmra.mrb[32].mxu0 %vm661_vm9, %v8287_v11 }
0x1ac0   :  { %4373 = vmatprep.subr.mxu1 %v4277_v61 }
0x1ac1   :  { %4374 = vmatpush1.msra.mxu1 %v4276_v3 }
0x1ac2   :  { %4487 = vmatmul.mubr.msk.f32.vlgmr.msra.gmra.mrb[32].mxu1 %vm661_vm9, %v8287_v11 }
0x1ac6   :  { %v3986_v8 = vpop.permute.xlu0 %3985 }
0x1acd   :  { %v4282_v15 = vpop.permute.xlu1 %4281 }
0x1ace   :  { %v5589_v16 = vadd.f32 %v4282_v15, %v3986_v8 }
0x1b91   :  { %v4352_v33 = vpop.f32.mrb[32].mxu0 }
0x1b92   :  { %v5590_v36 = vadd.f32 %v5589_v16, %v4352_v33  ;;  %v4354_v5 = vpop.f32.mrb[33].mxu0 }
0x1b93   :  { %v5592_v38 = vadd.f32 %v5589_v16, %v4354_v5 }
0x1b94   :  { %4432 = vst [vmem:[%s8423_s8] sm:$0xff] %v5590_v36 }
0x1b95   :  { %4433 = vst [vmem:[%s8423_s8 + $0x8] sm:$0xff] %v5592_v38  ;;  %v4423_v26 = vpop.f32.mrb[32].mxu1 }
0x1b96   :  { %v5594_v13 = vadd.f32 %v5589_v16, %v4423_v26  ;;  %v4425_v19 = vpop.f32.mrb[33].mxu1 }
0x1b97   :  { %v5596_v32 = vadd.f32 %v5589_v16, %v4425_v19 }
0x1b98   :  { %4434 = vst [vmem:[%s8423_s8 + $0x10] sm:$0xff] %v5594_v13 }
0x1b99   :  { %4435 = vst [vmem:[%s8423_s8 + $0x18] sm:$0xff] %v5596_v32 }
0x1b9a   :  { %4440 = vsyncpa [#allocation3], 1 }
0x1b9b   :  { %4441 = vsyncpa [#allocation5], 1 }

</bundles_post_ra>
